<compile_context>
chip_gen: v5e
topology: v5e:2x2
jax: 0.10.0
libtpu: 0.0.40
codegen_flags: <defaults>
</compile_context>

<pallas_src>
import jax
import jax.numpy as jnp
from jax import lax
from jax.experimental import pallas as pl
from jax.experimental.pallas import tpu as pltpu

F32 = jnp.float32

# ----------------------------- model config ---------------------------------
CFG = dict(
    src_vocab_size=50,
    trg_vocab_size=60,
    src_pad_idx=0,
    trg_pad_idx=0,
    embed_size=32,
    num_layers=2,
    forward_expansion=4,
    heads=4,
    max_length=16,
)

EMBED = CFG["embed_size"]
HEADS = CFG["heads"]
HEAD_DIM = EMBED // HEADS
NUM_LAYERS = CFG["num_layers"]
FF_DIM = CFG["forward_expansion"] * EMBED
TRG_VOCAB = CFG["trg_vocab_size"]
VOCAB_PAD = ((TRG_VOCAB + 127) // 128) * 128      # lane-dense logits width
INV_SQRT_HD = 1.0 / (HEAD_DIM ** 0.5)             # spec: softmax(energy / head_dim**0.5)

# Order in which the prepared (stacked / pre-transposed) weights are fed to the
# fused kernel. The kernel unpacks in exactly this order.
WEIGHT_NAMES = (
    # encoder stack (leading axis = layer)
    "e_wqkv", "e_wo", "e_bo",
    "e_ln1g", "e_ln1b", "e_ln2g", "e_ln2b",
    "e_w1", "e_b1", "e_w2", "e_b2",
    # decoder self-attention + its LayerNorm
    "d_swqkv", "d_swo", "d_sbo", "d_lng", "d_lnb",
    # decoder cross-attention transformer block
    "d_cwqkv", "d_cwo", "d_cbo",
    "d_ln1g", "d_ln1b", "d_ln2g", "d_ln2b",
    "d_w1", "d_b1", "d_w2", "d_b2",
    # final vocab projection (fused into the same kernel, lane-padded)
    "fc_w", "fc_b",
)


# ----------------------------- kernel helpers --------------------------------


def _layernorm(x, g, b):
    # LayerNorm over the last axis, eps=1e-5 (PyTorch default). g/b: (1, E).
    mean = jnp.mean(x, axis=-1, keepdims=True)
    xc = x - mean
    var = jnp.mean(xc * xc, axis=-1, keepdims=True)
    return xc * lax.rsqrt(var + 1e-5) * g + b


def _attention(x_q, x_kv, mask, wqkv, wo, bo):
    # x_q: (Lq, E), x_kv: (Lk, E).
    # wqkv: (E, 3E), columns [q | k | v], each a block-diagonal
    # kron(I_heads, W^T) -> fused lane-dense projections.
    # wo: (E, E) in (in, out) layout; bo: (1, E).
    # mask: bool, broadcastable to (Lq, Lk); True = keep.
    if x_q is x_kv:
        qkv = jnp.dot(x_q, wqkv, preferred_element_type=F32)          # (L, 3E)
        q = qkv[:, :EMBED]
        k = qkv[:, EMBED:2 * EMBED]
        v = qkv[:, 2 * EMBED:]
    else:
        q = jnp.dot(x_q, wqkv[:, :EMBED], preferred_element_type=F32)  # (Lq, E)
        kv = jnp.dot(x_kv, wqkv[:, EMBED:], preferred_element_type=F32)  # (Lk, 2E)
        k = kv[:, :EMBED]
        v = kv[:, EMBED:]

    heads_out = []
    for h in range(HEADS):                              # static unrolled loop
        sl = slice(h * HEAD_DIM, (h + 1) * HEAD_DIM)
        qh, kh, vh = q[:, sl], k[:, sl], v[:, sl]
        energy = lax.dot_general(qh, kh, (((1,), (1,)), ((), ())),
                                 preferred_element_type=F32)      # (Lq, Lk)
        energy = jnp.where(mask, energy, jnp.asarray(-1e20, F32))
        energy = energy * INV_SQRT_HD
        m = jnp.max(energy, axis=-1, keepdims=True)
        p = jnp.exp(energy - m)
        s = jnp.sum(p, axis=-1, keepdims=True)
        attn = p * pl.reciprocal(s, approx=True)        # EUP-side divide
        heads_out.append(jnp.dot(attn, vh, preferred_element_type=F32))
    o = jnp.concatenate(heads_out, axis=-1)             # (Lq, E)
    return jnp.dot(o, wo, preferred_element_type=F32) + bo


def _transformer_block(x_kv, x_q, mask, wqkv, wo, bo,
                       ln1g, ln1b, ln2g, ln2b, w1, b1, w2, b2):
    a = _attention(x_q, x_kv, mask, wqkv, wo, bo)
    x = _layernorm(a + x_q, ln1g, ln1b)
    h = jnp.maximum(jnp.dot(x, w1, preferred_element_type=F32) + b1, 0.0)
    f = jnp.dot(h, w2, preferred_element_type=F32) + b2
    return _layernorm(f + x, ln2g, ln2b)


# ----------------------------- fused forward kernel --------------------------


def _transformer_kernel(enc_x_ref, dec_x_ref, keep_ref, *refs):
    out_ref = refs[-1]
    (e_wqkv, e_wo, e_bo,
     e_ln1g, e_ln1b, e_ln2g, e_ln2b,
     e_w1, e_b1, e_w2, e_b2,
     d_swqkv, d_swo, d_sbo, d_lng, d_lnb,
     d_cwqkv, d_cwo, d_cbo,
     d_ln1g, d_ln1b, d_ln2g, d_ln2b,
     d_w1, d_b1, d_w2, d_b2,
     fc_w, fc_b) = refs[:-1]

    Lt = dec_x_ref.shape[0]

    # src padding mask over key positions (broadcast over queries and heads).
    src_keep = keep_ref[...] > 0.5                       # (1, Ls) bool

    # ---- encoder stack (all activations stay in VMEM/vregs) ----
    x = enc_x_ref[...]                                   # (Ls, E)
    for l in range(NUM_LAYERS):
        x = _transformer_block(
            x, x, src_keep,
            e_wqkv[l], e_wo[l], e_bo[l],
            e_ln1g[l], e_ln1b[l], e_ln2g[l], e_ln2b[l],
            e_w1[l], e_b1[l], e_w2[l], e_b2[l])
    enc_out = x

    # ---- decoder stack ----
    # causal mask built in-kernel: no (N, Lt, Lt) HBM mask input.
    row = lax.broadcasted_iota(jnp.int32, (Lt, Lt), 0)
    col = lax.broadcasted_iota(jnp.int32, (Lt, Lt), 1)
    causal = col <= row                                  # (Lt, Lt) bool

    y = dec_x_ref[...]                                   # (Lt, E)
    for l in range(NUM_LAYERS):
        a = _attention(y, y, causal,
                       d_swqkv[l], d_swo[l], d_sbo[l])
        q = _layernorm(a + y, d_lng[l], d_lnb[l])
        y = _transformer_block(
            enc_out, q, src_keep,
            d_cwqkv[l], d_cwo[l], d_cbo[l],
            d_ln1g[l], d_ln1b[l], d_ln2g[l], d_ln2b[l],
            d_w1[l], d_b1[l], d_w2[l], d_b2[l])

    # ---- final vocab projection, fused; 128-lane-dense output (unmasked vst) ----
    out_ref[...] = jnp.dot(y, fc_w[...], preferred_element_type=F32) + fc_b[...]


# ----------------------------- pallas_call wrapper ----------------------------


def _act_spec(L):
    return pl.BlockSpec((None, L, EMBED), lambda n: (n, 0, 0))


def _full_spec(a):
    # Whole (tiny) weight array resident each grid step (constant index_map ->
    # DMA'd once, never re-fetched across grid steps).
    if a.ndim == 3:
        return pl.BlockSpec(a.shape, lambda n: (0, 0, 0))
    return pl.BlockSpec(a.shape, lambda n: (0, 0))


@jax.jit
def transformer_forward(prepared, src, trg):
    N, Ls = src.shape
    Lt = trg.shape[1]
    # TODO(synk): embedding gather stays in plain JAX glue (data-dependent gather).
    enc_x = (jnp.take(prepared["enc_word_emb"], src, axis=0)
             + prepared["enc_pos_emb"][:Ls][None, :, :])
    dec_x = (jnp.take(prepared["dec_word_emb"], trg, axis=0)
             + prepared["dec_pos_emb"][:Lt][None, :, :])
    keep = (src != CFG["src_pad_idx"]).astype(F32)[:, None, :]      # (N, 1, Ls)

    weights = [prepared[name] for name in WEIGHT_NAMES]
    logits_padded = pl.pallas_call(
        _transformer_kernel,
        out_shape=jax.ShapeDtypeStruct((N, Lt, VOCAB_PAD), F32),
        grid=(N,),
        in_specs=([_act_spec(Ls), _act_spec(Lt),
                   pl.BlockSpec((None, 1, Ls), lambda n: (n, 0, 0))]
                  + [_full_spec(w) for w in weights]),
        out_specs=pl.BlockSpec((None, Lt, VOCAB_PAD), lambda n: (n, 0, 0)),
        compiler_params=pltpu.CompilerParams(
            dimension_semantics=("parallel",)),   # v7x: batch items across TCs
    )(enc_x, dec_x, keep, *weights)
    # Wrapper-side layout plumbing: slice the lane-padded logits to trg_vocab.
    return logits_padded[..., :TRG_VOCAB]


# ----------------------------- parameter init --------------------------------


def _dense(key, out_dim, in_dim):
    return jax.random.normal(key, (out_dim, in_dim), F32) / jnp.sqrt(
        jnp.asarray(in_dim, F32))


def init_attention(key, E, heads):
    hd = E // heads
    k = jax.random.split(key, 5)
    return dict(
        wq=_dense(k[0], hd, hd),
        wk=_dense(k[1], hd, hd),
        wv=_dense(k[2], hd, hd),
        wo=_dense(k[3], E, E),
        bo=0.01 * jax.random.normal(k[4], (1, E), F32),
    )


def init_transformer_block(key, E, heads, fwd_exp):
    k = jax.random.split(key, 5)
    return dict(
        attn=init_attention(k[0], E, heads),
        ln1_g=jnp.ones((1, E), F32), ln1_b=jnp.zeros((1, E), F32),
        ln2_g=jnp.ones((1, E), F32), ln2_b=jnp.zeros((1, E), F32),
        ff_w1=_dense(k[1], fwd_exp * E, E),
        ff_b1=0.01 * jax.random.normal(k[2], (1, fwd_exp * E), F32),
        ff_w2=_dense(k[3], E, fwd_exp * E),
        ff_b2=0.01 * jax.random.normal(k[4], (1, E), F32),
    )


def init_decoder_block(key, E, heads, fwd_exp):
    k = jax.random.split(key, 2)
    return dict(
        attn=init_attention(k[0], E, heads),
        ln_g=jnp.ones((1, E), F32), ln_b=jnp.zeros((1, E), F32),
        tb=init_transformer_block(k[1], E, heads, fwd_exp),
    )


def init_transformer_params(key, cfg):
    E, H = cfg["embed_size"], cfg["heads"]
    Fx, L = cfg["forward_expansion"], cfg["num_layers"]
    keys = jax.random.split(key, 2 * L + 6)
    enc_layers = [init_transformer_block(keys[i], E, H, Fx) for i in range(L)]
    dec_layers = [init_decoder_block(keys[L + i], E, H, Fx) for i in range(L)]
    return dict(
        enc_word_emb=jax.random.normal(keys[2 * L], (cfg["src_vocab_size"], E), F32),
        enc_pos_emb=jax.random.normal(keys[2 * L + 1], (cfg["max_length"], E), F32),
        enc_layers=enc_layers,
        dec_word_emb=jax.random.normal(keys[2 * L + 2], (cfg["trg_vocab_size"], E), F32),
        dec_pos_emb=jax.random.normal(keys[2 * L + 3], (cfg["max_length"], E), F32),
        dec_layers=dec_layers,
        dec_fc_w=_dense(keys[2 * L + 4], cfg["trg_vocab_size"], E),
        dec_fc_b=0.01 * jax.random.normal(keys[2 * L + 5],
                                          (1, cfg["trg_vocab_size"]), F32),
    )


def prepare_params(params, cfg):
    """One-time host preprocessing to the fused-kernel layout:
    fused block-diag kron(I_heads, W^T) q/k/v weights (E, 3E), (in, out)
    weight layouts, per-layer weights stacked along a leading layer axis,
    and a lane-padded (E, 128) final projection."""
    H = cfg["heads"]
    eye_h = jnp.eye(H, dtype=F32)

    def qkv_fused(a):     # torch (out,in) (hd,hd) weights -> fused (E, 3E) (in,out)
        return jnp.concatenate(
            [jnp.kron(eye_h, a["wq"].T),
             jnp.kron(eye_h, a["wk"].T),
             jnp.kron(eye_h, a["wv"].T)], axis=1)

    def stack(fn, layers):
        return jnp.stack([fn(lp) for lp in layers], axis=0)

    enc = params["enc_layers"]
    dec = params["dec_layers"]
    pad = VOCAB_PAD - cfg["trg_vocab_size"]
    return dict(
        enc_word_emb=params["enc_word_emb"], enc_pos_emb=params["enc_pos_emb"],
        dec_word_emb=params["dec_word_emb"], dec_pos_emb=params["dec_pos_emb"],
        # encoder layers
        e_wqkv=stack(lambda p: qkv_fused(p["attn"]), enc),
        e_wo=stack(lambda p: p["attn"]["wo"].T, enc),
        e_bo=stack(lambda p: p["attn"]["bo"], enc),
        e_ln1g=stack(lambda p: p["ln1_g"], enc),
        e_ln1b=stack(lambda p: p["ln1_b"], enc),
        e_ln2g=stack(lambda p: p["ln2_g"], enc),
        e_ln2b=stack(lambda p: p["ln2_b"], enc),
        e_w1=stack(lambda p: p["ff_w1"].T, enc),
        e_b1=stack(lambda p: p["ff_b1"], enc),
        e_w2=stack(lambda p: p["ff_w2"].T, enc),
        e_b2=stack(lambda p: p["ff_b2"], enc),
        # decoder self-attn + its LayerNorm
        d_swqkv=stack(lambda p: qkv_fused(p["attn"]), dec),
        d_swo=stack(lambda p: p["attn"]["wo"].T, dec),
        d_sbo=stack(lambda p: p["attn"]["bo"], dec),
        d_lng=stack(lambda p: p["ln_g"], dec),
        d_lnb=stack(lambda p: p["ln_b"], dec),
        # decoder cross-attn transformer block
        d_cwqkv=stack(lambda p: qkv_fused(p["tb"]["attn"]), dec),
        d_cwo=stack(lambda p: p["tb"]["attn"]["wo"].T, dec),
        d_cbo=stack(lambda p: p["tb"]["attn"]["bo"], dec),
        d_ln1g=stack(lambda p: p["tb"]["ln1_g"], dec),
        d_ln1b=stack(lambda p: p["tb"]["ln1_b"], dec),
        d_ln2g=stack(lambda p: p["tb"]["ln2_g"], dec),
        d_ln2b=stack(lambda p: p["tb"]["ln2_b"], dec),
        d_w1=stack(lambda p: p["tb"]["ff_w1"].T, dec),
        d_b1=stack(lambda p: p["tb"]["ff_b1"], dec),
        d_w2=stack(lambda p: p["tb"]["ff_w2"].T, dec),
        d_b2=stack(lambda p: p["tb"]["ff_b2"], dec),
        # final projection, padded to a 128-lane-dense output width
        fc_w=jnp.pad(params["dec_fc_w"].T, ((0, 0), (0, pad))),
        fc_b=jnp.pad(params["dec_fc_b"], ((0, 0), (0, pad))),
    )


# ----------------------------- driver ---------------------------------------

if __name__ == "__main__":
    key = jax.random.PRNGKey(0)
    pkey, skey, tkey = jax.random.split(key, 3)
    params = init_transformer_params(pkey, CFG)
    prepared = prepare_params(params, CFG)        # host-side, once

    N, Ls, Lt = 2, 8, 8
    src = jax.random.randint(skey, (N, Ls), 0, CFG["src_vocab_size"], dtype=jnp.int32)
    trg = jax.random.randint(tkey, (N, Lt), 0, CFG["trg_vocab_size"], dtype=jnp.int32)

    out = transformer_forward(prepared, src, trg)
    out = jax.block_until_ready(out)
    assert out.shape == (N, Lt, CFG["trg_vocab_size"]), out.shape
    assert bool(jnp.all(jnp.isfinite(out)))
    print("KERNEL_OK")
</pallas_src>

<mosaic_0001>
module attributes {stable_mosaic.version = 11 : i64} {
  func.func @_transformer_kernel(%arg0: i32, %arg1: memref<1x8x32xf32, #tpu.memory_space<vmem>>, %arg2: memref<1x8x32xf32, #tpu.memory_space<vmem>>, %arg3: memref<1x1x8xf32, #tpu.memory_space<vmem>>, %arg4: memref<2x32x96xf32, #tpu.memory_space<vmem>>, %arg5: memref<2x32x32xf32, #tpu.memory_space<vmem>>, %arg6: memref<2x1x32xf32, #tpu.memory_space<vmem>>, %arg7: memref<2x1x32xf32, #tpu.memory_space<vmem>>, %arg8: memref<2x1x32xf32, #tpu.memory_space<vmem>>, %arg9: memref<2x1x32xf32, #tpu.memory_space<vmem>>, %arg10: memref<2x1x32xf32, #tpu.memory_space<vmem>>, %arg11: memref<2x32x128xf32, #tpu.memory_space<vmem>>, %arg12: memref<2x1x128xf32, #tpu.memory_space<vmem>>, %arg13: memref<2x128x32xf32, #tpu.memory_space<vmem>>, %arg14: memref<2x1x32xf32, #tpu.memory_space<vmem>>, %arg15: memref<2x32x96xf32, #tpu.memory_space<vmem>>, %arg16: memref<2x32x32xf32, #tpu.memory_space<vmem>>, %arg17: memref<2x1x32xf32, #tpu.memory_space<vmem>>, %arg18: memref<2x1x32xf32, #tpu.memory_space<vmem>>, %arg19: memref<2x1x32xf32, #tpu.memory_space<vmem>>, %arg20: memref<2x32x96xf32, #tpu.memory_space<vmem>>, %arg21: memref<2x32x32xf32, #tpu.memory_space<vmem>>, %arg22: memref<2x1x32xf32, #tpu.memory_space<vmem>>, %arg23: memref<2x1x32xf32, #tpu.memory_space<vmem>>, %arg24: memref<2x1x32xf32, #tpu.memory_space<vmem>>, %arg25: memref<2x1x32xf32, #tpu.memory_space<vmem>>, %arg26: memref<2x1x32xf32, #tpu.memory_space<vmem>>, %arg27: memref<2x32x128xf32, #tpu.memory_space<vmem>>, %arg28: memref<2x1x128xf32, #tpu.memory_space<vmem>>, %arg29: memref<2x128x32xf32, #tpu.memory_space<vmem>>, %arg30: memref<2x1x32xf32, #tpu.memory_space<vmem>>, %arg31: memref<32x128xf32, #tpu.memory_space<vmem>>, %arg32: memref<1x128xf32, #tpu.memory_space<vmem>>, %arg33: memref<1x8x128xf32, #tpu.memory_space<vmem>>) attributes {dimension_semantics = [#tpu.dimension_semantics<parallel>], iteration_bounds = array<i64: 2>, scalar_prefetch = 0 : i64, scratch_operands = 0 : i64, tpu.core_type = #tpu.core_type<tc>, window_params = [{transform_indices = @transform_0, window_bounds = array<i64: 1, 8, 32>}, {transform_indices = @transform_1, window_bounds = array<i64: 1, 8, 32>}, {transform_indices = @transform_2, window_bounds = array<i64: 1, 1, 8>}, {pipeline_mode = #tpu.pipeline_mode<synchronous>, transform_indices = @transform_3, window_bounds = array<i64: 2, 32, 96>}, {pipeline_mode = #tpu.pipeline_mode<synchronous>, transform_indices = @transform_4, window_bounds = array<i64: 2, 32, 32>}, {pipeline_mode = #tpu.pipeline_mode<synchronous>, transform_indices = @transform_5, window_bounds = array<i64: 2, 1, 32>}, {pipeline_mode = #tpu.pipeline_mode<synchronous>, transform_indices = @transform_6, window_bounds = array<i64: 2, 1, 32>}, {pipeline_mode = #tpu.pipeline_mode<synchronous>, transform_indices = @transform_7, window_bounds = array<i64: 2, 1, 32>}, {pipeline_mode = #tpu.pipeline_mode<synchronous>, transform_indices = @transform_8, window_bounds = array<i64: 2, 1, 32>}, {pipeline_mode = #tpu.pipeline_mode<synchronous>, transform_indices = @transform_9, window_bounds = array<i64: 2, 1, 32>}, {pipeline_mode = #tpu.pipeline_mode<synchronous>, transform_indices = @transform_10, window_bounds = array<i64: 2, 32, 128>}, {pipeline_mode = #tpu.pipeline_mode<synchronous>, transform_indices = @transform_11, window_bounds = array<i64: 2, 1, 128>}, {pipeline_mode = #tpu.pipeline_mode<synchronous>, transform_indices = @transform_12, window_bounds = array<i64: 2, 128, 32>}, {pipeline_mode = #tpu.pipeline_mode<synchronous>, transform_indices = @transform_13, window_bounds = array<i64: 2, 1, 32>}, {pipeline_mode = #tpu.pipeline_mode<synchronous>, transform_indices = @transform_14, window_bounds = array<i64: 2, 32, 96>}, {pipeline_mode = #tpu.pipeline_mode<synchronous>, transform_indices = @transform_15, window_bounds = array<i64: 2, 32, 32>}, {pipeline_mode = #tpu.pipeline_mode<synchronous>, transform_indices = @transform_16, window_bounds = array<i64: 2, 1, 32>}, {pipeline_mode = #tpu.pipeline_mode<synchronous>, transform_indices = @transform_17, window_bounds = array<i64: 2, 1, 32>}, {pipeline_mode = #tpu.pipeline_mode<synchronous>, transform_indices = @transform_18, window_bounds = array<i64: 2, 1, 32>}, {pipeline_mode = #tpu.pipeline_mode<synchronous>, transform_indices = @transform_19, window_bounds = array<i64: 2, 32, 96>}, {pipeline_mode = #tpu.pipeline_mode<synchronous>, transform_indices = @transform_20, window_bounds = array<i64: 2, 32, 32>}, {pipeline_mode = #tpu.pipeline_mode<synchronous>, transform_indices = @transform_21, window_bounds = array<i64: 2, 1, 32>}, {pipeline_mode = #tpu.pipeline_mode<synchronous>, transform_indices = @transform_22, window_bounds = array<i64: 2, 1, 32>}, {pipeline_mode = #tpu.pipeline_mode<synchronous>, transform_indices = @transform_23, window_bounds = array<i64: 2, 1, 32>}, {pipeline_mode = #tpu.pipeline_mode<synchronous>, transform_indices = @transform_24, window_bounds = array<i64: 2, 1, 32>}, {pipeline_mode = #tpu.pipeline_mode<synchronous>, transform_indices = @transform_25, window_bounds = array<i64: 2, 1, 32>}, {pipeline_mode = #tpu.pipeline_mode<synchronous>, transform_indices = @transform_26, window_bounds = array<i64: 2, 32, 128>}, {pipeline_mode = #tpu.pipeline_mode<synchronous>, transform_indices = @transform_27, window_bounds = array<i64: 2, 1, 128>}, {pipeline_mode = #tpu.pipeline_mode<synchronous>, transform_indices = @transform_28, window_bounds = array<i64: 2, 128, 32>}, {pipeline_mode = #tpu.pipeline_mode<synchronous>, transform_indices = @transform_29, window_bounds = array<i64: 2, 1, 32>}, {pipeline_mode = #tpu.pipeline_mode<synchronous>, transform_indices = @transform_30, window_bounds = array<i64: 32, 128>}, {pipeline_mode = #tpu.pipeline_mode<synchronous>, transform_indices = @transform_31, window_bounds = array<i64: 1, 128>}, {transform_indices = @transform_32, window_bounds = array<i64: 1, 8, 128>}]} {
    %c0 = arith.constant 0 : index
    %c0_0 = arith.constant 0 : index
    %c0_1 = arith.constant 0 : index
    %0 = vector.load %arg3[%c0, %c0_0, %c0_1] : memref<1x1x8xf32, #tpu.memory_space<vmem>>, vector<1x1x8xf32>
    %1 = vector.shape_cast %0 : vector<1x1x8xf32> to vector<1x8xf32>
    %cst = arith.constant 5.000000e-01 : f32
    %2 = vector.broadcast %cst : f32 to vector<1x8xf32>
    %3 = arith.cmpf ogt, %1, %2 : vector<1x8xf32>
    %c0_2 = arith.constant 0 : index
    %c0_3 = arith.constant 0 : index
    %c0_4 = arith.constant 0 : index
    %4 = vector.load %arg1[%c0_2, %c0_3, %c0_4] : memref<1x8x32xf32, #tpu.memory_space<vmem>>, vector<1x8x32xf32>
    %5 = vector.shape_cast %4 : vector<1x8x32xf32> to vector<8x32xf32>
    %c0_5 = arith.constant 0 : index
    %c0_6 = arith.constant 0 : index
    %c0_7 = arith.constant 0 : index
    %6 = vector.load %arg4[%c0_5, %c0_6, %c0_7] : memref<2x32x96xf32, #tpu.memory_space<vmem>>, vector<1x32x96xf32>
    %7 = vector.shape_cast %6 : vector<1x32x96xf32> to vector<32x96xf32>
    %c0_8 = arith.constant 0 : index
    %c0_9 = arith.constant 0 : index
    %c0_10 = arith.constant 0 : index
    %8 = vector.load %arg5[%c0_8, %c0_9, %c0_10] : memref<2x32x32xf32, #tpu.memory_space<vmem>>, vector<1x32x32xf32>
    %9 = vector.shape_cast %8 : vector<1x32x32xf32> to vector<32x32xf32>
    %c0_11 = arith.constant 0 : index
    %c0_12 = arith.constant 0 : index
    %c0_13 = arith.constant 0 : index
    %10 = vector.load %arg6[%c0_11, %c0_12, %c0_13] : memref<2x1x32xf32, #tpu.memory_space<vmem>>, vector<1x1x32xf32>
    %11 = vector.shape_cast %10 : vector<1x1x32xf32> to vector<1x32xf32>
    %c0_14 = arith.constant 0 : index
    %c0_15 = arith.constant 0 : index
    %c0_16 = arith.constant 0 : index
    %12 = vector.load %arg7[%c0_14, %c0_15, %c0_16] : memref<2x1x32xf32, #tpu.memory_space<vmem>>, vector<1x1x32xf32>
    %13 = vector.shape_cast %12 : vector<1x1x32xf32> to vector<1x32xf32>
    %c0_17 = arith.constant 0 : index
    %c0_18 = arith.constant 0 : index
    %c0_19 = arith.constant 0 : index
    %14 = vector.load %arg8[%c0_17, %c0_18, %c0_19] : memref<2x1x32xf32, #tpu.memory_space<vmem>>, vector<1x1x32xf32>
    %15 = vector.shape_cast %14 : vector<1x1x32xf32> to vector<1x32xf32>
    %c0_20 = arith.constant 0 : index
    %c0_21 = arith.constant 0 : index
    %c0_22 = arith.constant 0 : index
    %16 = vector.load %arg9[%c0_20, %c0_21, %c0_22] : memref<2x1x32xf32, #tpu.memory_space<vmem>>, vector<1x1x32xf32>
    %17 = vector.shape_cast %16 : vector<1x1x32xf32> to vector<1x32xf32>
    %c0_23 = arith.constant 0 : index
    %c0_24 = arith.constant 0 : index
    %c0_25 = arith.constant 0 : index
    %18 = vector.load %arg10[%c0_23, %c0_24, %c0_25] : memref<2x1x32xf32, #tpu.memory_space<vmem>>, vector<1x1x32xf32>
    %19 = vector.shape_cast %18 : vector<1x1x32xf32> to vector<1x32xf32>
    %c0_26 = arith.constant 0 : index
    %c0_27 = arith.constant 0 : index
    %c0_28 = arith.constant 0 : index
    %20 = vector.load %arg11[%c0_26, %c0_27, %c0_28] : memref<2x32x128xf32, #tpu.memory_space<vmem>>, vector<1x32x128xf32>
    %21 = vector.shape_cast %20 : vector<1x32x128xf32> to vector<32x128xf32>
    %c0_29 = arith.constant 0 : index
    %c0_30 = arith.constant 0 : index
    %c0_31 = arith.constant 0 : index
    %22 = vector.load %arg12[%c0_29, %c0_30, %c0_31] : memref<2x1x128xf32, #tpu.memory_space<vmem>>, vector<1x1x128xf32>
    %23 = vector.shape_cast %22 : vector<1x1x128xf32> to vector<1x128xf32>
    %c0_32 = arith.constant 0 : index
    %c0_33 = arith.constant 0 : index
    %c0_34 = arith.constant 0 : index
    %24 = vector.load %arg13[%c0_32, %c0_33, %c0_34] : memref<2x128x32xf32, #tpu.memory_space<vmem>>, vector<1x128x32xf32>
    %25 = vector.shape_cast %24 : vector<1x128x32xf32> to vector<128x32xf32>
    %c0_35 = arith.constant 0 : index
    %c0_36 = arith.constant 0 : index
    %c0_37 = arith.constant 0 : index
    %26 = vector.load %arg14[%c0_35, %c0_36, %c0_37] : memref<2x1x32xf32, #tpu.memory_space<vmem>>, vector<1x1x32xf32>
    %27 = vector.shape_cast %26 : vector<1x1x32xf32> to vector<1x32xf32>
    %cst_38 = arith.constant dense<0.000000e+00> : vector<8x96xf32>
    %28 = tpu.matmul %5, %7, %cst_38 {dimension_numbers = #tpu.dot_dimension_numbers<[1], [0], [0], [1], [0, 0, 1, 1], [], []>} : vector<8x32xf32>, vector<32x96xf32>, vector<8x96xf32> -> vector<8x96xf32>
    %29 = vector.extract_strided_slice %28 {offsets = [0, 0], sizes = [8, 32], strides = [1, 1]} : vector<8x96xf32> to vector<8x32xf32>
    %30 = vector.extract_strided_slice %28 {offsets = [0, 32], sizes = [8, 32], strides = [1, 1]} : vector<8x96xf32> to vector<8x32xf32>
    %31 = vector.extract_strided_slice %28 {offsets = [0, 64], sizes = [8, 32], strides = [1, 1]} : vector<8x96xf32> to vector<8x32xf32>
    %32 = vector.extract_strided_slice %29 {offsets = [0, 0], sizes = [8, 8], strides = [1, 1]} : vector<8x32xf32> to vector<8x8xf32>
    %33 = vector.extract_strided_slice %30 {offsets = [0, 0], sizes = [8, 8], strides = [1, 1]} : vector<8x32xf32> to vector<8x8xf32>
    %34 = vector.extract_strided_slice %31 {offsets = [0, 0], sizes = [8, 8], strides = [1, 1]} : vector<8x32xf32> to vector<8x8xf32>
    %cst_39 = arith.constant dense<0.000000e+00> : vector<8x8xf32>
    %35 = tpu.matmul %32, %33, %cst_39 {dimension_numbers = #tpu.dot_dimension_numbers<[1], [1], [0], [0], [0, 0, 1, 0], [], []>} : vector<8x8xf32>, vector<8x8xf32>, vector<8x8xf32> -> vector<8x8xf32>
    %cst_40 = arith.constant -1.000000e+20 : f32
    %36 = vector.shape_cast %3 : vector<1x8xi1> to vector<1x8xi1>
    %37 = vector.broadcast %36 : vector<1x8xi1> to vector<8x8xi1>
    %38 = vector.broadcast %cst_40 : f32 to vector<8x8xf32>
    %39 = arith.select %37, %35, %38 : vector<8x8xi1>, vector<8x8xf32>
    %cst_41 = arith.constant 0.353553385 : f32
    %40 = vector.broadcast %cst_41 : f32 to vector<8x8xf32>
    %41 = arith.mulf %39, %40 : vector<8x8xf32>
    %cst_42 = arith.constant dense<0xFF800000> : vector<8xf32>
    %42 = vector.multi_reduction <maximumf>, %41, %cst_42 [1] : vector<8x8xf32> to vector<8xf32>
    %43 = vector.shape_cast %42 : vector<8xf32> to vector<8x1xf32>
    %44 = vector.broadcast %43 : vector<8x1xf32> to vector<8x8xf32>
    %45 = arith.subf %41, %44 : vector<8x8xf32>
    %46 = math.exp %45 : vector<8x8xf32>
    %cst_43 = arith.constant dense<0.000000e+00> : vector<8xf32>
    %47 = vector.multi_reduction <add>, %46, %cst_43 [1] : vector<8x8xf32> to vector<8xf32>
    %48 = vector.shape_cast %47 : vector<8xf32> to vector<8x1xf32>
    %49 = tpu.reciprocal %48 {approx = true} : vector<8x1xf32> -> vector<8x1xf32>
    %50 = vector.broadcast %49 : vector<8x1xf32> to vector<8x8xf32>
    %51 = arith.mulf %46, %50 : vector<8x8xf32>
    %cst_44 = arith.constant dense<0.000000e+00> : vector<8x8xf32>
    %52 = tpu.matmul %51, %34, %cst_44 {dimension_numbers = #tpu.dot_dimension_numbers<[1], [0], [0], [1], [0, 0, 1, 1], [], []>} : vector<8x8xf32>, vector<8x8xf32>, vector<8x8xf32> -> vector<8x8xf32>
    %53 = vector.extract_strided_slice %29 {offsets = [0, 8], sizes = [8, 8], strides = [1, 1]} : vector<8x32xf32> to vector<8x8xf32>
    %54 = vector.extract_strided_slice %30 {offsets = [0, 8], sizes = [8, 8], strides = [1, 1]} : vector<8x32xf32> to vector<8x8xf32>
    %55 = vector.extract_strided_slice %31 {offsets = [0, 8], sizes = [8, 8], strides = [1, 1]} : vector<8x32xf32> to vector<8x8xf32>
    %cst_45 = arith.constant dense<0.000000e+00> : vector<8x8xf32>
    %56 = tpu.matmul %53, %54, %cst_45 {dimension_numbers = #tpu.dot_dimension_numbers<[1], [1], [0], [0], [0, 0, 1, 0], [], []>} : vector<8x8xf32>, vector<8x8xf32>, vector<8x8xf32> -> vector<8x8xf32>
    %cst_46 = arith.constant -1.000000e+20 : f32
    %57 = vector.shape_cast %3 : vector<1x8xi1> to vector<1x8xi1>
    %58 = vector.broadcast %57 : vector<1x8xi1> to vector<8x8xi1>
    %59 = vector.broadcast %cst_46 : f32 to vector<8x8xf32>
    %60 = arith.select %58, %56, %59 : vector<8x8xi1>, vector<8x8xf32>
    %cst_47 = arith.constant 0.353553385 : f32
    %61 = vector.broadcast %cst_47 : f32 to vector<8x8xf32>
    %62 = arith.mulf %60, %61 : vector<8x8xf32>
    %cst_48 = arith.constant dense<0xFF800000> : vector<8xf32>
    %63 = vector.multi_reduction <maximumf>, %62, %cst_48 [1] : vector<8x8xf32> to vector<8xf32>
    %64 = vector.shape_cast %63 : vector<8xf32> to vector<8x1xf32>
    %65 = vector.broadcast %64 : vector<8x1xf32> to vector<8x8xf32>
    %66 = arith.subf %62, %65 : vector<8x8xf32>
    %67 = math.exp %66 : vector<8x8xf32>
    %cst_49 = arith.constant dense<0.000000e+00> : vector<8xf32>
    %68 = vector.multi_reduction <add>, %67, %cst_49 [1] : vector<8x8xf32> to vector<8xf32>
    %69 = vector.shape_cast %68 : vector<8xf32> to vector<8x1xf32>
    %70 = tpu.reciprocal %69 {approx = true} : vector<8x1xf32> -> vector<8x1xf32>
    %71 = vector.broadcast %70 : vector<8x1xf32> to vector<8x8xf32>
    %72 = arith.mulf %67, %71 : vector<8x8xf32>
    %cst_50 = arith.constant dense<0.000000e+00> : vector<8x8xf32>
    %73 = tpu.matmul %72, %55, %cst_50 {dimension_numbers = #tpu.dot_dimension_numbers<[1], [0], [0], [1], [0, 0, 1, 1], [], []>} : vector<8x8xf32>, vector<8x8xf32>, vector<8x8xf32> -> vector<8x8xf32>
    %74 = vector.extract_strided_slice %29 {offsets = [0, 16], sizes = [8, 8], strides = [1, 1]} : vector<8x32xf32> to vector<8x8xf32>
    %75 = vector.extract_strided_slice %30 {offsets = [0, 16], sizes = [8, 8], strides = [1, 1]} : vector<8x32xf32> to vector<8x8xf32>
    %76 = vector.extract_strided_slice %31 {offsets = [0, 16], sizes = [8, 8], strides = [1, 1]} : vector<8x32xf32> to vector<8x8xf32>
    %cst_51 = arith.constant dense<0.000000e+00> : vector<8x8xf32>
    %77 = tpu.matmul %74, %75, %cst_51 {dimension_numbers = #tpu.dot_dimension_numbers<[1], [1], [0], [0], [0, 0, 1, 0], [], []>} : vector<8x8xf32>, vector<8x8xf32>, vector<8x8xf32> -> vector<8x8xf32>
    %cst_52 = arith.constant -1.000000e+20 : f32
    %78 = vector.shape_cast %3 : vector<1x8xi1> to vector<1x8xi1>
    %79 = vector.broadcast %78 : vector<1x8xi1> to vector<8x8xi1>
    %80 = vector.broadcast %cst_52 : f32 to vector<8x8xf32>
    %81 = arith.select %79, %77, %80 : vector<8x8xi1>, vector<8x8xf32>
    %cst_53 = arith.constant 0.353553385 : f32
    %82 = vector.broadcast %cst_53 : f32 to vector<8x8xf32>
    %83 = arith.mulf %81, %82 : vector<8x8xf32>
    %cst_54 = arith.constant dense<0xFF800000> : vector<8xf32>
    %84 = vector.multi_reduction <maximumf>, %83, %cst_54 [1] : vector<8x8xf32> to vector<8xf32>
    %85 = vector.shape_cast %84 : vector<8xf32> to vector<8x1xf32>
    %86 = vector.broadcast %85 : vector<8x1xf32> to vector<8x8xf32>
    %87 = arith.subf %83, %86 : vector<8x8xf32>
    %88 = math.exp %87 : vector<8x8xf32>
    %cst_55 = arith.constant dense<0.000000e+00> : vector<8xf32>
    %89 = vector.multi_reduction <add>, %88, %cst_55 [1] : vector<8x8xf32> to vector<8xf32>
    %90 = vector.shape_cast %89 : vector<8xf32> to vector<8x1xf32>
    %91 = tpu.reciprocal %90 {approx = true} : vector<8x1xf32> -> vector<8x1xf32>
    %92 = vector.broadcast %91 : vector<8x1xf32> to vector<8x8xf32>
    %93 = arith.mulf %88, %92 : vector<8x8xf32>
    %cst_56 = arith.constant dense<0.000000e+00> : vector<8x8xf32>
    %94 = tpu.matmul %93, %76, %cst_56 {dimension_numbers = #tpu.dot_dimension_numbers<[1], [0], [0], [1], [0, 0, 1, 1], [], []>} : vector<8x8xf32>, vector<8x8xf32>, vector<8x8xf32> -> vector<8x8xf32>
    %95 = vector.extract_strided_slice %29 {offsets = [0, 24], sizes = [8, 8], strides = [1, 1]} : vector<8x32xf32> to vector<8x8xf32>
    %96 = vector.extract_strided_slice %30 {offsets = [0, 24], sizes = [8, 8], strides = [1, 1]} : vector<8x32xf32> to vector<8x8xf32>
    %97 = vector.extract_strided_slice %31 {offsets = [0, 24], sizes = [8, 8], strides = [1, 1]} : vector<8x32xf32> to vector<8x8xf32>
    %cst_57 = arith.constant dense<0.000000e+00> : vector<8x8xf32>
    %98 = tpu.matmul %95, %96, %cst_57 {dimension_numbers = #tpu.dot_dimension_numbers<[1], [1], [0], [0], [0, 0, 1, 0], [], []>} : vector<8x8xf32>, vector<8x8xf32>, vector<8x8xf32> -> vector<8x8xf32>
    %cst_58 = arith.constant -1.000000e+20 : f32
    %99 = vector.shape_cast %3 : vector<1x8xi1> to vector<1x8xi1>
    %100 = vector.broadcast %99 : vector<1x8xi1> to vector<8x8xi1>
    %101 = vector.broadcast %cst_58 : f32 to vector<8x8xf32>
    %102 = arith.select %100, %98, %101 : vector<8x8xi1>, vector<8x8xf32>
    %cst_59 = arith.constant 0.353553385 : f32
    %103 = vector.broadcast %cst_59 : f32 to vector<8x8xf32>
    %104 = arith.mulf %102, %103 : vector<8x8xf32>
    %cst_60 = arith.constant dense<0xFF800000> : vector<8xf32>
    %105 = vector.multi_reduction <maximumf>, %104, %cst_60 [1] : vector<8x8xf32> to vector<8xf32>
    %106 = vector.shape_cast %105 : vector<8xf32> to vector<8x1xf32>
    %107 = vector.broadcast %106 : vector<8x1xf32> to vector<8x8xf32>
    %108 = arith.subf %104, %107 : vector<8x8xf32>
    %109 = math.exp %108 : vector<8x8xf32>
    %cst_61 = arith.constant dense<0.000000e+00> : vector<8xf32>
    %110 = vector.multi_reduction <add>, %109, %cst_61 [1] : vector<8x8xf32> to vector<8xf32>
    %111 = vector.shape_cast %110 : vector<8xf32> to vector<8x1xf32>
    %112 = tpu.reciprocal %111 {approx = true} : vector<8x1xf32> -> vector<8x1xf32>
    %113 = vector.broadcast %112 : vector<8x1xf32> to vector<8x8xf32>
    %114 = arith.mulf %109, %113 : vector<8x8xf32>
    %cst_62 = arith.constant dense<0.000000e+00> : vector<8x8xf32>
    %115 = tpu.matmul %114, %97, %cst_62 {dimension_numbers = #tpu.dot_dimension_numbers<[1], [0], [0], [1], [0, 0, 1, 1], [], []>} : vector<8x8xf32>, vector<8x8xf32>, vector<8x8xf32> -> vector<8x8xf32>
    %116 = tpu.concatenate %52, %73, %94, %115 in 1 : vector<8x8xf32>, vector<8x8xf32>, vector<8x8xf32>, vector<8x8xf32> -> vector<8x32xf32>
    %cst_63 = arith.constant dense<0.000000e+00> : vector<8x32xf32>
    %117 = tpu.matmul %116, %9, %cst_63 {dimension_numbers = #tpu.dot_dimension_numbers<[1], [0], [0], [1], [0, 0, 1, 1], [], []>} : vector<8x32xf32>, vector<32x32xf32>, vector<8x32xf32> -> vector<8x32xf32>
    %118 = vector.broadcast %11 : vector<1x32xf32> to vector<8x32xf32>
    %119 = arith.addf %117, %118 : vector<8x32xf32>
    %120 = arith.addf %119, %5 : vector<8x32xf32>
    %cst_64 = arith.constant dense<0.000000e+00> : vector<8xf32>
    %121 = vector.multi_reduction <add>, %120, %cst_64 [1] : vector<8x32xf32> to vector<8xf32>
    %122 = vector.shape_cast %121 : vector<8xf32> to vector<8x1xf32>
    %cst_65 = arith.constant 3.200000e+01 : f32
    %123 = vector.broadcast %cst_65 : f32 to vector<8x1xf32>
    %124 = arith.divf %122, %123 : vector<8x1xf32>
    %125 = vector.broadcast %124 : vector<8x1xf32> to vector<8x32xf32>
    %126 = arith.subf %120, %125 : vector<8x32xf32>
    %127 = arith.mulf %126, %126 : vector<8x32xf32>
    %cst_66 = arith.constant dense<0.000000e+00> : vector<8xf32>
    %128 = vector.multi_reduction <add>, %127, %cst_66 [1] : vector<8x32xf32> to vector<8xf32>
    %129 = vector.shape_cast %128 : vector<8xf32> to vector<8x1xf32>
    %cst_67 = arith.constant 3.200000e+01 : f32
    %130 = vector.broadcast %cst_67 : f32 to vector<8x1xf32>
    %131 = arith.divf %129, %130 : vector<8x1xf32>
    %cst_68 = arith.constant 9.99999974E-6 : f32
    %132 = vector.broadcast %cst_68 : f32 to vector<8x1xf32>
    %133 = arith.addf %131, %132 : vector<8x1xf32>
    %134 = math.rsqrt %133 : vector<8x1xf32>
    %135 = vector.broadcast %134 : vector<8x1xf32> to vector<8x32xf32>
    %136 = arith.mulf %126, %135 : vector<8x32xf32>
    %137 = vector.broadcast %13 : vector<1x32xf32> to vector<8x32xf32>
    %138 = arith.mulf %136, %137 : vector<8x32xf32>
    %139 = vector.broadcast %15 : vector<1x32xf32> to vector<8x32xf32>
    %140 = arith.addf %138, %139 : vector<8x32xf32>
    %cst_69 = arith.constant dense<0.000000e+00> : vector<8x128xf32>
    %141 = tpu.matmul %140, %21, %cst_69 {dimension_numbers = #tpu.dot_dimension_numbers<[1], [0], [0], [1], [0, 0, 1, 1], [], []>} : vector<8x32xf32>, vector<32x128xf32>, vector<8x128xf32> -> vector<8x128xf32>
    %142 = vector.broadcast %23 : vector<1x128xf32> to vector<8x128xf32>
    %143 = arith.addf %141, %142 : vector<8x128xf32>
    %cst_70 = arith.constant 0.000000e+00 : f32
    %144 = vector.broadcast %cst_70 : f32 to vector<8x128xf32>
    %145 = arith.maximumf %143, %144 : vector<8x128xf32>
    %cst_71 = arith.constant dense<0.000000e+00> : vector<8x32xf32>
    %146 = tpu.matmul %145, %25, %cst_71 {dimension_numbers = #tpu.dot_dimension_numbers<[1], [0], [0], [1], [0, 0, 1, 1], [], []>} : vector<8x128xf32>, vector<128x32xf32>, vector<8x32xf32> -> vector<8x32xf32>
    %147 = vector.broadcast %27 : vector<1x32xf32> to vector<8x32xf32>
    %148 = arith.addf %146, %147 : vector<8x32xf32>
    %149 = arith.addf %148, %140 : vector<8x32xf32>
    %cst_72 = arith.constant dense<0.000000e+00> : vector<8xf32>
    %150 = vector.multi_reduction <add>, %149, %cst_72 [1] : vector<8x32xf32> to vector<8xf32>
    %151 = vector.shape_cast %150 : vector<8xf32> to vector<8x1xf32>
    %cst_73 = arith.constant 3.200000e+01 : f32
    %152 = vector.broadcast %cst_73 : f32 to vector<8x1xf32>
    %153 = arith.divf %151, %152 : vector<8x1xf32>
    %154 = vector.broadcast %153 : vector<8x1xf32> to vector<8x32xf32>
    %155 = arith.subf %149, %154 : vector<8x32xf32>
    %156 = arith.mulf %155, %155 : vector<8x32xf32>
    %cst_74 = arith.constant dense<0.000000e+00> : vector<8xf32>
    %157 = vector.multi_reduction <add>, %156, %cst_74 [1] : vector<8x32xf32> to vector<8xf32>
    %158 = vector.shape_cast %157 : vector<8xf32> to vector<8x1xf32>
    %cst_75 = arith.constant 3.200000e+01 : f32
    %159 = vector.broadcast %cst_75 : f32 to vector<8x1xf32>
    %160 = arith.divf %158, %159 : vector<8x1xf32>
    %cst_76 = arith.constant 9.99999974E-6 : f32
    %161 = vector.broadcast %cst_76 : f32 to vector<8x1xf32>
    %162 = arith.addf %160, %161 : vector<8x1xf32>
    %163 = math.rsqrt %162 : vector<8x1xf32>
    %164 = vector.broadcast %163 : vector<8x1xf32> to vector<8x32xf32>
    %165 = arith.mulf %155, %164 : vector<8x32xf32>
    %166 = vector.broadcast %17 : vector<1x32xf32> to vector<8x32xf32>
    %167 = arith.mulf %165, %166 : vector<8x32xf32>
    %168 = vector.broadcast %19 : vector<1x32xf32> to vector<8x32xf32>
    %169 = arith.addf %167, %168 : vector<8x32xf32>
    %c1 = arith.constant 1 : index
    %c0_77 = arith.constant 0 : index
    %c0_78 = arith.constant 0 : index
    %170 = vector.load %arg4[%c1, %c0_77, %c0_78] : memref<2x32x96xf32, #tpu.memory_space<vmem>>, vector<1x32x96xf32>
    %171 = vector.shape_cast %170 : vector<1x32x96xf32> to vector<32x96xf32>
    %c1_79 = arith.constant 1 : index
    %c0_80 = arith.constant 0 : index
    %c0_81 = arith.constant 0 : index
    %172 = vector.load %arg5[%c1_79, %c0_80, %c0_81] : memref<2x32x32xf32, #tpu.memory_space<vmem>>, vector<1x32x32xf32>
    %173 = vector.shape_cast %172 : vector<1x32x32xf32> to vector<32x32xf32>
    %c1_82 = arith.constant 1 : index
    %c0_83 = arith.constant 0 : index
    %c0_84 = arith.constant 0 : index
    %174 = vector.load %arg6[%c1_82, %c0_83, %c0_84] : memref<2x1x32xf32, #tpu.memory_space<vmem>>, vector<1x1x32xf32>
    %175 = vector.shape_cast %174 : vector<1x1x32xf32> to vector<1x32xf32>
    %c1_85 = arith.constant 1 : index
    %c0_86 = arith.constant 0 : index
    %c0_87 = arith.constant 0 : index
    %176 = vector.load %arg7[%c1_85, %c0_86, %c0_87] : memref<2x1x32xf32, #tpu.memory_space<vmem>>, vector<1x1x32xf32>
    %177 = vector.shape_cast %176 : vector<1x1x32xf32> to vector<1x32xf32>
    %c1_88 = arith.constant 1 : index
    %c0_89 = arith.constant 0 : index
    %c0_90 = arith.constant 0 : index
    %178 = vector.load %arg8[%c1_88, %c0_89, %c0_90] : memref<2x1x32xf32, #tpu.memory_space<vmem>>, vector<1x1x32xf32>
    %179 = vector.shape_cast %178 : vector<1x1x32xf32> to vector<1x32xf32>
    %c1_91 = arith.constant 1 : index
    %c0_92 = arith.constant 0 : index
    %c0_93 = arith.constant 0 : index
    %180 = vector.load %arg9[%c1_91, %c0_92, %c0_93] : memref<2x1x32xf32, #tpu.memory_space<vmem>>, vector<1x1x32xf32>
    %181 = vector.shape_cast %180 : vector<1x1x32xf32> to vector<1x32xf32>
    %c1_94 = arith.constant 1 : index
    %c0_95 = arith.constant 0 : index
    %c0_96 = arith.constant 0 : index
    %182 = vector.load %arg10[%c1_94, %c0_95, %c0_96] : memref<2x1x32xf32, #tpu.memory_space<vmem>>, vector<1x1x32xf32>
    %183 = vector.shape_cast %182 : vector<1x1x32xf32> to vector<1x32xf32>
    %c1_97 = arith.constant 1 : index
    %c0_98 = arith.constant 0 : index
    %c0_99 = arith.constant 0 : index
    %184 = vector.load %arg11[%c1_97, %c0_98, %c0_99] : memref<2x32x128xf32, #tpu.memory_space<vmem>>, vector<1x32x128xf32>
    %185 = vector.shape_cast %184 : vector<1x32x128xf32> to vector<32x128xf32>
    %c1_100 = arith.constant 1 : index
    %c0_101 = arith.constant 0 : index
    %c0_102 = arith.constant 0 : index
    %186 = vector.load %arg12[%c1_100, %c0_101, %c0_102] : memref<2x1x128xf32, #tpu.memory_space<vmem>>, vector<1x1x128xf32>
    %187 = vector.shape_cast %186 : vector<1x1x128xf32> to vector<1x128xf32>
    %c1_103 = arith.constant 1 : index
    %c0_104 = arith.constant 0 : index
    %c0_105 = arith.constant 0 : index
    %188 = vector.load %arg13[%c1_103, %c0_104, %c0_105] : memref<2x128x32xf32, #tpu.memory_space<vmem>>, vector<1x128x32xf32>
    %189 = vector.shape_cast %188 : vector<1x128x32xf32> to vector<128x32xf32>
    %c1_106 = arith.constant 1 : index
    %c0_107 = arith.constant 0 : index
    %c0_108 = arith.constant 0 : index
    %190 = vector.load %arg14[%c1_106, %c0_107, %c0_108] : memref<2x1x32xf32, #tpu.memory_space<vmem>>, vector<1x1x32xf32>
    %191 = vector.shape_cast %190 : vector<1x1x32xf32> to vector<1x32xf32>
    %cst_109 = arith.constant dense<0.000000e+00> : vector<8x96xf32>
    %192 = tpu.matmul %169, %171, %cst_109 {dimension_numbers = #tpu.dot_dimension_numbers<[1], [0], [0], [1], [0, 0, 1, 1], [], []>} : vector<8x32xf32>, vector<32x96xf32>, vector<8x96xf32> -> vector<8x96xf32>
    %193 = vector.extract_strided_slice %192 {offsets = [0, 0], sizes = [8, 32], strides = [1, 1]} : vector<8x96xf32> to vector<8x32xf32>
    %194 = vector.extract_strided_slice %192 {offsets = [0, 32], sizes = [8, 32], strides = [1, 1]} : vector<8x96xf32> to vector<8x32xf32>
    %195 = vector.extract_strided_slice %192 {offsets = [0, 64], sizes = [8, 32], strides = [1, 1]} : vector<8x96xf32> to vector<8x32xf32>
    %196 = vector.extract_strided_slice %193 {offsets = [0, 0], sizes = [8, 8], strides = [1, 1]} : vector<8x32xf32> to vector<8x8xf32>
    %197 = vector.extract_strided_slice %194 {offsets = [0, 0], sizes = [8, 8], strides = [1, 1]} : vector<8x32xf32> to vector<8x8xf32>
    %198 = vector.extract_strided_slice %195 {offsets = [0, 0], sizes = [8, 8], strides = [1, 1]} : vector<8x32xf32> to vector<8x8xf32>
    %cst_110 = arith.constant dense<0.000000e+00> : vector<8x8xf32>
    %199 = tpu.matmul %196, %197, %cst_110 {dimension_numbers = #tpu.dot_dimension_numbers<[1], [1], [0], [0], [0, 0, 1, 0], [], []>} : vector<8x8xf32>, vector<8x8xf32>, vector<8x8xf32> -> vector<8x8xf32>
    %cst_111 = arith.constant -1.000000e+20 : f32
    %200 = vector.shape_cast %3 : vector<1x8xi1> to vector<1x8xi1>
    %201 = vector.broadcast %200 : vector<1x8xi1> to vector<8x8xi1>
    %202 = vector.broadcast %cst_111 : f32 to vector<8x8xf32>
    %203 = arith.select %201, %199, %202 : vector<8x8xi1>, vector<8x8xf32>
    %cst_112 = arith.constant 0.353553385 : f32
    %204 = vector.broadcast %cst_112 : f32 to vector<8x8xf32>
    %205 = arith.mulf %203, %204 : vector<8x8xf32>
    %cst_113 = arith.constant dense<0xFF800000> : vector<8xf32>
    %206 = vector.multi_reduction <maximumf>, %205, %cst_113 [1] : vector<8x8xf32> to vector<8xf32>
    %207 = vector.shape_cast %206 : vector<8xf32> to vector<8x1xf32>
    %208 = vector.broadcast %207 : vector<8x1xf32> to vector<8x8xf32>
    %209 = arith.subf %205, %208 : vector<8x8xf32>
    %210 = math.exp %209 : vector<8x8xf32>
    %cst_114 = arith.constant dense<0.000000e+00> : vector<8xf32>
    %211 = vector.multi_reduction <add>, %210, %cst_114 [1] : vector<8x8xf32> to vector<8xf32>
    %212 = vector.shape_cast %211 : vector<8xf32> to vector<8x1xf32>
    %213 = tpu.reciprocal %212 {approx = true} : vector<8x1xf32> -> vector<8x1xf32>
    %214 = vector.broadcast %213 : vector<8x1xf32> to vector<8x8xf32>
    %215 = arith.mulf %210, %214 : vector<8x8xf32>
    %cst_115 = arith.constant dense<0.000000e+00> : vector<8x8xf32>
    %216 = tpu.matmul %215, %198, %cst_115 {dimension_numbers = #tpu.dot_dimension_numbers<[1], [0], [0], [1], [0, 0, 1, 1], [], []>} : vector<8x8xf32>, vector<8x8xf32>, vector<8x8xf32> -> vector<8x8xf32>
    %217 = vector.extract_strided_slice %193 {offsets = [0, 8], sizes = [8, 8], strides = [1, 1]} : vector<8x32xf32> to vector<8x8xf32>
    %218 = vector.extract_strided_slice %194 {offsets = [0, 8], sizes = [8, 8], strides = [1, 1]} : vector<8x32xf32> to vector<8x8xf32>
    %219 = vector.extract_strided_slice %195 {offsets = [0, 8], sizes = [8, 8], strides = [1, 1]} : vector<8x32xf32> to vector<8x8xf32>
    %cst_116 = arith.constant dense<0.000000e+00> : vector<8x8xf32>
    %220 = tpu.matmul %217, %218, %cst_116 {dimension_numbers = #tpu.dot_dimension_numbers<[1], [1], [0], [0], [0, 0, 1, 0], [], []>} : vector<8x8xf32>, vector<8x8xf32>, vector<8x8xf32> -> vector<8x8xf32>
    %cst_117 = arith.constant -1.000000e+20 : f32
    %221 = vector.shape_cast %3 : vector<1x8xi1> to vector<1x8xi1>
    %222 = vector.broadcast %221 : vector<1x8xi1> to vector<8x8xi1>
    %223 = vector.broadcast %cst_117 : f32 to vector<8x8xf32>
    %224 = arith.select %222, %220, %223 : vector<8x8xi1>, vector<8x8xf32>
    %cst_118 = arith.constant 0.353553385 : f32
    %225 = vector.broadcast %cst_118 : f32 to vector<8x8xf32>
    %226 = arith.mulf %224, %225 : vector<8x8xf32>
    %cst_119 = arith.constant dense<0xFF800000> : vector<8xf32>
    %227 = vector.multi_reduction <maximumf>, %226, %cst_119 [1] : vector<8x8xf32> to vector<8xf32>
    %228 = vector.shape_cast %227 : vector<8xf32> to vector<8x1xf32>
    %229 = vector.broadcast %228 : vector<8x1xf32> to vector<8x8xf32>
    %230 = arith.subf %226, %229 : vector<8x8xf32>
    %231 = math.exp %230 : vector<8x8xf32>
    %cst_120 = arith.constant dense<0.000000e+00> : vector<8xf32>
    %232 = vector.multi_reduction <add>, %231, %cst_120 [1] : vector<8x8xf32> to vector<8xf32>
    %233 = vector.shape_cast %232 : vector<8xf32> to vector<8x1xf32>
    %234 = tpu.reciprocal %233 {approx = true} : vector<8x1xf32> -> vector<8x1xf32>
    %235 = vector.broadcast %234 : vector<8x1xf32> to vector<8x8xf32>
    %236 = arith.mulf %231, %235 : vector<8x8xf32>
    %cst_121 = arith.constant dense<0.000000e+00> : vector<8x8xf32>
    %237 = tpu.matmul %236, %219, %cst_121 {dimension_numbers = #tpu.dot_dimension_numbers<[1], [0], [0], [1], [0, 0, 1, 1], [], []>} : vector<8x8xf32>, vector<8x8xf32>, vector<8x8xf32> -> vector<8x8xf32>
    %238 = vector.extract_strided_slice %193 {offsets = [0, 16], sizes = [8, 8], strides = [1, 1]} : vector<8x32xf32> to vector<8x8xf32>
    %239 = vector.extract_strided_slice %194 {offsets = [0, 16], sizes = [8, 8], strides = [1, 1]} : vector<8x32xf32> to vector<8x8xf32>
    %240 = vector.extract_strided_slice %195 {offsets = [0, 16], sizes = [8, 8], strides = [1, 1]} : vector<8x32xf32> to vector<8x8xf32>
    %cst_122 = arith.constant dense<0.000000e+00> : vector<8x8xf32>
    %241 = tpu.matmul %238, %239, %cst_122 {dimension_numbers = #tpu.dot_dimension_numbers<[1], [1], [0], [0], [0, 0, 1, 0], [], []>} : vector<8x8xf32>, vector<8x8xf32>, vector<8x8xf32> -> vector<8x8xf32>
    %cst_123 = arith.constant -1.000000e+20 : f32
    %242 = vector.shape_cast %3 : vector<1x8xi1> to vector<1x8xi1>
    %243 = vector.broadcast %242 : vector<1x8xi1> to vector<8x8xi1>
    %244 = vector.broadcast %cst_123 : f32 to vector<8x8xf32>
    %245 = arith.select %243, %241, %244 : vector<8x8xi1>, vector<8x8xf32>
    %cst_124 = arith.constant 0.353553385 : f32
    %246 = vector.broadcast %cst_124 : f32 to vector<8x8xf32>
    %247 = arith.mulf %245, %246 : vector<8x8xf32>
    %cst_125 = arith.constant dense<0xFF800000> : vector<8xf32>
    %248 = vector.multi_reduction <maximumf>, %247, %cst_125 [1] : vector<8x8xf32> to vector<8xf32>
    %249 = vector.shape_cast %248 : vector<8xf32> to vector<8x1xf32>
    %250 = vector.broadcast %249 : vector<8x1xf32> to vector<8x8xf32>
    %251 = arith.subf %247, %250 : vector<8x8xf32>
    %252 = math.exp %251 : vector<8x8xf32>
    %cst_126 = arith.constant dense<0.000000e+00> : vector<8xf32>
    %253 = vector.multi_reduction <add>, %252, %cst_126 [1] : vector<8x8xf32> to vector<8xf32>
    %254 = vector.shape_cast %253 : vector<8xf32> to vector<8x1xf32>
    %255 = tpu.reciprocal %254 {approx = true} : vector<8x1xf32> -> vector<8x1xf32>
    %256 = vector.broadcast %255 : vector<8x1xf32> to vector<8x8xf32>
    %257 = arith.mulf %252, %256 : vector<8x8xf32>
    %cst_127 = arith.constant dense<0.000000e+00> : vector<8x8xf32>
    %258 = tpu.matmul %257, %240, %cst_127 {dimension_numbers = #tpu.dot_dimension_numbers<[1], [0], [0], [1], [0, 0, 1, 1], [], []>} : vector<8x8xf32>, vector<8x8xf32>, vector<8x8xf32> -> vector<8x8xf32>
    %259 = vector.extract_strided_slice %193 {offsets = [0, 24], sizes = [8, 8], strides = [1, 1]} : vector<8x32xf32> to vector<8x8xf32>
    %260 = vector.extract_strided_slice %194 {offsets = [0, 24], sizes = [8, 8], strides = [1, 1]} : vector<8x32xf32> to vector<8x8xf32>
    %261 = vector.extract_strided_slice %195 {offsets = [0, 24], sizes = [8, 8], strides = [1, 1]} : vector<8x32xf32> to vector<8x8xf32>
    %cst_128 = arith.constant dense<0.000000e+00> : vector<8x8xf32>
    %262 = tpu.matmul %259, %260, %cst_128 {dimension_numbers = #tpu.dot_dimension_numbers<[1], [1], [0], [0], [0, 0, 1, 0], [], []>} : vector<8x8xf32>, vector<8x8xf32>, vector<8x8xf32> -> vector<8x8xf32>
    %cst_129 = arith.constant -1.000000e+20 : f32
    %263 = vector.shape_cast %3 : vector<1x8xi1> to vector<1x8xi1>
    %264 = vector.broadcast %263 : vector<1x8xi1> to vector<8x8xi1>
    %265 = vector.broadcast %cst_129 : f32 to vector<8x8xf32>
    %266 = arith.select %264, %262, %265 : vector<8x8xi1>, vector<8x8xf32>
    %cst_130 = arith.constant 0.353553385 : f32
    %267 = vector.broadcast %cst_130 : f32 to vector<8x8xf32>
    %268 = arith.mulf %266, %267 : vector<8x8xf32>
    %cst_131 = arith.constant dense<0xFF800000> : vector<8xf32>
    %269 = vector.multi_reduction <maximumf>, %268, %cst_131 [1] : vector<8x8xf32> to vector<8xf32>
    %270 = vector.shape_cast %269 : vector<8xf32> to vector<8x1xf32>
    %271 = vector.broadcast %270 : vector<8x1xf32> to vector<8x8xf32>
    %272 = arith.subf %268, %271 : vector<8x8xf32>
    %273 = math.exp %272 : vector<8x8xf32>
    %cst_132 = arith.constant dense<0.000000e+00> : vector<8xf32>
    %274 = vector.multi_reduction <add>, %273, %cst_132 [1] : vector<8x8xf32> to vector<8xf32>
    %275 = vector.shape_cast %274 : vector<8xf32> to vector<8x1xf32>
    %276 = tpu.reciprocal %275 {approx = true} : vector<8x1xf32> -> vector<8x1xf32>
    %277 = vector.broadcast %276 : vector<8x1xf32> to vector<8x8xf32>
    %278 = arith.mulf %273, %277 : vector<8x8xf32>
    %cst_133 = arith.constant dense<0.000000e+00> : vector<8x8xf32>
    %279 = tpu.matmul %278, %261, %cst_133 {dimension_numbers = #tpu.dot_dimension_numbers<[1], [0], [0], [1], [0, 0, 1, 1], [], []>} : vector<8x8xf32>, vector<8x8xf32>, vector<8x8xf32> -> vector<8x8xf32>
    %280 = tpu.concatenate %216, %237, %258, %279 in 1 : vector<8x8xf32>, vector<8x8xf32>, vector<8x8xf32>, vector<8x8xf32> -> vector<8x32xf32>
    %cst_134 = arith.constant dense<0.000000e+00> : vector<8x32xf32>
    %281 = tpu.matmul %280, %173, %cst_134 {dimension_numbers = #tpu.dot_dimension_numbers<[1], [0], [0], [1], [0, 0, 1, 1], [], []>} : vector<8x32xf32>, vector<32x32xf32>, vector<8x32xf32> -> vector<8x32xf32>
    %282 = vector.broadcast %175 : vector<1x32xf32> to vector<8x32xf32>
    %283 = arith.addf %281, %282 : vector<8x32xf32>
    %284 = arith.addf %283, %169 : vector<8x32xf32>
    %cst_135 = arith.constant dense<0.000000e+00> : vector<8xf32>
    %285 = vector.multi_reduction <add>, %284, %cst_135 [1] : vector<8x32xf32> to vector<8xf32>
    %286 = vector.shape_cast %285 : vector<8xf32> to vector<8x1xf32>
    %cst_136 = arith.constant 3.200000e+01 : f32
    %287 = vector.broadcast %cst_136 : f32 to vector<8x1xf32>
    %288 = arith.divf %286, %287 : vector<8x1xf32>
    %289 = vector.broadcast %288 : vector<8x1xf32> to vector<8x32xf32>
    %290 = arith.subf %284, %289 : vector<8x32xf32>
    %291 = arith.mulf %290, %290 : vector<8x32xf32>
    %cst_137 = arith.constant dense<0.000000e+00> : vector<8xf32>
    %292 = vector.multi_reduction <add>, %291, %cst_137 [1] : vector<8x32xf32> to vector<8xf32>
    %293 = vector.shape_cast %292 : vector<8xf32> to vector<8x1xf32>
    %cst_138 = arith.constant 3.200000e+01 : f32
    %294 = vector.broadcast %cst_138 : f32 to vector<8x1xf32>
    %295 = arith.divf %293, %294 : vector<8x1xf32>
    %cst_139 = arith.constant 9.99999974E-6 : f32
    %296 = vector.broadcast %cst_139 : f32 to vector<8x1xf32>
    %297 = arith.addf %295, %296 : vector<8x1xf32>
    %298 = math.rsqrt %297 : vector<8x1xf32>
    %299 = vector.broadcast %298 : vector<8x1xf32> to vector<8x32xf32>
    %300 = arith.mulf %290, %299 : vector<8x32xf32>
    %301 = vector.broadcast %177 : vector<1x32xf32> to vector<8x32xf32>
    %302 = arith.mulf %300, %301 : vector<8x32xf32>
    %303 = vector.broadcast %179 : vector<1x32xf32> to vector<8x32xf32>
    %304 = arith.addf %302, %303 : vector<8x32xf32>
    %cst_140 = arith.constant dense<0.000000e+00> : vector<8x128xf32>
    %305 = tpu.matmul %304, %185, %cst_140 {dimension_numbers = #tpu.dot_dimension_numbers<[1], [0], [0], [1], [0, 0, 1, 1], [], []>} : vector<8x32xf32>, vector<32x128xf32>, vector<8x128xf32> -> vector<8x128xf32>
    %306 = vector.broadcast %187 : vector<1x128xf32> to vector<8x128xf32>
    %307 = arith.addf %305, %306 : vector<8x128xf32>
    %cst_141 = arith.constant 0.000000e+00 : f32
    %308 = vector.broadcast %cst_141 : f32 to vector<8x128xf32>
    %309 = arith.maximumf %307, %308 : vector<8x128xf32>
    %cst_142 = arith.constant dense<0.000000e+00> : vector<8x32xf32>
    %310 = tpu.matmul %309, %189, %cst_142 {dimension_numbers = #tpu.dot_dimension_numbers<[1], [0], [0], [1], [0, 0, 1, 1], [], []>} : vector<8x128xf32>, vector<128x32xf32>, vector<8x32xf32> -> vector<8x32xf32>
    %311 = vector.broadcast %191 : vector<1x32xf32> to vector<8x32xf32>
    %312 = arith.addf %310, %311 : vector<8x32xf32>
    %313 = arith.addf %312, %304 : vector<8x32xf32>
    %cst_143 = arith.constant dense<0.000000e+00> : vector<8xf32>
    %314 = vector.multi_reduction <add>, %313, %cst_143 [1] : vector<8x32xf32> to vector<8xf32>
    %315 = vector.shape_cast %314 : vector<8xf32> to vector<8x1xf32>
    %cst_144 = arith.constant 3.200000e+01 : f32
    %316 = vector.broadcast %cst_144 : f32 to vector<8x1xf32>
    %317 = arith.divf %315, %316 : vector<8x1xf32>
    %318 = vector.broadcast %317 : vector<8x1xf32> to vector<8x32xf32>
    %319 = arith.subf %313, %318 : vector<8x32xf32>
    %320 = arith.mulf %319, %319 : vector<8x32xf32>
    %cst_145 = arith.constant dense<0.000000e+00> : vector<8xf32>
    %321 = vector.multi_reduction <add>, %320, %cst_145 [1] : vector<8x32xf32> to vector<8xf32>
    %322 = vector.shape_cast %321 : vector<8xf32> to vector<8x1xf32>
    %cst_146 = arith.constant 3.200000e+01 : f32
    %323 = vector.broadcast %cst_146 : f32 to vector<8x1xf32>
    %324 = arith.divf %322, %323 : vector<8x1xf32>
    %cst_147 = arith.constant 9.99999974E-6 : f32
    %325 = vector.broadcast %cst_147 : f32 to vector<8x1xf32>
    %326 = arith.addf %324, %325 : vector<8x1xf32>
    %327 = math.rsqrt %326 : vector<8x1xf32>
    %328 = vector.broadcast %327 : vector<8x1xf32> to vector<8x32xf32>
    %329 = arith.mulf %319, %328 : vector<8x32xf32>
    %330 = vector.broadcast %181 : vector<1x32xf32> to vector<8x32xf32>
    %331 = arith.mulf %329, %330 : vector<8x32xf32>
    %332 = vector.broadcast %183 : vector<1x32xf32> to vector<8x32xf32>
    %333 = arith.addf %331, %332 : vector<8x32xf32>
    %334 = tpu.iota {dimensions = array<i32: 0>} : vector<8x8xi32>
    %335 = tpu.iota {dimensions = array<i32: 1>} : vector<8x8xi32>
    %336 = arith.cmpi sle, %335, %334 : vector<8x8xi32>
    %c0_148 = arith.constant 0 : index
    %c0_149 = arith.constant 0 : index
    %c0_150 = arith.constant 0 : index
    %337 = vector.load %arg2[%c0_148, %c0_149, %c0_150] : memref<1x8x32xf32, #tpu.memory_space<vmem>>, vector<1x8x32xf32>
    %338 = vector.shape_cast %337 : vector<1x8x32xf32> to vector<8x32xf32>
    %c0_151 = arith.constant 0 : index
    %c0_152 = arith.constant 0 : index
    %c0_153 = arith.constant 0 : index
    %339 = vector.load %arg15[%c0_151, %c0_152, %c0_153] : memref<2x32x96xf32, #tpu.memory_space<vmem>>, vector<1x32x96xf32>
    %340 = vector.shape_cast %339 : vector<1x32x96xf32> to vector<32x96xf32>
    %c0_154 = arith.constant 0 : index
    %c0_155 = arith.constant 0 : index
    %c0_156 = arith.constant 0 : index
    %341 = vector.load %arg16[%c0_154, %c0_155, %c0_156] : memref<2x32x32xf32, #tpu.memory_space<vmem>>, vector<1x32x32xf32>
    %342 = vector.shape_cast %341 : vector<1x32x32xf32> to vector<32x32xf32>
    %c0_157 = arith.constant 0 : index
    %c0_158 = arith.constant 0 : index
    %c0_159 = arith.constant 0 : index
    %343 = vector.load %arg17[%c0_157, %c0_158, %c0_159] : memref<2x1x32xf32, #tpu.memory_space<vmem>>, vector<1x1x32xf32>
    %344 = vector.shape_cast %343 : vector<1x1x32xf32> to vector<1x32xf32>
    %cst_160 = arith.constant dense<0.000000e+00> : vector<8x96xf32>
    %345 = tpu.matmul %338, %340, %cst_160 {dimension_numbers = #tpu.dot_dimension_numbers<[1], [0], [0], [1], [0, 0, 1, 1], [], []>} : vector<8x32xf32>, vector<32x96xf32>, vector<8x96xf32> -> vector<8x96xf32>
    %346 = vector.extract_strided_slice %345 {offsets = [0, 0], sizes = [8, 32], strides = [1, 1]} : vector<8x96xf32> to vector<8x32xf32>
    %347 = vector.extract_strided_slice %345 {offsets = [0, 32], sizes = [8, 32], strides = [1, 1]} : vector<8x96xf32> to vector<8x32xf32>
    %348 = vector.extract_strided_slice %345 {offsets = [0, 64], sizes = [8, 32], strides = [1, 1]} : vector<8x96xf32> to vector<8x32xf32>
    %349 = vector.extract_strided_slice %346 {offsets = [0, 0], sizes = [8, 8], strides = [1, 1]} : vector<8x32xf32> to vector<8x8xf32>
    %350 = vector.extract_strided_slice %347 {offsets = [0, 0], sizes = [8, 8], strides = [1, 1]} : vector<8x32xf32> to vector<8x8xf32>
    %351 = vector.extract_strided_slice %348 {offsets = [0, 0], sizes = [8, 8], strides = [1, 1]} : vector<8x32xf32> to vector<8x8xf32>
    %cst_161 = arith.constant dense<0.000000e+00> : vector<8x8xf32>
    %352 = tpu.matmul %349, %350, %cst_161 {dimension_numbers = #tpu.dot_dimension_numbers<[1], [1], [0], [0], [0, 0, 1, 0], [], []>} : vector<8x8xf32>, vector<8x8xf32>, vector<8x8xf32> -> vector<8x8xf32>
    %cst_162 = arith.constant -1.000000e+20 : f32
    %353 = vector.broadcast %cst_162 : f32 to vector<8x8xf32>
    %354 = arith.select %336, %352, %353 : vector<8x8xi1>, vector<8x8xf32>
    %cst_163 = arith.constant 0.353553385 : f32
    %355 = vector.broadcast %cst_163 : f32 to vector<8x8xf32>
    %356 = arith.mulf %354, %355 : vector<8x8xf32>
    %cst_164 = arith.constant dense<0xFF800000> : vector<8xf32>
    %357 = vector.multi_reduction <maximumf>, %356, %cst_164 [1] : vector<8x8xf32> to vector<8xf32>
    %358 = vector.shape_cast %357 : vector<8xf32> to vector<8x1xf32>
    %359 = vector.broadcast %358 : vector<8x1xf32> to vector<8x8xf32>
    %360 = arith.subf %356, %359 : vector<8x8xf32>
    %361 = math.exp %360 : vector<8x8xf32>
    %cst_165 = arith.constant dense<0.000000e+00> : vector<8xf32>
    %362 = vector.multi_reduction <add>, %361, %cst_165 [1] : vector<8x8xf32> to vector<8xf32>
    %363 = vector.shape_cast %362 : vector<8xf32> to vector<8x1xf32>
    %364 = tpu.reciprocal %363 {approx = true} : vector<8x1xf32> -> vector<8x1xf32>
    %365 = vector.broadcast %364 : vector<8x1xf32> to vector<8x8xf32>
    %366 = arith.mulf %361, %365 : vector<8x8xf32>
    %cst_166 = arith.constant dense<0.000000e+00> : vector<8x8xf32>
    %367 = tpu.matmul %366, %351, %cst_166 {dimension_numbers = #tpu.dot_dimension_numbers<[1], [0], [0], [1], [0, 0, 1, 1], [], []>} : vector<8x8xf32>, vector<8x8xf32>, vector<8x8xf32> -> vector<8x8xf32>
    %368 = vector.extract_strided_slice %346 {offsets = [0, 8], sizes = [8, 8], strides = [1, 1]} : vector<8x32xf32> to vector<8x8xf32>
    %369 = vector.extract_strided_slice %347 {offsets = [0, 8], sizes = [8, 8], strides = [1, 1]} : vector<8x32xf32> to vector<8x8xf32>
    %370 = vector.extract_strided_slice %348 {offsets = [0, 8], sizes = [8, 8], strides = [1, 1]} : vector<8x32xf32> to vector<8x8xf32>
    %cst_167 = arith.constant dense<0.000000e+00> : vector<8x8xf32>
    %371 = tpu.matmul %368, %369, %cst_167 {dimension_numbers = #tpu.dot_dimension_numbers<[1], [1], [0], [0], [0, 0, 1, 0], [], []>} : vector<8x8xf32>, vector<8x8xf32>, vector<8x8xf32> -> vector<8x8xf32>
    %cst_168 = arith.constant -1.000000e+20 : f32
    %372 = vector.broadcast %cst_168 : f32 to vector<8x8xf32>
    %373 = arith.select %336, %371, %372 : vector<8x8xi1>, vector<8x8xf32>
    %cst_169 = arith.constant 0.353553385 : f32
    %374 = vector.broadcast %cst_169 : f32 to vector<8x8xf32>
    %375 = arith.mulf %373, %374 : vector<8x8xf32>
    %cst_170 = arith.constant dense<0xFF800000> : vector<8xf32>
    %376 = vector.multi_reduction <maximumf>, %375, %cst_170 [1] : vector<8x8xf32> to vector<8xf32>
    %377 = vector.shape_cast %376 : vector<8xf32> to vector<8x1xf32>
    %378 = vector.broadcast %377 : vector<8x1xf32> to vector<8x8xf32>
    %379 = arith.subf %375, %378 : vector<8x8xf32>
    %380 = math.exp %379 : vector<8x8xf32>
    %cst_171 = arith.constant dense<0.000000e+00> : vector<8xf32>
    %381 = vector.multi_reduction <add>, %380, %cst_171 [1] : vector<8x8xf32> to vector<8xf32>
    %382 = vector.shape_cast %381 : vector<8xf32> to vector<8x1xf32>
    %383 = tpu.reciprocal %382 {approx = true} : vector<8x1xf32> -> vector<8x1xf32>
    %384 = vector.broadcast %383 : vector<8x1xf32> to vector<8x8xf32>
    %385 = arith.mulf %380, %384 : vector<8x8xf32>
    %cst_172 = arith.constant dense<0.000000e+00> : vector<8x8xf32>
    %386 = tpu.matmul %385, %370, %cst_172 {dimension_numbers = #tpu.dot_dimension_numbers<[1], [0], [0], [1], [0, 0, 1, 1], [], []>} : vector<8x8xf32>, vector<8x8xf32>, vector<8x8xf32> -> vector<8x8xf32>
    %387 = vector.extract_strided_slice %346 {offsets = [0, 16], sizes = [8, 8], strides = [1, 1]} : vector<8x32xf32> to vector<8x8xf32>
    %388 = vector.extract_strided_slice %347 {offsets = [0, 16], sizes = [8, 8], strides = [1, 1]} : vector<8x32xf32> to vector<8x8xf32>
    %389 = vector.extract_strided_slice %348 {offsets = [0, 16], sizes = [8, 8], strides = [1, 1]} : vector<8x32xf32> to vector<8x8xf32>
    %cst_173 = arith.constant dense<0.000000e+00> : vector<8x8xf32>
    %390 = tpu.matmul %387, %388, %cst_173 {dimension_numbers = #tpu.dot_dimension_numbers<[1], [1], [0], [0], [0, 0, 1, 0], [], []>} : vector<8x8xf32>, vector<8x8xf32>, vector<8x8xf32> -> vector<8x8xf32>
    %cst_174 = arith.constant -1.000000e+20 : f32
    %391 = vector.broadcast %cst_174 : f32 to vector<8x8xf32>
    %392 = arith.select %336, %390, %391 : vector<8x8xi1>, vector<8x8xf32>
    %cst_175 = arith.constant 0.353553385 : f32
    %393 = vector.broadcast %cst_175 : f32 to vector<8x8xf32>
    %394 = arith.mulf %392, %393 : vector<8x8xf32>
    %cst_176 = arith.constant dense<0xFF800000> : vector<8xf32>
    %395 = vector.multi_reduction <maximumf>, %394, %cst_176 [1] : vector<8x8xf32> to vector<8xf32>
    %396 = vector.shape_cast %395 : vector<8xf32> to vector<8x1xf32>
    %397 = vector.broadcast %396 : vector<8x1xf32> to vector<8x8xf32>
    %398 = arith.subf %394, %397 : vector<8x8xf32>
    %399 = math.exp %398 : vector<8x8xf32>
    %cst_177 = arith.constant dense<0.000000e+00> : vector<8xf32>
    %400 = vector.multi_reduction <add>, %399, %cst_177 [1] : vector<8x8xf32> to vector<8xf32>
    %401 = vector.shape_cast %400 : vector<8xf32> to vector<8x1xf32>
    %402 = tpu.reciprocal %401 {approx = true} : vector<8x1xf32> -> vector<8x1xf32>
    %403 = vector.broadcast %402 : vector<8x1xf32> to vector<8x8xf32>
    %404 = arith.mulf %399, %403 : vector<8x8xf32>
    %cst_178 = arith.constant dense<0.000000e+00> : vector<8x8xf32>
    %405 = tpu.matmul %404, %389, %cst_178 {dimension_numbers = #tpu.dot_dimension_numbers<[1], [0], [0], [1], [0, 0, 1, 1], [], []>} : vector<8x8xf32>, vector<8x8xf32>, vector<8x8xf32> -> vector<8x8xf32>
    %406 = vector.extract_strided_slice %346 {offsets = [0, 24], sizes = [8, 8], strides = [1, 1]} : vector<8x32xf32> to vector<8x8xf32>
    %407 = vector.extract_strided_slice %347 {offsets = [0, 24], sizes = [8, 8], strides = [1, 1]} : vector<8x32xf32> to vector<8x8xf32>
    %408 = vector.extract_strided_slice %348 {offsets = [0, 24], sizes = [8, 8], strides = [1, 1]} : vector<8x32xf32> to vector<8x8xf32>
    %cst_179 = arith.constant dense<0.000000e+00> : vector<8x8xf32>
    %409 = tpu.matmul %406, %407, %cst_179 {dimension_numbers = #tpu.dot_dimension_numbers<[1], [1], [0], [0], [0, 0, 1, 0], [], []>} : vector<8x8xf32>, vector<8x8xf32>, vector<8x8xf32> -> vector<8x8xf32>
    %cst_180 = arith.constant -1.000000e+20 : f32
    %410 = vector.broadcast %cst_180 : f32 to vector<8x8xf32>
    %411 = arith.select %336, %409, %410 : vector<8x8xi1>, vector<8x8xf32>
    %cst_181 = arith.constant 0.353553385 : f32
    %412 = vector.broadcast %cst_181 : f32 to vector<8x8xf32>
    %413 = arith.mulf %411, %412 : vector<8x8xf32>
    %cst_182 = arith.constant dense<0xFF800000> : vector<8xf32>
    %414 = vector.multi_reduction <maximumf>, %413, %cst_182 [1] : vector<8x8xf32> to vector<8xf32>
    %415 = vector.shape_cast %414 : vector<8xf32> to vector<8x1xf32>
    %416 = vector.broadcast %415 : vector<8x1xf32> to vector<8x8xf32>
    %417 = arith.subf %413, %416 : vector<8x8xf32>
    %418 = math.exp %417 : vector<8x8xf32>
    %cst_183 = arith.constant dense<0.000000e+00> : vector<8xf32>
    %419 = vector.multi_reduction <add>, %418, %cst_183 [1] : vector<8x8xf32> to vector<8xf32>
    %420 = vector.shape_cast %419 : vector<8xf32> to vector<8x1xf32>
    %421 = tpu.reciprocal %420 {approx = true} : vector<8x1xf32> -> vector<8x1xf32>
    %422 = vector.broadcast %421 : vector<8x1xf32> to vector<8x8xf32>
    %423 = arith.mulf %418, %422 : vector<8x8xf32>
    %cst_184 = arith.constant dense<0.000000e+00> : vector<8x8xf32>
    %424 = tpu.matmul %423, %408, %cst_184 {dimension_numbers = #tpu.dot_dimension_numbers<[1], [0], [0], [1], [0, 0, 1, 1], [], []>} : vector<8x8xf32>, vector<8x8xf32>, vector<8x8xf32> -> vector<8x8xf32>
    %425 = tpu.concatenate %367, %386, %405, %424 in 1 : vector<8x8xf32>, vector<8x8xf32>, vector<8x8xf32>, vector<8x8xf32> -> vector<8x32xf32>
    %cst_185 = arith.constant dense<0.000000e+00> : vector<8x32xf32>
    %426 = tpu.matmul %425, %342, %cst_185 {dimension_numbers = #tpu.dot_dimension_numbers<[1], [0], [0], [1], [0, 0, 1, 1], [], []>} : vector<8x32xf32>, vector<32x32xf32>, vector<8x32xf32> -> vector<8x32xf32>
    %427 = vector.broadcast %344 : vector<1x32xf32> to vector<8x32xf32>
    %428 = arith.addf %426, %427 : vector<8x32xf32>
    %429 = arith.addf %428, %338 : vector<8x32xf32>
    %c0_186 = arith.constant 0 : index
    %c0_187 = arith.constant 0 : index
    %c0_188 = arith.constant 0 : index
    %430 = vector.load %arg18[%c0_186, %c0_187, %c0_188] : memref<2x1x32xf32, #tpu.memory_space<vmem>>, vector<1x1x32xf32>
    %431 = vector.shape_cast %430 : vector<1x1x32xf32> to vector<1x32xf32>
    %c0_189 = arith.constant 0 : index
    %c0_190 = arith.constant 0 : index
    %c0_191 = arith.constant 0 : index
    %432 = vector.load %arg19[%c0_189, %c0_190, %c0_191] : memref<2x1x32xf32, #tpu.memory_space<vmem>>, vector<1x1x32xf32>
    %433 = vector.shape_cast %432 : vector<1x1x32xf32> to vector<1x32xf32>
    %cst_192 = arith.constant dense<0.000000e+00> : vector<8xf32>
    %434 = vector.multi_reduction <add>, %429, %cst_192 [1] : vector<8x32xf32> to vector<8xf32>
    %435 = vector.shape_cast %434 : vector<8xf32> to vector<8x1xf32>
    %cst_193 = arith.constant 3.200000e+01 : f32
    %436 = vector.broadcast %cst_193 : f32 to vector<8x1xf32>
    %437 = arith.divf %435, %436 : vector<8x1xf32>
    %438 = vector.broadcast %437 : vector<8x1xf32> to vector<8x32xf32>
    %439 = arith.subf %429, %438 : vector<8x32xf32>
    %440 = arith.mulf %439, %439 : vector<8x32xf32>
    %cst_194 = arith.constant dense<0.000000e+00> : vector<8xf32>
    %441 = vector.multi_reduction <add>, %440, %cst_194 [1] : vector<8x32xf32> to vector<8xf32>
    %442 = vector.shape_cast %441 : vector<8xf32> to vector<8x1xf32>
    %cst_195 = arith.constant 3.200000e+01 : f32
    %443 = vector.broadcast %cst_195 : f32 to vector<8x1xf32>
    %444 = arith.divf %442, %443 : vector<8x1xf32>
    %cst_196 = arith.constant 9.99999974E-6 : f32
    %445 = vector.broadcast %cst_196 : f32 to vector<8x1xf32>
    %446 = arith.addf %444, %445 : vector<8x1xf32>
    %447 = math.rsqrt %446 : vector<8x1xf32>
    %448 = vector.broadcast %447 : vector<8x1xf32> to vector<8x32xf32>
    %449 = arith.mulf %439, %448 : vector<8x32xf32>
    %450 = vector.broadcast %431 : vector<1x32xf32> to vector<8x32xf32>
    %451 = arith.mulf %449, %450 : vector<8x32xf32>
    %452 = vector.broadcast %433 : vector<1x32xf32> to vector<8x32xf32>
    %453 = arith.addf %451, %452 : vector<8x32xf32>
    %c0_197 = arith.constant 0 : index
    %c0_198 = arith.constant 0 : index
    %c0_199 = arith.constant 0 : index
    %454 = vector.load %arg20[%c0_197, %c0_198, %c0_199] : memref<2x32x96xf32, #tpu.memory_space<vmem>>, vector<1x32x96xf32>
    %455 = vector.shape_cast %454 : vector<1x32x96xf32> to vector<32x96xf32>
    %c0_200 = arith.constant 0 : index
    %c0_201 = arith.constant 0 : index
    %c0_202 = arith.constant 0 : index
    %456 = vector.load %arg21[%c0_200, %c0_201, %c0_202] : memref<2x32x32xf32, #tpu.memory_space<vmem>>, vector<1x32x32xf32>
    %457 = vector.shape_cast %456 : vector<1x32x32xf32> to vector<32x32xf32>
    %c0_203 = arith.constant 0 : index
    %c0_204 = arith.constant 0 : index
    %c0_205 = arith.constant 0 : index
    %458 = vector.load %arg22[%c0_203, %c0_204, %c0_205] : memref<2x1x32xf32, #tpu.memory_space<vmem>>, vector<1x1x32xf32>
    %459 = vector.shape_cast %458 : vector<1x1x32xf32> to vector<1x32xf32>
    %c0_206 = arith.constant 0 : index
    %c0_207 = arith.constant 0 : index
    %c0_208 = arith.constant 0 : index
    %460 = vector.load %arg23[%c0_206, %c0_207, %c0_208] : memref<2x1x32xf32, #tpu.memory_space<vmem>>, vector<1x1x32xf32>
    %461 = vector.shape_cast %460 : vector<1x1x32xf32> to vector<1x32xf32>
    %c0_209 = arith.constant 0 : index
    %c0_210 = arith.constant 0 : index
    %c0_211 = arith.constant 0 : index
    %462 = vector.load %arg24[%c0_209, %c0_210, %c0_211] : memref<2x1x32xf32, #tpu.memory_space<vmem>>, vector<1x1x32xf32>
    %463 = vector.shape_cast %462 : vector<1x1x32xf32> to vector<1x32xf32>
    %c0_212 = arith.constant 0 : index
    %c0_213 = arith.constant 0 : index
    %c0_214 = arith.constant 0 : index
    %464 = vector.load %arg25[%c0_212, %c0_213, %c0_214] : memref<2x1x32xf32, #tpu.memory_space<vmem>>, vector<1x1x32xf32>
    %465 = vector.shape_cast %464 : vector<1x1x32xf32> to vector<1x32xf32>
    %c0_215 = arith.constant 0 : index
    %c0_216 = arith.constant 0 : index
    %c0_217 = arith.constant 0 : index
    %466 = vector.load %arg26[%c0_215, %c0_216, %c0_217] : memref<2x1x32xf32, #tpu.memory_space<vmem>>, vector<1x1x32xf32>
    %467 = vector.shape_cast %466 : vector<1x1x32xf32> to vector<1x32xf32>
    %c0_218 = arith.constant 0 : index
    %c0_219 = arith.constant 0 : index
    %c0_220 = arith.constant 0 : index
    %468 = vector.load %arg27[%c0_218, %c0_219, %c0_220] : memref<2x32x128xf32, #tpu.memory_space<vmem>>, vector<1x32x128xf32>
    %469 = vector.shape_cast %468 : vector<1x32x128xf32> to vector<32x128xf32>
    %c0_221 = arith.constant 0 : index
    %c0_222 = arith.constant 0 : index
    %c0_223 = arith.constant 0 : index
    %470 = vector.load %arg28[%c0_221, %c0_222, %c0_223] : memref<2x1x128xf32, #tpu.memory_space<vmem>>, vector<1x1x128xf32>
    %471 = vector.shape_cast %470 : vector<1x1x128xf32> to vector<1x128xf32>
    %c0_224 = arith.constant 0 : index
    %c0_225 = arith.constant 0 : index
    %c0_226 = arith.constant 0 : index
    %472 = vector.load %arg29[%c0_224, %c0_225, %c0_226] : memref<2x128x32xf32, #tpu.memory_space<vmem>>, vector<1x128x32xf32>
    %473 = vector.shape_cast %472 : vector<1x128x32xf32> to vector<128x32xf32>
    %c0_227 = arith.constant 0 : index
    %c0_228 = arith.constant 0 : index
    %c0_229 = arith.constant 0 : index
    %474 = vector.load %arg30[%c0_227, %c0_228, %c0_229] : memref<2x1x32xf32, #tpu.memory_space<vmem>>, vector<1x1x32xf32>
    %475 = vector.shape_cast %474 : vector<1x1x32xf32> to vector<1x32xf32>
    %476 = vector.extract_strided_slice %455 {offsets = [0, 0], sizes = [32, 32], strides = [1, 1]} : vector<32x96xf32> to vector<32x32xf32>
    %cst_230 = arith.constant dense<0.000000e+00> : vector<8x32xf32>
    %477 = tpu.matmul %453, %476, %cst_230 {dimension_numbers = #tpu.dot_dimension_numbers<[1], [0], [0], [1], [0, 0, 1, 1], [], []>} : vector<8x32xf32>, vector<32x32xf32>, vector<8x32xf32> -> vector<8x32xf32>
    %478 = vector.extract_strided_slice %455 {offsets = [0, 32], sizes = [32, 64], strides = [1, 1]} : vector<32x96xf32> to vector<32x64xf32>
    %cst_231 = arith.constant dense<0.000000e+00> : vector<8x64xf32>
    %479 = tpu.matmul %333, %478, %cst_231 {dimension_numbers = #tpu.dot_dimension_numbers<[1], [0], [0], [1], [0, 0, 1, 1], [], []>} : vector<8x32xf32>, vector<32x64xf32>, vector<8x64xf32> -> vector<8x64xf32>
    %480 = vector.extract_strided_slice %479 {offsets = [0, 0], sizes = [8, 32], strides = [1, 1]} : vector<8x64xf32> to vector<8x32xf32>
    %481 = vector.extract_strided_slice %479 {offsets = [0, 32], sizes = [8, 32], strides = [1, 1]} : vector<8x64xf32> to vector<8x32xf32>
    %482 = vector.extract_strided_slice %477 {offsets = [0, 0], sizes = [8, 8], strides = [1, 1]} : vector<8x32xf32> to vector<8x8xf32>
    %483 = vector.extract_strided_slice %480 {offsets = [0, 0], sizes = [8, 8], strides = [1, 1]} : vector<8x32xf32> to vector<8x8xf32>
    %484 = vector.extract_strided_slice %481 {offsets = [0, 0], sizes = [8, 8], strides = [1, 1]} : vector<8x32xf32> to vector<8x8xf32>
    %cst_232 = arith.constant dense<0.000000e+00> : vector<8x8xf32>
    %485 = tpu.matmul %482, %483, %cst_232 {dimension_numbers = #tpu.dot_dimension_numbers<[1], [1], [0], [0], [0, 0, 1, 0], [], []>} : vector<8x8xf32>, vector<8x8xf32>, vector<8x8xf32> -> vector<8x8xf32>
    %cst_233 = arith.constant -1.000000e+20 : f32
    %486 = vector.shape_cast %3 : vector<1x8xi1> to vector<1x8xi1>
    %487 = vector.broadcast %486 : vector<1x8xi1> to vector<8x8xi1>
    %488 = vector.broadcast %cst_233 : f32 to vector<8x8xf32>
    %489 = arith.select %487, %485, %488 : vector<8x8xi1>, vector<8x8xf32>
    %cst_234 = arith.constant 0.353553385 : f32
    %490 = vector.broadcast %cst_234 : f32 to vector<8x8xf32>
    %491 = arith.mulf %489, %490 : vector<8x8xf32>
    %cst_235 = arith.constant dense<0xFF800000> : vector<8xf32>
    %492 = vector.multi_reduction <maximumf>, %491, %cst_235 [1] : vector<8x8xf32> to vector<8xf32>
    %493 = vector.shape_cast %492 : vector<8xf32> to vector<8x1xf32>
    %494 = vector.broadcast %493 : vector<8x1xf32> to vector<8x8xf32>
    %495 = arith.subf %491, %494 : vector<8x8xf32>
    %496 = math.exp %495 : vector<8x8xf32>
    %cst_236 = arith.constant dense<0.000000e+00> : vector<8xf32>
    %497 = vector.multi_reduction <add>, %496, %cst_236 [1] : vector<8x8xf32> to vector<8xf32>
    %498 = vector.shape_cast %497 : vector<8xf32> to vector<8x1xf32>
    %499 = tpu.reciprocal %498 {approx = true} : vector<8x1xf32> -> vector<8x1xf32>
    %500 = vector.broadcast %499 : vector<8x1xf32> to vector<8x8xf32>
    %501 = arith.mulf %496, %500 : vector<8x8xf32>
    %cst_237 = arith.constant dense<0.000000e+00> : vector<8x8xf32>
    %502 = tpu.matmul %501, %484, %cst_237 {dimension_numbers = #tpu.dot_dimension_numbers<[1], [0], [0], [1], [0, 0, 1, 1], [], []>} : vector<8x8xf32>, vector<8x8xf32>, vector<8x8xf32> -> vector<8x8xf32>
    %503 = vector.extract_strided_slice %477 {offsets = [0, 8], sizes = [8, 8], strides = [1, 1]} : vector<8x32xf32> to vector<8x8xf32>
    %504 = vector.extract_strided_slice %480 {offsets = [0, 8], sizes = [8, 8], strides = [1, 1]} : vector<8x32xf32> to vector<8x8xf32>
    %505 = vector.extract_strided_slice %481 {offsets = [0, 8], sizes = [8, 8], strides = [1, 1]} : vector<8x32xf32> to vector<8x8xf32>
    %cst_238 = arith.constant dense<0.000000e+00> : vector<8x8xf32>
    %506 = tpu.matmul %503, %504, %cst_238 {dimension_numbers = #tpu.dot_dimension_numbers<[1], [1], [0], [0], [0, 0, 1, 0], [], []>} : vector<8x8xf32>, vector<8x8xf32>, vector<8x8xf32> -> vector<8x8xf32>
    %cst_239 = arith.constant -1.000000e+20 : f32
    %507 = vector.shape_cast %3 : vector<1x8xi1> to vector<1x8xi1>
    %508 = vector.broadcast %507 : vector<1x8xi1> to vector<8x8xi1>
    %509 = vector.broadcast %cst_239 : f32 to vector<8x8xf32>
    %510 = arith.select %508, %506, %509 : vector<8x8xi1>, vector<8x8xf32>
    %cst_240 = arith.constant 0.353553385 : f32
    %511 = vector.broadcast %cst_240 : f32 to vector<8x8xf32>
    %512 = arith.mulf %510, %511 : vector<8x8xf32>
    %cst_241 = arith.constant dense<0xFF800000> : vector<8xf32>
    %513 = vector.multi_reduction <maximumf>, %512, %cst_241 [1] : vector<8x8xf32> to vector<8xf32>
    %514 = vector.shape_cast %513 : vector<8xf32> to vector<8x1xf32>
    %515 = vector.broadcast %514 : vector<8x1xf32> to vector<8x8xf32>
    %516 = arith.subf %512, %515 : vector<8x8xf32>
    %517 = math.exp %516 : vector<8x8xf32>
    %cst_242 = arith.constant dense<0.000000e+00> : vector<8xf32>
    %518 = vector.multi_reduction <add>, %517, %cst_242 [1] : vector<8x8xf32> to vector<8xf32>
    %519 = vector.shape_cast %518 : vector<8xf32> to vector<8x1xf32>
    %520 = tpu.reciprocal %519 {approx = true} : vector<8x1xf32> -> vector<8x1xf32>
    %521 = vector.broadcast %520 : vector<8x1xf32> to vector<8x8xf32>
    %522 = arith.mulf %517, %521 : vector<8x8xf32>
    %cst_243 = arith.constant dense<0.000000e+00> : vector<8x8xf32>
    %523 = tpu.matmul %522, %505, %cst_243 {dimension_numbers = #tpu.dot_dimension_numbers<[1], [0], [0], [1], [0, 0, 1, 1], [], []>} : vector<8x8xf32>, vector<8x8xf32>, vector<8x8xf32> -> vector<8x8xf32>
    %524 = vector.extract_strided_slice %477 {offsets = [0, 16], sizes = [8, 8], strides = [1, 1]} : vector<8x32xf32> to vector<8x8xf32>
    %525 = vector.extract_strided_slice %480 {offsets = [0, 16], sizes = [8, 8], strides = [1, 1]} : vector<8x32xf32> to vector<8x8xf32>
    %526 = vector.extract_strided_slice %481 {offsets = [0, 16], sizes = [8, 8], strides = [1, 1]} : vector<8x32xf32> to vector<8x8xf32>
    %cst_244 = arith.constant dense<0.000000e+00> : vector<8x8xf32>
    %527 = tpu.matmul %524, %525, %cst_244 {dimension_numbers = #tpu.dot_dimension_numbers<[1], [1], [0], [0], [0, 0, 1, 0], [], []>} : vector<8x8xf32>, vector<8x8xf32>, vector<8x8xf32> -> vector<8x8xf32>
    %cst_245 = arith.constant -1.000000e+20 : f32
    %528 = vector.shape_cast %3 : vector<1x8xi1> to vector<1x8xi1>
    %529 = vector.broadcast %528 : vector<1x8xi1> to vector<8x8xi1>
    %530 = vector.broadcast %cst_245 : f32 to vector<8x8xf32>
    %531 = arith.select %529, %527, %530 : vector<8x8xi1>, vector<8x8xf32>
    %cst_246 = arith.constant 0.353553385 : f32
    %532 = vector.broadcast %cst_246 : f32 to vector<8x8xf32>
    %533 = arith.mulf %531, %532 : vector<8x8xf32>
    %cst_247 = arith.constant dense<0xFF800000> : vector<8xf32>
    %534 = vector.multi_reduction <maximumf>, %533, %cst_247 [1] : vector<8x8xf32> to vector<8xf32>
    %535 = vector.shape_cast %534 : vector<8xf32> to vector<8x1xf32>
    %536 = vector.broadcast %535 : vector<8x1xf32> to vector<8x8xf32>
    %537 = arith.subf %533, %536 : vector<8x8xf32>
    %538 = math.exp %537 : vector<8x8xf32>
    %cst_248 = arith.constant dense<0.000000e+00> : vector<8xf32>
    %539 = vector.multi_reduction <add>, %538, %cst_248 [1] : vector<8x8xf32> to vector<8xf32>
    %540 = vector.shape_cast %539 : vector<8xf32> to vector<8x1xf32>
    %541 = tpu.reciprocal %540 {approx = true} : vector<8x1xf32> -> vector<8x1xf32>
    %542 = vector.broadcast %541 : vector<8x1xf32> to vector<8x8xf32>
    %543 = arith.mulf %538, %542 : vector<8x8xf32>
    %cst_249 = arith.constant dense<0.000000e+00> : vector<8x8xf32>
    %544 = tpu.matmul %543, %526, %cst_249 {dimension_numbers = #tpu.dot_dimension_numbers<[1], [0], [0], [1], [0, 0, 1, 1], [], []>} : vector<8x8xf32>, vector<8x8xf32>, vector<8x8xf32> -> vector<8x8xf32>
    %545 = vector.extract_strided_slice %477 {offsets = [0, 24], sizes = [8, 8], strides = [1, 1]} : vector<8x32xf32> to vector<8x8xf32>
    %546 = vector.extract_strided_slice %480 {offsets = [0, 24], sizes = [8, 8], strides = [1, 1]} : vector<8x32xf32> to vector<8x8xf32>
    %547 = vector.extract_strided_slice %481 {offsets = [0, 24], sizes = [8, 8], strides = [1, 1]} : vector<8x32xf32> to vector<8x8xf32>
    %cst_250 = arith.constant dense<0.000000e+00> : vector<8x8xf32>
    %548 = tpu.matmul %545, %546, %cst_250 {dimension_numbers = #tpu.dot_dimension_numbers<[1], [1], [0], [0], [0, 0, 1, 0], [], []>} : vector<8x8xf32>, vector<8x8xf32>, vector<8x8xf32> -> vector<8x8xf32>
    %cst_251 = arith.constant -1.000000e+20 : f32
    %549 = vector.shape_cast %3 : vector<1x8xi1> to vector<1x8xi1>
    %550 = vector.broadcast %549 : vector<1x8xi1> to vector<8x8xi1>
    %551 = vector.broadcast %cst_251 : f32 to vector<8x8xf32>
    %552 = arith.select %550, %548, %551 : vector<8x8xi1>, vector<8x8xf32>
    %cst_252 = arith.constant 0.353553385 : f32
    %553 = vector.broadcast %cst_252 : f32 to vector<8x8xf32>
    %554 = arith.mulf %552, %553 : vector<8x8xf32>
    %cst_253 = arith.constant dense<0xFF800000> : vector<8xf32>
    %555 = vector.multi_reduction <maximumf>, %554, %cst_253 [1] : vector<8x8xf32> to vector<8xf32>
    %556 = vector.shape_cast %555 : vector<8xf32> to vector<8x1xf32>
    %557 = vector.broadcast %556 : vector<8x1xf32> to vector<8x8xf32>
    %558 = arith.subf %554, %557 : vector<8x8xf32>
    %559 = math.exp %558 : vector<8x8xf32>
    %cst_254 = arith.constant dense<0.000000e+00> : vector<8xf32>
    %560 = vector.multi_reduction <add>, %559, %cst_254 [1] : vector<8x8xf32> to vector<8xf32>
    %561 = vector.shape_cast %560 : vector<8xf32> to vector<8x1xf32>
    %562 = tpu.reciprocal %561 {approx = true} : vector<8x1xf32> -> vector<8x1xf32>
    %563 = vector.broadcast %562 : vector<8x1xf32> to vector<8x8xf32>
    %564 = arith.mulf %559, %563 : vector<8x8xf32>
    %cst_255 = arith.constant dense<0.000000e+00> : vector<8x8xf32>
    %565 = tpu.matmul %564, %547, %cst_255 {dimension_numbers = #tpu.dot_dimension_numbers<[1], [0], [0], [1], [0, 0, 1, 1], [], []>} : vector<8x8xf32>, vector<8x8xf32>, vector<8x8xf32> -> vector<8x8xf32>
    %566 = tpu.concatenate %502, %523, %544, %565 in 1 : vector<8x8xf32>, vector<8x8xf32>, vector<8x8xf32>, vector<8x8xf32> -> vector<8x32xf32>
    %cst_256 = arith.constant dense<0.000000e+00> : vector<8x32xf32>
    %567 = tpu.matmul %566, %457, %cst_256 {dimension_numbers = #tpu.dot_dimension_numbers<[1], [0], [0], [1], [0, 0, 1, 1], [], []>} : vector<8x32xf32>, vector<32x32xf32>, vector<8x32xf32> -> vector<8x32xf32>
    %568 = vector.broadcast %459 : vector<1x32xf32> to vector<8x32xf32>
    %569 = arith.addf %567, %568 : vector<8x32xf32>
    %570 = arith.addf %569, %453 : vector<8x32xf32>
    %cst_257 = arith.constant dense<0.000000e+00> : vector<8xf32>
    %571 = vector.multi_reduction <add>, %570, %cst_257 [1] : vector<8x32xf32> to vector<8xf32>
    %572 = vector.shape_cast %571 : vector<8xf32> to vector<8x1xf32>
    %cst_258 = arith.constant 3.200000e+01 : f32
    %573 = vector.broadcast %cst_258 : f32 to vector<8x1xf32>
    %574 = arith.divf %572, %573 : vector<8x1xf32>
    %575 = vector.broadcast %574 : vector<8x1xf32> to vector<8x32xf32>
    %576 = arith.subf %570, %575 : vector<8x32xf32>
    %577 = arith.mulf %576, %576 : vector<8x32xf32>
    %cst_259 = arith.constant dense<0.000000e+00> : vector<8xf32>
    %578 = vector.multi_reduction <add>, %577, %cst_259 [1] : vector<8x32xf32> to vector<8xf32>
    %579 = vector.shape_cast %578 : vector<8xf32> to vector<8x1xf32>
    %cst_260 = arith.constant 3.200000e+01 : f32
    %580 = vector.broadcast %cst_260 : f32 to vector<8x1xf32>
    %581 = arith.divf %579, %580 : vector<8x1xf32>
    %cst_261 = arith.constant 9.99999974E-6 : f32
    %582 = vector.broadcast %cst_261 : f32 to vector<8x1xf32>
    %583 = arith.addf %581, %582 : vector<8x1xf32>
    %584 = math.rsqrt %583 : vector<8x1xf32>
    %585 = vector.broadcast %584 : vector<8x1xf32> to vector<8x32xf32>
    %586 = arith.mulf %576, %585 : vector<8x32xf32>
    %587 = vector.broadcast %461 : vector<1x32xf32> to vector<8x32xf32>
    %588 = arith.mulf %586, %587 : vector<8x32xf32>
    %589 = vector.broadcast %463 : vector<1x32xf32> to vector<8x32xf32>
    %590 = arith.addf %588, %589 : vector<8x32xf32>
    %cst_262 = arith.constant dense<0.000000e+00> : vector<8x128xf32>
    %591 = tpu.matmul %590, %469, %cst_262 {dimension_numbers = #tpu.dot_dimension_numbers<[1], [0], [0], [1], [0, 0, 1, 1], [], []>} : vector<8x32xf32>, vector<32x128xf32>, vector<8x128xf32> -> vector<8x128xf32>
    %592 = vector.broadcast %471 : vector<1x128xf32> to vector<8x128xf32>
    %593 = arith.addf %591, %592 : vector<8x128xf32>
    %cst_263 = arith.constant 0.000000e+00 : f32
    %594 = vector.broadcast %cst_263 : f32 to vector<8x128xf32>
    %595 = arith.maximumf %593, %594 : vector<8x128xf32>
    %cst_264 = arith.constant dense<0.000000e+00> : vector<8x32xf32>
    %596 = tpu.matmul %595, %473, %cst_264 {dimension_numbers = #tpu.dot_dimension_numbers<[1], [0], [0], [1], [0, 0, 1, 1], [], []>} : vector<8x128xf32>, vector<128x32xf32>, vector<8x32xf32> -> vector<8x32xf32>
    %597 = vector.broadcast %475 : vector<1x32xf32> to vector<8x32xf32>
    %598 = arith.addf %596, %597 : vector<8x32xf32>
    %599 = arith.addf %598, %590 : vector<8x32xf32>
    %cst_265 = arith.constant dense<0.000000e+00> : vector<8xf32>
    %600 = vector.multi_reduction <add>, %599, %cst_265 [1] : vector<8x32xf32> to vector<8xf32>
    %601 = vector.shape_cast %600 : vector<8xf32> to vector<8x1xf32>
    %cst_266 = arith.constant 3.200000e+01 : f32
    %602 = vector.broadcast %cst_266 : f32 to vector<8x1xf32>
    %603 = arith.divf %601, %602 : vector<8x1xf32>
    %604 = vector.broadcast %603 : vector<8x1xf32> to vector<8x32xf32>
    %605 = arith.subf %599, %604 : vector<8x32xf32>
    %606 = arith.mulf %605, %605 : vector<8x32xf32>
    %cst_267 = arith.constant dense<0.000000e+00> : vector<8xf32>
    %607 = vector.multi_reduction <add>, %606, %cst_267 [1] : vector<8x32xf32> to vector<8xf32>
    %608 = vector.shape_cast %607 : vector<8xf32> to vector<8x1xf32>
    %cst_268 = arith.constant 3.200000e+01 : f32
    %609 = vector.broadcast %cst_268 : f32 to vector<8x1xf32>
    %610 = arith.divf %608, %609 : vector<8x1xf32>
    %cst_269 = arith.constant 9.99999974E-6 : f32
    %611 = vector.broadcast %cst_269 : f32 to vector<8x1xf32>
    %612 = arith.addf %610, %611 : vector<8x1xf32>
    %613 = math.rsqrt %612 : vector<8x1xf32>
    %614 = vector.broadcast %613 : vector<8x1xf32> to vector<8x32xf32>
    %615 = arith.mulf %605, %614 : vector<8x32xf32>
    %616 = vector.broadcast %465 : vector<1x32xf32> to vector<8x32xf32>
    %617 = arith.mulf %615, %616 : vector<8x32xf32>
    %618 = vector.broadcast %467 : vector<1x32xf32> to vector<8x32xf32>
    %619 = arith.addf %617, %618 : vector<8x32xf32>
    %c1_270 = arith.constant 1 : index
    %c0_271 = arith.constant 0 : index
    %c0_272 = arith.constant 0 : index
    %620 = vector.load %arg15[%c1_270, %c0_271, %c0_272] : memref<2x32x96xf32, #tpu.memory_space<vmem>>, vector<1x32x96xf32>
    %621 = vector.shape_cast %620 : vector<1x32x96xf32> to vector<32x96xf32>
    %c1_273 = arith.constant 1 : index
    %c0_274 = arith.constant 0 : index
    %c0_275 = arith.constant 0 : index
    %622 = vector.load %arg16[%c1_273, %c0_274, %c0_275] : memref<2x32x32xf32, #tpu.memory_space<vmem>>, vector<1x32x32xf32>
    %623 = vector.shape_cast %622 : vector<1x32x32xf32> to vector<32x32xf32>
    %c1_276 = arith.constant 1 : index
    %c0_277 = arith.constant 0 : index
    %c0_278 = arith.constant 0 : index
    %624 = vector.load %arg17[%c1_276, %c0_277, %c0_278] : memref<2x1x32xf32, #tpu.memory_space<vmem>>, vector<1x1x32xf32>
    %625 = vector.shape_cast %624 : vector<1x1x32xf32> to vector<1x32xf32>
    %cst_279 = arith.constant dense<0.000000e+00> : vector<8x96xf32>
    %626 = tpu.matmul %619, %621, %cst_279 {dimension_numbers = #tpu.dot_dimension_numbers<[1], [0], [0], [1], [0, 0, 1, 1], [], []>} : vector<8x32xf32>, vector<32x96xf32>, vector<8x96xf32> -> vector<8x96xf32>
    %627 = vector.extract_strided_slice %626 {offsets = [0, 0], sizes = [8, 32], strides = [1, 1]} : vector<8x96xf32> to vector<8x32xf32>
    %628 = vector.extract_strided_slice %626 {offsets = [0, 32], sizes = [8, 32], strides = [1, 1]} : vector<8x96xf32> to vector<8x32xf32>
    %629 = vector.extract_strided_slice %626 {offsets = [0, 64], sizes = [8, 32], strides = [1, 1]} : vector<8x96xf32> to vector<8x32xf32>
    %630 = vector.extract_strided_slice %627 {offsets = [0, 0], sizes = [8, 8], strides = [1, 1]} : vector<8x32xf32> to vector<8x8xf32>
    %631 = vector.extract_strided_slice %628 {offsets = [0, 0], sizes = [8, 8], strides = [1, 1]} : vector<8x32xf32> to vector<8x8xf32>
    %632 = vector.extract_strided_slice %629 {offsets = [0, 0], sizes = [8, 8], strides = [1, 1]} : vector<8x32xf32> to vector<8x8xf32>
    %cst_280 = arith.constant dense<0.000000e+00> : vector<8x8xf32>
    %633 = tpu.matmul %630, %631, %cst_280 {dimension_numbers = #tpu.dot_dimension_numbers<[1], [1], [0], [0], [0, 0, 1, 0], [], []>} : vector<8x8xf32>, vector<8x8xf32>, vector<8x8xf32> -> vector<8x8xf32>
    %cst_281 = arith.constant -1.000000e+20 : f32
    %634 = vector.broadcast %cst_281 : f32 to vector<8x8xf32>
    %635 = arith.select %336, %633, %634 : vector<8x8xi1>, vector<8x8xf32>
    %cst_282 = arith.constant 0.353553385 : f32
    %636 = vector.broadcast %cst_282 : f32 to vector<8x8xf32>
    %637 = arith.mulf %635, %636 : vector<8x8xf32>
    %cst_283 = arith.constant dense<0xFF800000> : vector<8xf32>
    %638 = vector.multi_reduction <maximumf>, %637, %cst_283 [1] : vector<8x8xf32> to vector<8xf32>
    %639 = vector.shape_cast %638 : vector<8xf32> to vector<8x1xf32>
    %640 = vector.broadcast %639 : vector<8x1xf32> to vector<8x8xf32>
    %641 = arith.subf %637, %640 : vector<8x8xf32>
    %642 = math.exp %641 : vector<8x8xf32>
    %cst_284 = arith.constant dense<0.000000e+00> : vector<8xf32>
    %643 = vector.multi_reduction <add>, %642, %cst_284 [1] : vector<8x8xf32> to vector<8xf32>
    %644 = vector.shape_cast %643 : vector<8xf32> to vector<8x1xf32>
    %645 = tpu.reciprocal %644 {approx = true} : vector<8x1xf32> -> vector<8x1xf32>
    %646 = vector.broadcast %645 : vector<8x1xf32> to vector<8x8xf32>
    %647 = arith.mulf %642, %646 : vector<8x8xf32>
    %cst_285 = arith.constant dense<0.000000e+00> : vector<8x8xf32>
    %648 = tpu.matmul %647, %632, %cst_285 {dimension_numbers = #tpu.dot_dimension_numbers<[1], [0], [0], [1], [0, 0, 1, 1], [], []>} : vector<8x8xf32>, vector<8x8xf32>, vector<8x8xf32> -> vector<8x8xf32>
    %649 = vector.extract_strided_slice %627 {offsets = [0, 8], sizes = [8, 8], strides = [1, 1]} : vector<8x32xf32> to vector<8x8xf32>
    %650 = vector.extract_strided_slice %628 {offsets = [0, 8], sizes = [8, 8], strides = [1, 1]} : vector<8x32xf32> to vector<8x8xf32>
    %651 = vector.extract_strided_slice %629 {offsets = [0, 8], sizes = [8, 8], strides = [1, 1]} : vector<8x32xf32> to vector<8x8xf32>
    %cst_286 = arith.constant dense<0.000000e+00> : vector<8x8xf32>
    %652 = tpu.matmul %649, %650, %cst_286 {dimension_numbers = #tpu.dot_dimension_numbers<[1], [1], [0], [0], [0, 0, 1, 0], [], []>} : vector<8x8xf32>, vector<8x8xf32>, vector<8x8xf32> -> vector<8x8xf32>
    %cst_287 = arith.constant -1.000000e+20 : f32
    %653 = vector.broadcast %cst_287 : f32 to vector<8x8xf32>
    %654 = arith.select %336, %652, %653 : vector<8x8xi1>, vector<8x8xf32>
    %cst_288 = arith.constant 0.353553385 : f32
    %655 = vector.broadcast %cst_288 : f32 to vector<8x8xf32>
    %656 = arith.mulf %654, %655 : vector<8x8xf32>
    %cst_289 = arith.constant dense<0xFF800000> : vector<8xf32>
    %657 = vector.multi_reduction <maximumf>, %656, %cst_289 [1] : vector<8x8xf32> to vector<8xf32>
    %658 = vector.shape_cast %657 : vector<8xf32> to vector<8x1xf32>
    %659 = vector.broadcast %658 : vector<8x1xf32> to vector<8x8xf32>
    %660 = arith.subf %656, %659 : vector<8x8xf32>
    %661 = math.exp %660 : vector<8x8xf32>
    %cst_290 = arith.constant dense<0.000000e+00> : vector<8xf32>
    %662 = vector.multi_reduction <add>, %661, %cst_290 [1] : vector<8x8xf32> to vector<8xf32>
    %663 = vector.shape_cast %662 : vector<8xf32> to vector<8x1xf32>
    %664 = tpu.reciprocal %663 {approx = true} : vector<8x1xf32> -> vector<8x1xf32>
    %665 = vector.broadcast %664 : vector<8x1xf32> to vector<8x8xf32>
    %666 = arith.mulf %661, %665 : vector<8x8xf32>
    %cst_291 = arith.constant dense<0.000000e+00> : vector<8x8xf32>
    %667 = tpu.matmul %666, %651, %cst_291 {dimension_numbers = #tpu.dot_dimension_numbers<[1], [0], [0], [1], [0, 0, 1, 1], [], []>} : vector<8x8xf32>, vector<8x8xf32>, vector<8x8xf32> -> vector<8x8xf32>
    %668 = vector.extract_strided_slice %627 {offsets = [0, 16], sizes = [8, 8], strides = [1, 1]} : vector<8x32xf32> to vector<8x8xf32>
    %669 = vector.extract_strided_slice %628 {offsets = [0, 16], sizes = [8, 8], strides = [1, 1]} : vector<8x32xf32> to vector<8x8xf32>
    %670 = vector.extract_strided_slice %629 {offsets = [0, 16], sizes = [8, 8], strides = [1, 1]} : vector<8x32xf32> to vector<8x8xf32>
    %cst_292 = arith.constant dense<0.000000e+00> : vector<8x8xf32>
    %671 = tpu.matmul %668, %669, %cst_292 {dimension_numbers = #tpu.dot_dimension_numbers<[1], [1], [0], [0], [0, 0, 1, 0], [], []>} : vector<8x8xf32>, vector<8x8xf32>, vector<8x8xf32> -> vector<8x8xf32>
    %cst_293 = arith.constant -1.000000e+20 : f32
    %672 = vector.broadcast %cst_293 : f32 to vector<8x8xf32>
    %673 = arith.select %336, %671, %672 : vector<8x8xi1>, vector<8x8xf32>
    %cst_294 = arith.constant 0.353553385 : f32
    %674 = vector.broadcast %cst_294 : f32 to vector<8x8xf32>
    %675 = arith.mulf %673, %674 : vector<8x8xf32>
    %cst_295 = arith.constant dense<0xFF800000> : vector<8xf32>
    %676 = vector.multi_reduction <maximumf>, %675, %cst_295 [1] : vector<8x8xf32> to vector<8xf32>
    %677 = vector.shape_cast %676 : vector<8xf32> to vector<8x1xf32>
    %678 = vector.broadcast %677 : vector<8x1xf32> to vector<8x8xf32>
    %679 = arith.subf %675, %678 : vector<8x8xf32>
    %680 = math.exp %679 : vector<8x8xf32>
    %cst_296 = arith.constant dense<0.000000e+00> : vector<8xf32>
    %681 = vector.multi_reduction <add>, %680, %cst_296 [1] : vector<8x8xf32> to vector<8xf32>
    %682 = vector.shape_cast %681 : vector<8xf32> to vector<8x1xf32>
    %683 = tpu.reciprocal %682 {approx = true} : vector<8x1xf32> -> vector<8x1xf32>
    %684 = vector.broadcast %683 : vector<8x1xf32> to vector<8x8xf32>
    %685 = arith.mulf %680, %684 : vector<8x8xf32>
    %cst_297 = arith.constant dense<0.000000e+00> : vector<8x8xf32>
    %686 = tpu.matmul %685, %670, %cst_297 {dimension_numbers = #tpu.dot_dimension_numbers<[1], [0], [0], [1], [0, 0, 1, 1], [], []>} : vector<8x8xf32>, vector<8x8xf32>, vector<8x8xf32> -> vector<8x8xf32>
    %687 = vector.extract_strided_slice %627 {offsets = [0, 24], sizes = [8, 8], strides = [1, 1]} : vector<8x32xf32> to vector<8x8xf32>
    %688 = vector.extract_strided_slice %628 {offsets = [0, 24], sizes = [8, 8], strides = [1, 1]} : vector<8x32xf32> to vector<8x8xf32>
    %689 = vector.extract_strided_slice %629 {offsets = [0, 24], sizes = [8, 8], strides = [1, 1]} : vector<8x32xf32> to vector<8x8xf32>
    %cst_298 = arith.constant dense<0.000000e+00> : vector<8x8xf32>
    %690 = tpu.matmul %687, %688, %cst_298 {dimension_numbers = #tpu.dot_dimension_numbers<[1], [1], [0], [0], [0, 0, 1, 0], [], []>} : vector<8x8xf32>, vector<8x8xf32>, vector<8x8xf32> -> vector<8x8xf32>
    %cst_299 = arith.constant -1.000000e+20 : f32
    %691 = vector.broadcast %cst_299 : f32 to vector<8x8xf32>
    %692 = arith.select %336, %690, %691 : vector<8x8xi1>, vector<8x8xf32>
    %cst_300 = arith.constant 0.353553385 : f32
    %693 = vector.broadcast %cst_300 : f32 to vector<8x8xf32>
    %694 = arith.mulf %692, %693 : vector<8x8xf32>
    %cst_301 = arith.constant dense<0xFF800000> : vector<8xf32>
    %695 = vector.multi_reduction <maximumf>, %694, %cst_301 [1] : vector<8x8xf32> to vector<8xf32>
    %696 = vector.shape_cast %695 : vector<8xf32> to vector<8x1xf32>
    %697 = vector.broadcast %696 : vector<8x1xf32> to vector<8x8xf32>
    %698 = arith.subf %694, %697 : vector<8x8xf32>
    %699 = math.exp %698 : vector<8x8xf32>
    %cst_302 = arith.constant dense<0.000000e+00> : vector<8xf32>
    %700 = vector.multi_reduction <add>, %699, %cst_302 [1] : vector<8x8xf32> to vector<8xf32>
    %701 = vector.shape_cast %700 : vector<8xf32> to vector<8x1xf32>
    %702 = tpu.reciprocal %701 {approx = true} : vector<8x1xf32> -> vector<8x1xf32>
    %703 = vector.broadcast %702 : vector<8x1xf32> to vector<8x8xf32>
    %704 = arith.mulf %699, %703 : vector<8x8xf32>
    %cst_303 = arith.constant dense<0.000000e+00> : vector<8x8xf32>
    %705 = tpu.matmul %704, %689, %cst_303 {dimension_numbers = #tpu.dot_dimension_numbers<[1], [0], [0], [1], [0, 0, 1, 1], [], []>} : vector<8x8xf32>, vector<8x8xf32>, vector<8x8xf32> -> vector<8x8xf32>
    %706 = tpu.concatenate %648, %667, %686, %705 in 1 : vector<8x8xf32>, vector<8x8xf32>, vector<8x8xf32>, vector<8x8xf32> -> vector<8x32xf32>
    %cst_304 = arith.constant dense<0.000000e+00> : vector<8x32xf32>
    %707 = tpu.matmul %706, %623, %cst_304 {dimension_numbers = #tpu.dot_dimension_numbers<[1], [0], [0], [1], [0, 0, 1, 1], [], []>} : vector<8x32xf32>, vector<32x32xf32>, vector<8x32xf32> -> vector<8x32xf32>
    %708 = vector.broadcast %625 : vector<1x32xf32> to vector<8x32xf32>
    %709 = arith.addf %707, %708 : vector<8x32xf32>
    %710 = arith.addf %709, %619 : vector<8x32xf32>
    %c1_305 = arith.constant 1 : index
    %c0_306 = arith.constant 0 : index
    %c0_307 = arith.constant 0 : index
    %711 = vector.load %arg18[%c1_305, %c0_306, %c0_307] : memref<2x1x32xf32, #tpu.memory_space<vmem>>, vector<1x1x32xf32>
    %712 = vector.shape_cast %711 : vector<1x1x32xf32> to vector<1x32xf32>
    %c1_308 = arith.constant 1 : index
    %c0_309 = arith.constant 0 : index
    %c0_310 = arith.constant 0 : index
    %713 = vector.load %arg19[%c1_308, %c0_309, %c0_310] : memref<2x1x32xf32, #tpu.memory_space<vmem>>, vector<1x1x32xf32>
    %714 = vector.shape_cast %713 : vector<1x1x32xf32> to vector<1x32xf32>
    %cst_311 = arith.constant dense<0.000000e+00> : vector<8xf32>
    %715 = vector.multi_reduction <add>, %710, %cst_311 [1] : vector<8x32xf32> to vector<8xf32>
    %716 = vector.shape_cast %715 : vector<8xf32> to vector<8x1xf32>
    %cst_312 = arith.constant 3.200000e+01 : f32
    %717 = vector.broadcast %cst_312 : f32 to vector<8x1xf32>
    %718 = arith.divf %716, %717 : vector<8x1xf32>
    %719 = vector.broadcast %718 : vector<8x1xf32> to vector<8x32xf32>
    %720 = arith.subf %710, %719 : vector<8x32xf32>
    %721 = arith.mulf %720, %720 : vector<8x32xf32>
    %cst_313 = arith.constant dense<0.000000e+00> : vector<8xf32>
    %722 = vector.multi_reduction <add>, %721, %cst_313 [1] : vector<8x32xf32> to vector<8xf32>
    %723 = vector.shape_cast %722 : vector<8xf32> to vector<8x1xf32>
    %cst_314 = arith.constant 3.200000e+01 : f32
    %724 = vector.broadcast %cst_314 : f32 to vector<8x1xf32>
    %725 = arith.divf %723, %724 : vector<8x1xf32>
    %cst_315 = arith.constant 9.99999974E-6 : f32
    %726 = vector.broadcast %cst_315 : f32 to vector<8x1xf32>
    %727 = arith.addf %725, %726 : vector<8x1xf32>
    %728 = math.rsqrt %727 : vector<8x1xf32>
    %729 = vector.broadcast %728 : vector<8x1xf32> to vector<8x32xf32>
    %730 = arith.mulf %720, %729 : vector<8x32xf32>
    %731 = vector.broadcast %712 : vector<1x32xf32> to vector<8x32xf32>
    %732 = arith.mulf %730, %731 : vector<8x32xf32>
    %733 = vector.broadcast %714 : vector<1x32xf32> to vector<8x32xf32>
    %734 = arith.addf %732, %733 : vector<8x32xf32>
    %c1_316 = arith.constant 1 : index
    %c0_317 = arith.constant 0 : index
    %c0_318 = arith.constant 0 : index
    %735 = vector.load %arg20[%c1_316, %c0_317, %c0_318] : memref<2x32x96xf32, #tpu.memory_space<vmem>>, vector<1x32x96xf32>
    %736 = vector.shape_cast %735 : vector<1x32x96xf32> to vector<32x96xf32>
    %c1_319 = arith.constant 1 : index
    %c0_320 = arith.constant 0 : index
    %c0_321 = arith.constant 0 : index
    %737 = vector.load %arg21[%c1_319, %c0_320, %c0_321] : memref<2x32x32xf32, #tpu.memory_space<vmem>>, vector<1x32x32xf32>
    %738 = vector.shape_cast %737 : vector<1x32x32xf32> to vector<32x32xf32>
    %c1_322 = arith.constant 1 : index
    %c0_323 = arith.constant 0 : index
    %c0_324 = arith.constant 0 : index
    %739 = vector.load %arg22[%c1_322, %c0_323, %c0_324] : memref<2x1x32xf32, #tpu.memory_space<vmem>>, vector<1x1x32xf32>
    %740 = vector.shape_cast %739 : vector<1x1x32xf32> to vector<1x32xf32>
    %c1_325 = arith.constant 1 : index
    %c0_326 = arith.constant 0 : index
    %c0_327 = arith.constant 0 : index
    %741 = vector.load %arg23[%c1_325, %c0_326, %c0_327] : memref<2x1x32xf32, #tpu.memory_space<vmem>>, vector<1x1x32xf32>
    %742 = vector.shape_cast %741 : vector<1x1x32xf32> to vector<1x32xf32>
    %c1_328 = arith.constant 1 : index
    %c0_329 = arith.constant 0 : index
    %c0_330 = arith.constant 0 : index
    %743 = vector.load %arg24[%c1_328, %c0_329, %c0_330] : memref<2x1x32xf32, #tpu.memory_space<vmem>>, vector<1x1x32xf32>
    %744 = vector.shape_cast %743 : vector<1x1x32xf32> to vector<1x32xf32>
    %c1_331 = arith.constant 1 : index
    %c0_332 = arith.constant 0 : index
    %c0_333 = arith.constant 0 : index
    %745 = vector.load %arg25[%c1_331, %c0_332, %c0_333] : memref<2x1x32xf32, #tpu.memory_space<vmem>>, vector<1x1x32xf32>
    %746 = vector.shape_cast %745 : vector<1x1x32xf32> to vector<1x32xf32>
    %c1_334 = arith.constant 1 : index
    %c0_335 = arith.constant 0 : index
    %c0_336 = arith.constant 0 : index
    %747 = vector.load %arg26[%c1_334, %c0_335, %c0_336] : memref<2x1x32xf32, #tpu.memory_space<vmem>>, vector<1x1x32xf32>
    %748 = vector.shape_cast %747 : vector<1x1x32xf32> to vector<1x32xf32>
    %c1_337 = arith.constant 1 : index
    %c0_338 = arith.constant 0 : index
    %c0_339 = arith.constant 0 : index
    %749 = vector.load %arg27[%c1_337, %c0_338, %c0_339] : memref<2x32x128xf32, #tpu.memory_space<vmem>>, vector<1x32x128xf32>
    %750 = vector.shape_cast %749 : vector<1x32x128xf32> to vector<32x128xf32>
    %c1_340 = arith.constant 1 : index
    %c0_341 = arith.constant 0 : index
    %c0_342 = arith.constant 0 : index
    %751 = vector.load %arg28[%c1_340, %c0_341, %c0_342] : memref<2x1x128xf32, #tpu.memory_space<vmem>>, vector<1x1x128xf32>
    %752 = vector.shape_cast %751 : vector<1x1x128xf32> to vector<1x128xf32>
    %c1_343 = arith.constant 1 : index
    %c0_344 = arith.constant 0 : index
    %c0_345 = arith.constant 0 : index
    %753 = vector.load %arg29[%c1_343, %c0_344, %c0_345] : memref<2x128x32xf32, #tpu.memory_space<vmem>>, vector<1x128x32xf32>
    %754 = vector.shape_cast %753 : vector<1x128x32xf32> to vector<128x32xf32>
    %c1_346 = arith.constant 1 : index
    %c0_347 = arith.constant 0 : index
    %c0_348 = arith.constant 0 : index
    %755 = vector.load %arg30[%c1_346, %c0_347, %c0_348] : memref<2x1x32xf32, #tpu.memory_space<vmem>>, vector<1x1x32xf32>
    %756 = vector.shape_cast %755 : vector<1x1x32xf32> to vector<1x32xf32>
    %757 = vector.extract_strided_slice %736 {offsets = [0, 0], sizes = [32, 32], strides = [1, 1]} : vector<32x96xf32> to vector<32x32xf32>
    %cst_349 = arith.constant dense<0.000000e+00> : vector<8x32xf32>
    %758 = tpu.matmul %734, %757, %cst_349 {dimension_numbers = #tpu.dot_dimension_numbers<[1], [0], [0], [1], [0, 0, 1, 1], [], []>} : vector<8x32xf32>, vector<32x32xf32>, vector<8x32xf32> -> vector<8x32xf32>
    %759 = vector.extract_strided_slice %736 {offsets = [0, 32], sizes = [32, 64], strides = [1, 1]} : vector<32x96xf32> to vector<32x64xf32>
    %cst_350 = arith.constant dense<0.000000e+00> : vector<8x64xf32>
    %760 = tpu.matmul %333, %759, %cst_350 {dimension_numbers = #tpu.dot_dimension_numbers<[1], [0], [0], [1], [0, 0, 1, 1], [], []>} : vector<8x32xf32>, vector<32x64xf32>, vector<8x64xf32> -> vector<8x64xf32>
    %761 = vector.extract_strided_slice %760 {offsets = [0, 0], sizes = [8, 32], strides = [1, 1]} : vector<8x64xf32> to vector<8x32xf32>
    %762 = vector.extract_strided_slice %760 {offsets = [0, 32], sizes = [8, 32], strides = [1, 1]} : vector<8x64xf32> to vector<8x32xf32>
    %763 = vector.extract_strided_slice %758 {offsets = [0, 0], sizes = [8, 8], strides = [1, 1]} : vector<8x32xf32> to vector<8x8xf32>
    %764 = vector.extract_strided_slice %761 {offsets = [0, 0], sizes = [8, 8], strides = [1, 1]} : vector<8x32xf32> to vector<8x8xf32>
    %765 = vector.extract_strided_slice %762 {offsets = [0, 0], sizes = [8, 8], strides = [1, 1]} : vector<8x32xf32> to vector<8x8xf32>
    %cst_351 = arith.constant dense<0.000000e+00> : vector<8x8xf32>
    %766 = tpu.matmul %763, %764, %cst_351 {dimension_numbers = #tpu.dot_dimension_numbers<[1], [1], [0], [0], [0, 0, 1, 0], [], []>} : vector<8x8xf32>, vector<8x8xf32>, vector<8x8xf32> -> vector<8x8xf32>
    %cst_352 = arith.constant -1.000000e+20 : f32
    %767 = vector.shape_cast %3 : vector<1x8xi1> to vector<1x8xi1>
    %768 = vector.broadcast %767 : vector<1x8xi1> to vector<8x8xi1>
    %769 = vector.broadcast %cst_352 : f32 to vector<8x8xf32>
    %770 = arith.select %768, %766, %769 : vector<8x8xi1>, vector<8x8xf32>
    %cst_353 = arith.constant 0.353553385 : f32
    %771 = vector.broadcast %cst_353 : f32 to vector<8x8xf32>
    %772 = arith.mulf %770, %771 : vector<8x8xf32>
    %cst_354 = arith.constant dense<0xFF800000> : vector<8xf32>
    %773 = vector.multi_reduction <maximumf>, %772, %cst_354 [1] : vector<8x8xf32> to vector<8xf32>
    %774 = vector.shape_cast %773 : vector<8xf32> to vector<8x1xf32>
    %775 = vector.broadcast %774 : vector<8x1xf32> to vector<8x8xf32>
    %776 = arith.subf %772, %775 : vector<8x8xf32>
    %777 = math.exp %776 : vector<8x8xf32>
    %cst_355 = arith.constant dense<0.000000e+00> : vector<8xf32>
    %778 = vector.multi_reduction <add>, %777, %cst_355 [1] : vector<8x8xf32> to vector<8xf32>
    %779 = vector.shape_cast %778 : vector<8xf32> to vector<8x1xf32>
    %780 = tpu.reciprocal %779 {approx = true} : vector<8x1xf32> -> vector<8x1xf32>
    %781 = vector.broadcast %780 : vector<8x1xf32> to vector<8x8xf32>
    %782 = arith.mulf %777, %781 : vector<8x8xf32>
    %cst_356 = arith.constant dense<0.000000e+00> : vector<8x8xf32>
    %783 = tpu.matmul %782, %765, %cst_356 {dimension_numbers = #tpu.dot_dimension_numbers<[1], [0], [0], [1], [0, 0, 1, 1], [], []>} : vector<8x8xf32>, vector<8x8xf32>, vector<8x8xf32> -> vector<8x8xf32>
    %784 = vector.extract_strided_slice %758 {offsets = [0, 8], sizes = [8, 8], strides = [1, 1]} : vector<8x32xf32> to vector<8x8xf32>
    %785 = vector.extract_strided_slice %761 {offsets = [0, 8], sizes = [8, 8], strides = [1, 1]} : vector<8x32xf32> to vector<8x8xf32>
    %786 = vector.extract_strided_slice %762 {offsets = [0, 8], sizes = [8, 8], strides = [1, 1]} : vector<8x32xf32> to vector<8x8xf32>
    %cst_357 = arith.constant dense<0.000000e+00> : vector<8x8xf32>
    %787 = tpu.matmul %784, %785, %cst_357 {dimension_numbers = #tpu.dot_dimension_numbers<[1], [1], [0], [0], [0, 0, 1, 0], [], []>} : vector<8x8xf32>, vector<8x8xf32>, vector<8x8xf32> -> vector<8x8xf32>
    %cst_358 = arith.constant -1.000000e+20 : f32
    %788 = vector.shape_cast %3 : vector<1x8xi1> to vector<1x8xi1>
    %789 = vector.broadcast %788 : vector<1x8xi1> to vector<8x8xi1>
    %790 = vector.broadcast %cst_358 : f32 to vector<8x8xf32>
    %791 = arith.select %789, %787, %790 : vector<8x8xi1>, vector<8x8xf32>
    %cst_359 = arith.constant 0.353553385 : f32
    %792 = vector.broadcast %cst_359 : f32 to vector<8x8xf32>
    %793 = arith.mulf %791, %792 : vector<8x8xf32>
    %cst_360 = arith.constant dense<0xFF800000> : vector<8xf32>
    %794 = vector.multi_reduction <maximumf>, %793, %cst_360 [1] : vector<8x8xf32> to vector<8xf32>
    %795 = vector.shape_cast %794 : vector<8xf32> to vector<8x1xf32>
    %796 = vector.broadcast %795 : vector<8x1xf32> to vector<8x8xf32>
    %797 = arith.subf %793, %796 : vector<8x8xf32>
    %798 = math.exp %797 : vector<8x8xf32>
    %cst_361 = arith.constant dense<0.000000e+00> : vector<8xf32>
    %799 = vector.multi_reduction <add>, %798, %cst_361 [1] : vector<8x8xf32> to vector<8xf32>
    %800 = vector.shape_cast %799 : vector<8xf32> to vector<8x1xf32>
    %801 = tpu.reciprocal %800 {approx = true} : vector<8x1xf32> -> vector<8x1xf32>
    %802 = vector.broadcast %801 : vector<8x1xf32> to vector<8x8xf32>
    %803 = arith.mulf %798, %802 : vector<8x8xf32>
    %cst_362 = arith.constant dense<0.000000e+00> : vector<8x8xf32>
    %804 = tpu.matmul %803, %786, %cst_362 {dimension_numbers = #tpu.dot_dimension_numbers<[1], [0], [0], [1], [0, 0, 1, 1], [], []>} : vector<8x8xf32>, vector<8x8xf32>, vector<8x8xf32> -> vector<8x8xf32>
    %805 = vector.extract_strided_slice %758 {offsets = [0, 16], sizes = [8, 8], strides = [1, 1]} : vector<8x32xf32> to vector<8x8xf32>
    %806 = vector.extract_strided_slice %761 {offsets = [0, 16], sizes = [8, 8], strides = [1, 1]} : vector<8x32xf32> to vector<8x8xf32>
    %807 = vector.extract_strided_slice %762 {offsets = [0, 16], sizes = [8, 8], strides = [1, 1]} : vector<8x32xf32> to vector<8x8xf32>
    %cst_363 = arith.constant dense<0.000000e+00> : vector<8x8xf32>
    %808 = tpu.matmul %805, %806, %cst_363 {dimension_numbers = #tpu.dot_dimension_numbers<[1], [1], [0], [0], [0, 0, 1, 0], [], []>} : vector<8x8xf32>, vector<8x8xf32>, vector<8x8xf32> -> vector<8x8xf32>
    %cst_364 = arith.constant -1.000000e+20 : f32
    %809 = vector.shape_cast %3 : vector<1x8xi1> to vector<1x8xi1>
    %810 = vector.broadcast %809 : vector<1x8xi1> to vector<8x8xi1>
    %811 = vector.broadcast %cst_364 : f32 to vector<8x8xf32>
    %812 = arith.select %810, %808, %811 : vector<8x8xi1>, vector<8x8xf32>
    %cst_365 = arith.constant 0.353553385 : f32
    %813 = vector.broadcast %cst_365 : f32 to vector<8x8xf32>
    %814 = arith.mulf %812, %813 : vector<8x8xf32>
    %cst_366 = arith.constant dense<0xFF800000> : vector<8xf32>
    %815 = vector.multi_reduction <maximumf>, %814, %cst_366 [1] : vector<8x8xf32> to vector<8xf32>
    %816 = vector.shape_cast %815 : vector<8xf32> to vector<8x1xf32>
    %817 = vector.broadcast %816 : vector<8x1xf32> to vector<8x8xf32>
    %818 = arith.subf %814, %817 : vector<8x8xf32>
    %819 = math.exp %818 : vector<8x8xf32>
    %cst_367 = arith.constant dense<0.000000e+00> : vector<8xf32>
    %820 = vector.multi_reduction <add>, %819, %cst_367 [1] : vector<8x8xf32> to vector<8xf32>
    %821 = vector.shape_cast %820 : vector<8xf32> to vector<8x1xf32>
    %822 = tpu.reciprocal %821 {approx = true} : vector<8x1xf32> -> vector<8x1xf32>
    %823 = vector.broadcast %822 : vector<8x1xf32> to vector<8x8xf32>
    %824 = arith.mulf %819, %823 : vector<8x8xf32>
    %cst_368 = arith.constant dense<0.000000e+00> : vector<8x8xf32>
    %825 = tpu.matmul %824, %807, %cst_368 {dimension_numbers = #tpu.dot_dimension_numbers<[1], [0], [0], [1], [0, 0, 1, 1], [], []>} : vector<8x8xf32>, vector<8x8xf32>, vector<8x8xf32> -> vector<8x8xf32>
    %826 = vector.extract_strided_slice %758 {offsets = [0, 24], sizes = [8, 8], strides = [1, 1]} : vector<8x32xf32> to vector<8x8xf32>
    %827 = vector.extract_strided_slice %761 {offsets = [0, 24], sizes = [8, 8], strides = [1, 1]} : vector<8x32xf32> to vector<8x8xf32>
    %828 = vector.extract_strided_slice %762 {offsets = [0, 24], sizes = [8, 8], strides = [1, 1]} : vector<8x32xf32> to vector<8x8xf32>
    %cst_369 = arith.constant dense<0.000000e+00> : vector<8x8xf32>
    %829 = tpu.matmul %826, %827, %cst_369 {dimension_numbers = #tpu.dot_dimension_numbers<[1], [1], [0], [0], [0, 0, 1, 0], [], []>} : vector<8x8xf32>, vector<8x8xf32>, vector<8x8xf32> -> vector<8x8xf32>
    %cst_370 = arith.constant -1.000000e+20 : f32
    %830 = vector.shape_cast %3 : vector<1x8xi1> to vector<1x8xi1>
    %831 = vector.broadcast %830 : vector<1x8xi1> to vector<8x8xi1>
    %832 = vector.broadcast %cst_370 : f32 to vector<8x8xf32>
    %833 = arith.select %831, %829, %832 : vector<8x8xi1>, vector<8x8xf32>
    %cst_371 = arith.constant 0.353553385 : f32
    %834 = vector.broadcast %cst_371 : f32 to vector<8x8xf32>
    %835 = arith.mulf %833, %834 : vector<8x8xf32>
    %cst_372 = arith.constant dense<0xFF800000> : vector<8xf32>
    %836 = vector.multi_reduction <maximumf>, %835, %cst_372 [1] : vector<8x8xf32> to vector<8xf32>
    %837 = vector.shape_cast %836 : vector<8xf32> to vector<8x1xf32>
    %838 = vector.broadcast %837 : vector<8x1xf32> to vector<8x8xf32>
    %839 = arith.subf %835, %838 : vector<8x8xf32>
    %840 = math.exp %839 : vector<8x8xf32>
    %cst_373 = arith.constant dense<0.000000e+00> : vector<8xf32>
    %841 = vector.multi_reduction <add>, %840, %cst_373 [1] : vector<8x8xf32> to vector<8xf32>
    %842 = vector.shape_cast %841 : vector<8xf32> to vector<8x1xf32>
    %843 = tpu.reciprocal %842 {approx = true} : vector<8x1xf32> -> vector<8x1xf32>
    %844 = vector.broadcast %843 : vector<8x1xf32> to vector<8x8xf32>
    %845 = arith.mulf %840, %844 : vector<8x8xf32>
    %cst_374 = arith.constant dense<0.000000e+00> : vector<8x8xf32>
    %846 = tpu.matmul %845, %828, %cst_374 {dimension_numbers = #tpu.dot_dimension_numbers<[1], [0], [0], [1], [0, 0, 1, 1], [], []>} : vector<8x8xf32>, vector<8x8xf32>, vector<8x8xf32> -> vector<8x8xf32>
    %847 = tpu.concatenate %783, %804, %825, %846 in 1 : vector<8x8xf32>, vector<8x8xf32>, vector<8x8xf32>, vector<8x8xf32> -> vector<8x32xf32>
    %cst_375 = arith.constant dense<0.000000e+00> : vector<8x32xf32>
    %848 = tpu.matmul %847, %738, %cst_375 {dimension_numbers = #tpu.dot_dimension_numbers<[1], [0], [0], [1], [0, 0, 1, 1], [], []>} : vector<8x32xf32>, vector<32x32xf32>, vector<8x32xf32> -> vector<8x32xf32>
    %849 = vector.broadcast %740 : vector<1x32xf32> to vector<8x32xf32>
    %850 = arith.addf %848, %849 : vector<8x32xf32>
    %851 = arith.addf %850, %734 : vector<8x32xf32>
    %cst_376 = arith.constant dense<0.000000e+00> : vector<8xf32>
    %852 = vector.multi_reduction <add>, %851, %cst_376 [1] : vector<8x32xf32> to vector<8xf32>
    %853 = vector.shape_cast %852 : vector<8xf32> to vector<8x1xf32>
    %cst_377 = arith.constant 3.200000e+01 : f32
    %854 = vector.broadcast %cst_377 : f32 to vector<8x1xf32>
    %855 = arith.divf %853, %854 : vector<8x1xf32>
    %856 = vector.broadcast %855 : vector<8x1xf32> to vector<8x32xf32>
    %857 = arith.subf %851, %856 : vector<8x32xf32>
    %858 = arith.mulf %857, %857 : vector<8x32xf32>
    %cst_378 = arith.constant dense<0.000000e+00> : vector<8xf32>
    %859 = vector.multi_reduction <add>, %858, %cst_378 [1] : vector<8x32xf32> to vector<8xf32>
    %860 = vector.shape_cast %859 : vector<8xf32> to vector<8x1xf32>
    %cst_379 = arith.constant 3.200000e+01 : f32
    %861 = vector.broadcast %cst_379 : f32 to vector<8x1xf32>
    %862 = arith.divf %860, %861 : vector<8x1xf32>
    %cst_380 = arith.constant 9.99999974E-6 : f32
    %863 = vector.broadcast %cst_380 : f32 to vector<8x1xf32>
    %864 = arith.addf %862, %863 : vector<8x1xf32>
    %865 = math.rsqrt %864 : vector<8x1xf32>
    %866 = vector.broadcast %865 : vector<8x1xf32> to vector<8x32xf32>
    %867 = arith.mulf %857, %866 : vector<8x32xf32>
    %868 = vector.broadcast %742 : vector<1x32xf32> to vector<8x32xf32>
    %869 = arith.mulf %867, %868 : vector<8x32xf32>
    %870 = vector.broadcast %744 : vector<1x32xf32> to vector<8x32xf32>
    %871 = arith.addf %869, %870 : vector<8x32xf32>
    %cst_381 = arith.constant dense<0.000000e+00> : vector<8x128xf32>
    %872 = tpu.matmul %871, %750, %cst_381 {dimension_numbers = #tpu.dot_dimension_numbers<[1], [0], [0], [1], [0, 0, 1, 1], [], []>} : vector<8x32xf32>, vector<32x128xf32>, vector<8x128xf32> -> vector<8x128xf32>
    %873 = vector.broadcast %752 : vector<1x128xf32> to vector<8x128xf32>
    %874 = arith.addf %872, %873 : vector<8x128xf32>
    %cst_382 = arith.constant 0.000000e+00 : f32
    %875 = vector.broadcast %cst_382 : f32 to vector<8x128xf32>
    %876 = arith.maximumf %874, %875 : vector<8x128xf32>
    %cst_383 = arith.constant dense<0.000000e+00> : vector<8x32xf32>
    %877 = tpu.matmul %876, %754, %cst_383 {dimension_numbers = #tpu.dot_dimension_numbers<[1], [0], [0], [1], [0, 0, 1, 1], [], []>} : vector<8x128xf32>, vector<128x32xf32>, vector<8x32xf32> -> vector<8x32xf32>
    %878 = vector.broadcast %756 : vector<1x32xf32> to vector<8x32xf32>
    %879 = arith.addf %877, %878 : vector<8x32xf32>
    %880 = arith.addf %879, %871 : vector<8x32xf32>
    %cst_384 = arith.constant dense<0.000000e+00> : vector<8xf32>
    %881 = vector.multi_reduction <add>, %880, %cst_384 [1] : vector<8x32xf32> to vector<8xf32>
    %882 = vector.shape_cast %881 : vector<8xf32> to vector<8x1xf32>
    %cst_385 = arith.constant 3.200000e+01 : f32
    %883 = vector.broadcast %cst_385 : f32 to vector<8x1xf32>
    %884 = arith.divf %882, %883 : vector<8x1xf32>
    %885 = vector.broadcast %884 : vector<8x1xf32> to vector<8x32xf32>
    %886 = arith.subf %880, %885 : vector<8x32xf32>
    %887 = arith.mulf %886, %886 : vector<8x32xf32>
    %cst_386 = arith.constant dense<0.000000e+00> : vector<8xf32>
    %888 = vector.multi_reduction <add>, %887, %cst_386 [1] : vector<8x32xf32> to vector<8xf32>
    %889 = vector.shape_cast %888 : vector<8xf32> to vector<8x1xf32>
    %cst_387 = arith.constant 3.200000e+01 : f32
    %890 = vector.broadcast %cst_387 : f32 to vector<8x1xf32>
    %891 = arith.divf %889, %890 : vector<8x1xf32>
    %cst_388 = arith.constant 9.99999974E-6 : f32
    %892 = vector.broadcast %cst_388 : f32 to vector<8x1xf32>
    %893 = arith.addf %891, %892 : vector<8x1xf32>
    %894 = math.rsqrt %893 : vector<8x1xf32>
    %895 = vector.broadcast %894 : vector<8x1xf32> to vector<8x32xf32>
    %896 = arith.mulf %886, %895 : vector<8x32xf32>
    %897 = vector.broadcast %746 : vector<1x32xf32> to vector<8x32xf32>
    %898 = arith.mulf %896, %897 : vector<8x32xf32>
    %899 = vector.broadcast %748 : vector<1x32xf32> to vector<8x32xf32>
    %900 = arith.addf %898, %899 : vector<8x32xf32>
    %c0_389 = arith.constant 0 : index
    %c0_390 = arith.constant 0 : index
    %901 = vector.load %arg31[%c0_389, %c0_390] : memref<32x128xf32, #tpu.memory_space<vmem>>, vector<32x128xf32>
    %cst_391 = arith.constant dense<0.000000e+00> : vector<8x128xf32>
    %902 = tpu.matmul %900, %901, %cst_391 {dimension_numbers = #tpu.dot_dimension_numbers<[1], [0], [0], [1], [0, 0, 1, 1], [], []>} : vector<8x32xf32>, vector<32x128xf32>, vector<8x128xf32> -> vector<8x128xf32>
    %c0_392 = arith.constant 0 : index
    %c0_393 = arith.constant 0 : index
    %903 = vector.load %arg32[%c0_392, %c0_393] : memref<1x128xf32, #tpu.memory_space<vmem>>, vector<1x128xf32>
    %904 = vector.broadcast %903 : vector<1x128xf32> to vector<8x128xf32>
    %905 = arith.addf %902, %904 : vector<8x128xf32>
    %c0_394 = arith.constant 0 : index
    %c0_395 = arith.constant 0 : index
    %c0_396 = arith.constant 0 : index
    %906 = vector.load %arg33[%c0_394, %c0_395, %c0_396] : memref<1x8x128xf32, #tpu.memory_space<vmem>>, vector<1x8x128xf32>
    %907 = vector.shape_cast %906 : vector<1x8x128xf32> to vector<8x128xf32>
    %908 = vector.shape_cast %905 : vector<8x128xf32> to vector<1x8x128xf32>
    tpu.vector_store %arg33[%c0_394, %c0_395, %c0_396], %908 {strides = array<i32>} : memref<1x8x128xf32, #tpu.memory_space<vmem>>, vector<1x8x128xf32>,
    return
  }
  func.func @transform_0(%arg0: i32) -> (i32, i32, i32) {
    %c0_i32 = arith.constant 0 : i32
    %c0_i32_0 = arith.constant 0 : i32
    %c0_i32_1 = arith.constant 0 : i32
    return %arg0, %c0_i32, %c0_i32_0 : i32, i32, i32
  }
  func.func @transform_1(%arg0: i32) -> (i32, i32, i32) {
    %c0_i32 = arith.constant 0 : i32
    %c0_i32_0 = arith.constant 0 : i32
    %c0_i32_1 = arith.constant 0 : i32
    return %arg0, %c0_i32, %c0_i32_0 : i32, i32, i32
  }
  func.func @transform_2(%arg0: i32) -> (i32, i32, i32) {
    %c0_i32 = arith.constant 0 : i32
    %c0_i32_0 = arith.constant 0 : i32
    %c0_i32_1 = arith.constant 0 : i32
    return %arg0, %c0_i32, %c0_i32_0 : i32, i32, i32
  }
  func.func @transform_3(%arg0: i32) -> (i32, i32, i32) {
    %c0_i32 = arith.constant 0 : i32
    %c0_i32_0 = arith.constant 0 : i32
    %c0_i32_1 = arith.constant 0 : i32
    %c0_i32_2 = arith.constant 0 : i32
    return %c0_i32, %c0_i32_0, %c0_i32_1 : i32, i32, i32
  }
  func.func @transform_4(%arg0: i32) -> (i32, i32, i32) {
    %c0_i32 = arith.constant 0 : i32
    %c0_i32_0 = arith.constant 0 : i32
    %c0_i32_1 = arith.constant 0 : i32
    %c0_i32_2 = arith.constant 0 : i32
    return %c0_i32, %c0_i32_0, %c0_i32_1 : i32, i32, i32
  }
  func.func @transform_5(%arg0: i32) -> (i32, i32, i32) {
    %c0_i32 = arith.constant 0 : i32
    %c0_i32_0 = arith.constant 0 : i32
    %c0_i32_1 = arith.constant 0 : i32
    %c0_i32_2 = arith.constant 0 : i32
    return %c0_i32, %c0_i32_0, %c0_i32_1 : i32, i32, i32
  }
  func.func @transform_6(%arg0: i32) -> (i32, i32, i32) {
    %c0_i32 = arith.constant 0 : i32
    %c0_i32_0 = arith.constant 0 : i32
    %c0_i32_1 = arith.constant 0 : i32
    %c0_i32_2 = arith.constant 0 : i32
    return %c0_i32, %c0_i32_0, %c0_i32_1 : i32, i32, i32
  }
  func.func @transform_7(%arg0: i32) -> (i32, i32, i32) {
    %c0_i32 = arith.constant 0 : i32
    %c0_i32_0 = arith.constant 0 : i32
    %c0_i32_1 = arith.constant 0 : i32
    %c0_i32_2 = arith.constant 0 : i32
    return %c0_i32, %c0_i32_0, %c0_i32_1 : i32, i32, i32
  }
  func.func @transform_8(%arg0: i32) -> (i32, i32, i32) {
    %c0_i32 = arith.constant 0 : i32
    %c0_i32_0 = arith.constant 0 : i32
    %c0_i32_1 = arith.constant 0 : i32
    %c0_i32_2 = arith.constant 0 : i32
    return %c0_i32, %c0_i32_0, %c0_i32_1 : i32, i32, i32
  }
  func.func @transform_9(%arg0: i32) -> (i32, i32, i32) {
    %c0_i32 = arith.constant 0 : i32
    %c0_i32_0 = arith.constant 0 : i32
    %c0_i32_1 = arith.constant 0 : i32
    %c0_i32_2 = arith.constant 0 : i32
    return %c0_i32, %c0_i32_0, %c0_i32_1 : i32, i32, i32
  }
  func.func @transform_10(%arg0: i32) -> (i32, i32, i32) {
    %c0_i32 = arith.constant 0 : i32
    %c0_i32_0 = arith.constant 0 : i32
    %c0_i32_1 = arith.constant 0 : i32
    %c0_i32_2 = arith.constant 0 : i32
    return %c0_i32, %c0_i32_0, %c0_i32_1 : i32, i32, i32
  }
  func.func @transform_11(%arg0: i32) -> (i32, i32, i32) {
    %c0_i32 = arith.constant 0 : i32
    %c0_i32_0 = arith.constant 0 : i32
    %c0_i32_1 = arith.constant 0 : i32
    %c0_i32_2 = arith.constant 0 : i32
    return %c0_i32, %c0_i32_0, %c0_i32_1 : i32, i32, i32
  }
  func.func @transform_12(%arg0: i32) -> (i32, i32, i32) {
    %c0_i32 = arith.constant 0 : i32
    %c0_i32_0 = arith.constant 0 : i32
    %c0_i32_1 = arith.constant 0 : i32
    %c0_i32_2 = arith.constant 0 : i32
    return %c0_i32, %c0_i32_0, %c0_i32_1 : i32, i32, i32
  }
  func.func @transform_13(%arg0: i32) -> (i32, i32, i32) {
    %c0_i32 = arith.constant 0 : i32
    %c0_i32_0 = arith.constant 0 : i32
    %c0_i32_1 = arith.constant 0 : i32
    %c0_i32_2 = arith.constant 0 : i32
    return %c0_i32, %c0_i32_0, %c0_i32_1 : i32, i32, i32
  }
  func.func @transform_14(%arg0: i32) -> (i32, i32, i32) {
    %c0_i32 = arith.constant 0 : i32
    %c0_i32_0 = arith.constant 0 : i32
    %c0_i32_1 = arith.constant 0 : i32
    %c0_i32_2 = arith.constant 0 : i32
    return %c0_i32, %c0_i32_0, %c0_i32_1 : i32, i32, i32
  }
  func.func @transform_15(%arg0: i32) -> (i32, i32, i32) {
    %c0_i32 = arith.constant 0 : i32
    %c0_i32_0 = arith.constant 0 : i32
    %c0_i32_1 = arith.constant 0 : i32
    %c0_i32_2 = arith.constant 0 : i32
    return %c0_i32, %c0_i32_0, %c0_i32_1 : i32, i32, i32
  }
  func.func @transform_16(%arg0: i32) -> (i32, i32, i32) {
    %c0_i32 = arith.constant 0 : i32
    %c0_i32_0 = arith.constant 0 : i32
    %c0_i32_1 = arith.constant 0 : i32
    %c0_i32_2 = arith.constant 0 : i32
    return %c0_i32, %c0_i32_0, %c0_i32_1 : i32, i32, i32
  }
  func.func @transform_17(%arg0: i32) -> (i32, i32, i32) {
    %c0_i32 = arith.constant 0 : i32
    %c0_i32_0 = arith.constant 0 : i32
    %c0_i32_1 = arith.constant 0 : i32
    %c0_i32_2 = arith.constant 0 : i32
    return %c0_i32, %c0_i32_0, %c0_i32_1 : i32, i32, i32
  }
  func.func @transform_18(%arg0: i32) -> (i32, i32, i32) {
    %c0_i32 = arith.constant 0 : i32
    %c0_i32_0 = arith.constant 0 : i32
    %c0_i32_1 = arith.constant 0 : i32
    %c0_i32_2 = arith.constant 0 : i32
    return %c0_i32, %c0_i32_0, %c0_i32_1 : i32, i32, i32
  }
  func.func @transform_19(%arg0: i32) -> (i32, i32, i32) {
    %c0_i32 = arith.constant 0 : i32
    %c0_i32_0 = arith.constant 0 : i32
    %c0_i32_1 = arith.constant 0 : i32
    %c0_i32_2 = arith.constant 0 : i32
    return %c0_i32, %c0_i32_0, %c0_i32_1 : i32, i32, i32
  }
  func.func @transform_20(%arg0: i32) -> (i32, i32, i32) {
    %c0_i32 = arith.constant 0 : i32
    %c0_i32_0 = arith.constant 0 : i32
    %c0_i32_1 = arith.constant 0 : i32
    %c0_i32_2 = arith.constant 0 : i32
    return %c0_i32, %c0_i32_0, %c0_i32_1 : i32, i32, i32
  }
  func.func @transform_21(%arg0: i32) -> (i32, i32, i32) {
    %c0_i32 = arith.constant 0 : i32
    %c0_i32_0 = arith.constant 0 : i32
    %c0_i32_1 = arith.constant 0 : i32
    %c0_i32_2 = arith.constant 0 : i32
    return %c0_i32, %c0_i32_0, %c0_i32_1 : i32, i32, i32
  }
  func.func @transform_22(%arg0: i32) -> (i32, i32, i32) {
    %c0_i32 = arith.constant 0 : i32
    %c0_i32_0 = arith.constant 0 : i32
    %c0_i32_1 = arith.constant 0 : i32
    %c0_i32_2 = arith.constant 0 : i32
    return %c0_i32, %c0_i32_0, %c0_i32_1 : i32, i32, i32
  }
  func.func @transform_23(%arg0: i32) -> (i32, i32, i32) {
    %c0_i32 = arith.constant 0 : i32
    %c0_i32_0 = arith.constant 0 : i32
    %c0_i32_1 = arith.constant 0 : i32
    %c0_i32_2 = arith.constant 0 : i32
    return %c0_i32, %c0_i32_0, %c0_i32_1 : i32, i32, i32
  }
  func.func @transform_24(%arg0: i32) -> (i32, i32, i32) {
    %c0_i32 = arith.constant 0 : i32
    %c0_i32_0 = arith.constant 0 : i32
    %c0_i32_1 = arith.constant 0 : i32
    %c0_i32_2 = arith.constant 0 : i32
    return %c0_i32, %c0_i32_0, %c0_i32_1 : i32, i32, i32
  }
  func.func @transform_25(%arg0: i32) -> (i32, i32, i32) {
    %c0_i32 = arith.constant 0 : i32
    %c0_i32_0 = arith.constant 0 : i32
    %c0_i32_1 = arith.constant 0 : i32
    %c0_i32_2 = arith.constant 0 : i32
    return %c0_i32, %c0_i32_0, %c0_i32_1 : i32, i32, i32
  }
  func.func @transform_26(%arg0: i32) -> (i32, i32, i32) {
    %c0_i32 = arith.constant 0 : i32
    %c0_i32_0 = arith.constant 0 : i32
    %c0_i32_1 = arith.constant 0 : i32
    %c0_i32_2 = arith.constant 0 : i32
    return %c0_i32, %c0_i32_0, %c0_i32_1 : i32, i32, i32
  }
  func.func @transform_27(%arg0: i32) -> (i32, i32, i32) {
    %c0_i32 = arith.constant 0 : i32
    %c0_i32_0 = arith.constant 0 : i32
    %c0_i32_1 = arith.constant 0 : i32
    %c0_i32_2 = arith.constant 0 : i32
    return %c0_i32, %c0_i32_0, %c0_i32_1 : i32, i32, i32
  }
  func.func @transform_28(%arg0: i32) -> (i32, i32, i32) {
    %c0_i32 = arith.constant 0 : i32
    %c0_i32_0 = arith.constant 0 : i32
    %c0_i32_1 = arith.constant 0 : i32
    %c0_i32_2 = arith.constant 0 : i32
    return %c0_i32, %c0_i32_0, %c0_i32_1 : i32, i32, i32
  }
  func.func @transform_29(%arg0: i32) -> (i32, i32, i32) {
    %c0_i32 = arith.constant 0 : i32
    %c0_i32_0 = arith.constant 0 : i32
    %c0_i32_1 = arith.constant 0 : i32
    %c0_i32_2 = arith.constant 0 : i32
    return %c0_i32, %c0_i32_0, %c0_i32_1 : i32, i32, i32
  }
  func.func @transform_30(%arg0: i32) -> (i32, i32) {
    %c0_i32 = arith.constant 0 : i32
    %c0_i32_0 = arith.constant 0 : i32
    %c0_i32_1 = arith.constant 0 : i32
    return %c0_i32, %c0_i32_0 : i32, i32
  }
  func.func @transform_31(%arg0: i32) -> (i32, i32) {
    %c0_i32 = arith.constant 0 : i32
    %c0_i32_0 = arith.constant 0 : i32
    %c0_i32_1 = arith.constant 0 : i32
    return %c0_i32, %c0_i32_0 : i32, i32
  }
  func.func @transform_32(%arg0: i32) -> (i32, i32, i32) {
    %c0_i32 = arith.constant 0 : i32
    %c0_i32_0 = arith.constant 0 : i32
    %c0_i32_1 = arith.constant 0 : i32
    return %arg0, %c0_i32, %c0_i32_0 : i32, i32, i32
  }
}

</mosaic_0001>

<bundles_post_ra>
// kernel: transformer_forward.1
= control target key start
LH: loop header
LB: loop body
LE: loop exit
PB: predicated region body
PF: predicated region fallthrough
CT: control target
= control target key end

     0   :  { %s4461_s6 = smov 1   ;;  %s4462_s10 = smov 2   ;;  %s5400_s0 = inlined_call_operand.smem [shape: u32[33], index: -1, kind: input, shape index: {}] }
   0x1   :  { %s4517_s5 = sld [smem:[%s5400_s0]]   ;;  %s4463_s14 = smov 3  }
   0x2   :  { %s4522_s9 = sld [smem:[%s5400_s0 + %s4461_s6]]   ;;  %s4464_s18 = smov 4  }
   0x3   :  { %s4527_s13 = sld [smem:[%s5400_s0 + %s4462_s10]]   ;;  %s4465_s22 = smov 5  }
   0x4   :  { %s4532_s17 = sld [smem:[%s5400_s0 + %s4463_s14]]   ;;  %s4466_s26 = smov 6  }
   0x5   :  { %s4537_s21 = sld [smem:[%s5400_s0 + %s4464_s18]]   ;;  %s4467_s30 = smov 7  }
   0x6   :  { %s4542_s25 = sld [smem:[%s5400_s0 + %s4465_s22]]   ;;  %s4468_s4 = smov 8  }
   0x7   :  { %5469 = sst [smem:[#allocation5_spill]] %s4517_s5  ;;  %s4469_s10 = smov 9  }
   0x8   :  { %5470 = sst [smem:[#allocation6_spill]] %s4522_s9  ;;  %s4470_s15 = smov 10  }
   0x9   :  { %5471 = sst [smem:[#allocation7_spill]] %s4527_s13  ;;  %s4471_s20 = smov 11  }
   0xa   :  { %5472 = sst [smem:[#allocation8_spill]] %s4532_s17  ;;  %s4473_s1 = smov 13  }
   0xb   :  { %5473 = sst [smem:[#allocation9_spill]] %s4537_s21  ;;  %s4474_s7 = smov 14  }
   0xc   :  { %5474 = sst [smem:[#allocation10_spill]] %s4542_s25  ;;  %s4476_s22 = smov 16  }
   0xd   :  { %s4547_s29 = sld [smem:[%s5400_s0 + %s4466_s26]]   ;;  %s4472_s26 = smov 12  }
   0xe   :  { %s4552_s3 = sld [smem:[%s5400_s0 + %s4467_s30]]   ;;  %s4477_s28 = smov 17  }
   0xf   :  { %s4557_s8 = sld [smem:[%s5400_s0 + %s4468_s4]]  }
  0x10   :  { %s4562_s14 = sld [smem:[%s5400_s0 + %s4469_s10]]  }
  0x11   :  { %s4567_s19 = sld [smem:[%s5400_s0 + %s4470_s15]]   ;;  %s4475_s15 = smov 15  }
  0x12   :  { %s4572_s24 = sld [smem:[%s5400_s0 + %s4471_s20]]  }
  0x13   :  { %5475 = sst [smem:[#allocation11_spill]] %s4547_s29 }
  0x14   :  { %5476 = sst [smem:[#allocation12_spill]] %s4552_s3 }
  0x15   :  { %5477 = sst [smem:[#allocation13_spill]] %s4557_s8 }
  0x16   :  { %5478 = sst [smem:[#allocation14_spill]] %s4562_s14 }
  0x17   :  { %5479 = sst [smem:[#allocation15_spill]] %s4567_s19 }
  0x18   :  { %5480 = sst [smem:[#allocation16_spill]] %s4572_s24 }
  0x19   :  { %s4577_s30 = sld [smem:[%s5400_s0 + %s4472_s26]]  }
  0x1a   :  { %s4582_s6 = sld [smem:[%s5400_s0 + %s4473_s1]]  }
  0x1b   :  { %s4587_s12 = sld [smem:[%s5400_s0 + %s4474_s7]]   ;;  %s4478_s7 = smov 18  }
  0x1c   :  { %s4592_s20 = sld [smem:[%s5400_s0 + %s4475_s15]]   ;;  %s4479_s15 = smov 19  }
  0x1d   :  { %s4597_s27 = sld [smem:[%s5400_s0 + %s4476_s22]]   ;;  %s4480_s22 = smov 20  }
  0x1e   :  { %s4602_s4 = sld [smem:[%s5400_s0 + %s4477_s28]]   ;;  %s4481_s28 = smov 21  }
  0x1f   :  { %5481 = sst [smem:[#allocation17_spill]] %s4577_s30 }
  0x20   :  { %5482 = sst [smem:[#allocation18_spill]] %s4582_s6 }
  0x21   :  { %s4607_s9 = sld [smem:[%s5400_s0 + %s4478_s7]]   ;;  %s4482_s7 = smov 22  }
  0x22   :  { %5483 = sst [smem:[#allocation19_spill]] %s4592_s20 }
  0x23   :  { %5484 = sst [smem:[#allocation20_spill]] %s4597_s27 }
  0x24   :  { %5485 = sst [smem:[#allocation21_spill]] %s4602_s4 }
  0x25   :  { %s4612_s20 = sld [smem:[%s5400_s0 + %s4479_s15]]   ;;  %s4483_s15 = smov 23  }
  0x26   :  { %s4617_s27 = sld [smem:[%s5400_s0 + %s4480_s22]]   ;;  %s4484_s22 = smov 24  }
  0x27   :  { %5486 = sst [smem:[#allocation22_spill]] %s4607_s9 }
  0x28   :  { %s4622_s4 = sld [smem:[%s5400_s0 + %s4481_s28]]   ;;  %s4485_s28 = smov 25  }
  0x29   :  { %s4627_s9 = sld [smem:[%s5400_s0 + %s4482_s7]]   ;;  %s4486_s7 = smov 26  }
  0x2b   :  { %5487 = sst [smem:[#allocation23_spill]] %s4612_s20 }
  0x2c   :  { %5488 = sst [smem:[#allocation24_spill]] %s4617_s27 }
  0x2d   :  { %s4632_s20 = sld [smem:[%s5400_s0 + %s4483_s15]]   ;;  %s4487_s15 = smov 27  }
  0x2e   :  { %5489 = sst [smem:[#allocation25_spill]] %s4622_s4 }
  0x2f   :  { %5490 = sst [smem:[#allocation26_spill]] %s4627_s9 }
  0x30   :  { %s4637_s27 = sld [smem:[%s5400_s0 + %s4484_s22]]   ;;  %s4488_s22 = smov 28  }
  0x31   :  { %s4642_s4 = sld [smem:[%s5400_s0 + %s4485_s28]]   ;;  %s4489_s28 = smov 29  }
  0x32   :  { %s4647_s9 = sld [smem:[%s5400_s0 + %s4486_s7]]   ;;  %s4490_s7 = smov 30  }
  0x33   :  { %5491 = sst [smem:[#allocation27_spill]] %s4632_s20 }
  0x34   :  { %s4652_s20 = sld [smem:[%s5400_s0 + %s4487_s15]]   ;;  %s4491_s15 = smov 31  }
  0x36   :  { %5492 = sst [smem:[#allocation28_spill]] %s4637_s27 }
  0x37   :  { %5493 = sst [smem:[#allocation29_spill]] %s4642_s4 }
  0x38   :  { %5494 = sst [smem:[#allocation30_spill]] %s4647_s9 }
  0x39   :  { %s4657_s27 = sld [smem:[%s5400_s0 + %s4488_s22]]   ;;  %s4492_s22 = smov 32  }
  0x3a   :  { %5495 = sst [smem:[#allocation31_spill]] %s4652_s20 }
  0x3b   :  { %s4662_s4 = sld [smem:[%s5400_s0 + %s4489_s28]]  }
  0x3c   :  { %s4667_s9 = sld [smem:[%s5400_s0 + %s4490_s7]]  }
  0x3d   :  { %s4672_s20 = sld [smem:[%s5400_s0 + %s4491_s15]]  }
  0x3f   :  { %5496 = sst [smem:[#allocation32_spill]] %s4657_s27 }
  0x40   :  { %s4677_s27 = sld [smem:[%s5400_s0 + %s4492_s22]]  }
  0x42   :  { %5497 = sst [smem:[#allocation33_spill]] %s4667_s9 }
  0x43   :  { %5498 = sst [smem:[#allocation34_spill]] %s4672_s20 }
  0x46   :  { %5499 = sst [smem:[#allocation35_spill]] %s4677_s27 }
  0x47   :  { %70 = vsyncpa [#allocation3], 0 }
  0x48   :  { %72 = vsyncpa [#allocation3 + $0x1], 0  ;;  %s4679_s28 = smov 0   ;;  %s4681_s1 = smov 0  }
  0x49   :  { %s4683_s2 = smov 0   ;;  %s4685_s7 = smov 0  }
  0x4a LB: > { %s5500_s30 = sld [smem:[#allocation17_spill]]  ;;  %s4700_s0 = sadd.s32 4294967295, %s4459_s7   ;;  %s4455_s2 = sphi %s4683_s2, %s5572_s2   ;;  %s4451_s1 = sphi %s4681_s1, %s5571_s1   ;;  %s4447_s28 = sphi %s4679_s28, %s5570_s28   ;;  %s4459_s7 = sphi %s4685_s7, %s5569_s7  }
  0x4b   : > { %s5501_s29 = sld [smem:[#allocation11_spill]]  ;;  %s3954_s10 = sadd.s32 4294967294, %s4459_s7  }
  0x4c   : > { %s5502_s14 = sld [smem:[#allocation14_spill]]  ;;  %s4704_s11 = sadd.s32 1, %s4459_s7  }
  0x4d   : > { %s5503_s8 = sld [smem:[#allocation13_spill]]  ;;  %s772_s15 = sadd.s32 1, %s4455_s2 }
  0x4e   : > { %s5504_s25 = sld [smem:[#allocation10_spill]]  ;;  %s769_s16 = ssub.s32 %s4459_s7, %s4704_s11 }
  0x4f   : > { %s5505_s6 = sld [smem:[#allocation18_spill]]  ;;  %p782_p0 = scmp.ne.s32.totalorder %s4455_s2, %s4451_s1 }
  0x50   : > { %s5506_s24 = sld [smem:[#allocation16_spill]]  ;;  %p770_p1 = scmp.eq.s32.totalorder %s769_s16, 0 }
  0x51   : > { %s5507_s19 = sld [smem:[#allocation15_spill]]  ;;  %p783_p2 = scmp.eq.s32.totalorder %s4700_s0, 1 }
  0x52   : > { %s5508_s3 = sld [smem:[#allocation12_spill]]  ;;  %p788_p3 = scmp.ne.s32.totalorder %s4451_s1, %s4447_s28 }
  0x53   : > { %s5509_s21 = sld [smem:[#allocation9_spill]]  ;;  %p789_p4 = scmp.eq.s32.totalorder %s3954_s10, 1 }
  0x54   : > { %s5510_s17 = sld [smem:[#allocation8_spill]]  ;;  %p4717_p5 = por %p783_p2, %p782_p0 }
  0x55   : > { %5511 = sst [smem:[#allocation36_spill]] %s4447_s28  ;;  %p4721_p6 = por %p789_p4, %p788_p3 }
  0x56   : > { %5512 = sst [smem:[#allocation37_spill]] %s4451_s1  ;;  %p3957_p7 = scmp.ge.s32.totalorder %s4459_s7, 1 }
  0x57   : > { %5513 = sst [smem:[#allocation38_spill]] %s4455_s2  ;;  %p914_p8 = scmp.lt.s32.totalorder %s4459_s7, 3 }
  0x58   : > { %5514 = sst [smem:[#allocation39_spill]] %s4459_s7 }
  0x59   : > { %5515 = sst [smem:[#allocation40_spill]] %s4700_s0  ;;  %p915_p9 = pnand %p3957_p7, %p914_p8 }
  0x5a   : > { %5516 = sst [smem:[#allocation41_spill]] %s4704_s11  ;;  %p1002_p10 = scmp.lt.s32.totalorder (!%p915_p9), %s4700_s0, 1 }
  0x5b   : > { %s4715_s18 = scalar_select %p770_p1, %s4455_s2, %s772_s15  }
  0x5c   : > { %s5518_s22 = scalar_select %p4717_p5, 1, 0 }
  0x5d   : > { %5517 = sst [smem:[#allocation42_spill]] %s4715_s18  ;;  %918 = sbr.rel (%p915_p9) target bundleno = 10480 (0x28f0), region = 148 }
  0x5e   : > { %5519 = sst [smem:[#allocation43_spill]] %s5518_s22  ;;  %s5417_s16 = smov (!%p915_p9), 88  }
  0x5f   : > { %s5520_s23 = scalar_select %p4721_p6, 1, 0 }
  0x60   : > { %s5522_s5 = sld [smem:[#allocation5_spill]] (!%p915_p9)  ;;  %s5431_s18 = smov (!%p915_p9), 64  }
  0x61   : > { %5521 = sst [smem:[#allocation44_spill]] %s5520_s23  ;;  %s5441_s2 = smov (!%p915_p9), 96  }
  0x62   : > { %v1019_v0 = vld [vmem:[%s5510_s17 + $0x18] sm:$0xff]  ;;  %v1018_v1 = vld [vmem:[%s5510_s17 + $0x10] sm:$0xff]  ;;  %v1017_v2 = vld [vmem:[%s5510_s17 + $0x8] sm:$0xff]  ;;  %s4732_s26 = scalar_select %p1002_p10, %s4700_s0, 1  ;;  %vm1051_vm0 = vcmask 261120   ;;  %vm1078_vm1 = vcmask 64512  }
  0x63   : > { %1067 = vmatpush.msra.mxu0 %v1019_v0  ;;  %v1016_v3 = vld [vmem:[%s5510_s17] sm:$0xff]  ;;  %s5523_s13 = sld [smem:[#allocation7_spill]]  ;;  %v4500_v14 = vmov 0   ;;  %vm1359_vm4 = vcmask 130048   ;;  %vm1361_vm5 = vcmask 195584   ;;  %s5534_s11 = smov 40  }
  0x64   : > { %s5416_s10 = sshll.u32 %s4732_s26, 3  ;;  %s5535_s23 = smov 8  }
  0x65   : > { %1068 = vmatpush.msra.mxu0 %v1018_v1  ;;  %s5536_s28 = sshll.u32 %s4732_s26, 3  ;;  %s5553_s22 = sld [smem:[#allocation26_spill]] }
  0x66   : > { %s1005_s15 = scalar_lea.vmem %s5522_s5, %s5416_s10  ;;  %s5435_s10 = smov 80  }
  0x67   : > { %1069 = vmatpush.msra.mxu0 %v1017_v2  ;;  %v4739_v4 = vld [vmem:[%s1005_s15] sm:$0xff]  ;;  %s5437_s15 = smov 120   ;;  %s5419_s5 = smov 72  }
  0x68   : > { %s5554_s20 = sld [smem:[#allocation27_spill]] }
  0x69   : > { %1070 = vmatpush.msra.mxu0 %v1016_v3  ;;  %s5555_s27 = sld [smem:[#allocation31_spill]] }
  0x6a   : > { %3961 = vmatmul.msk.f32.vlgmr.msra.gmra.mxu0 %vm1051_vm0, %v4739_v4  ;;  %s5556_s0 = sld [smem:[#allocation28_spill]] }
  0x6b   : > { %s5557_s1 = sld [smem:[#allocation29_spill]] }
  0x71   : > { %s5558_s9 = smov %s5557_s1 }
  0xe7   : > { %v4743_v5 = vpop.f32.mrf.mxu0 }
  0xe8   : > { %1147 = vrot.lane.b32.xlu2 %v4743_v5, %s5417_s16  ;;  %1119 = vrot.lane.b32.xlu1 %v4743_v5, %s5431_s18  ;;  %s5421_s16 = smov 112   ;;  %s5439_s18 = smov 16  }
  0xe9   : > { %1076 = vrot.lane.b32.xlu0 %v4743_v5, %s5441_s2 }
  0xf0   : > { %1145 = vrot.lane.b32.xlu2 %v4743_v5, %s5437_s15 }
  0xf8   : > { %1214 = vrot.lane.b32.xlu2 %v4743_v5, %s5435_s10 }
 0x100   : > { %1281 = vrot.lane.b32.xlu2 %v4743_v5, %s5419_s5  ;;  %s1012_s5 = scalar_lea.vmem %s5523_s13, %s4732_s26  ;;  %s5532_s13 = smov 48  }
 0x101   : > { %v1013_v13 = vld [vmem:[%s1012_s5] sm:$0x1]  ;;  %s5429_s5 = smov 104   ;;  %s5540_s26 = smov 120  }
 0x102   : > { %vm1014_vm2 = vcmp.gt.f32.partialorder %v1013_v13, 0.5  ;;  %v1021_v13 = vld [vmem:[%s5509_s21 + $0x8] sm:$0xff] }
 0x103   : > { %v1103_v15 = vsel %vm1014_vm2, 1, %v4500_v14  ;;  %v1020_v14 = vld [vmem:[%s5509_s21] sm:$0xff] }
 0x104   : > { %v1104_v16 = vperm.slane %v1103_v15, 0 }
 0x106   : > { %vm4768_vm3 = vcmp.eq.s32.totalorder %v1104_v16, 1 }
 0x108   : > { %1212 = vrot.lane.b32.xlu2 %v4743_v5, %s5421_s16  ;;  %s5423_s16 = smov 40  }
 0x142   : > { %v1148_v6 = vpop.permute.xlu2 %1147 }
 0x14a   : > { %v1146_v7 = vpop.permute.xlu2 %1145 }
 0x152   : > { %v1215_v8 = vpop.permute.xlu2 %1214 }
 0x15a   : > { %v1282_v9 = vpop.permute.xlu2 %1281  ;;  %v1120_v10 = vpop.permute.xlu1 %1119 }
 0x15b   : > { %v1077_v11 = vpop.permute.xlu0 %1076  ;;  %1140 = vmatpush.msra.mxu2 %v1120_v10  ;;  %3971 = vmatpush.xpose.msk.msrb.mxu0 %vm1078_vm1, %v1282_v9 }
 0x15c   : > { %3962 = vmatpush.xpose.msk.msra.mxu1 %vm1078_vm1, %v1077_v11  ;;  %v1023_v11 = vld [vmem:[%s5509_s21 + $0x18] sm:$0xff] }
 0x15d   : > { %3965 = vmatpush.xpose.msk.msrb.mxu2 %vm1078_vm1, %v1148_v6 }
 0x15f   : > { %3963 = vmatmul.msk.f32.vlgmr.msra.gmra.mxu1 %vm1078_vm1, %v4743_v5 }
 0x160   : > { %3968 = vmatpush.xpose.msk.msrb.mxu1 %vm1078_vm1, %v1215_v8 }
 0x162   : > { %v1213_v12 = vpop.permute.xlu2 %1212 }
 0x164   : > { %1381 = vmatpush.msra.mxu1 %v1023_v11 }
 0x167   : > { %3969 = vmatmul.msk.f32.vlgmr.msrb.gmra.mxu1 %vm1078_vm1, %v1213_v12  ;;  %v1022_v12 = vld [vmem:[%s5509_s21 + $0x10] sm:$0xff] }
 0x168   : > { %1382 = vmatpush.msra.mxu1 %v1022_v12 }
 0x16a   : > { %1383 = vmatpush.msra.mxu1 %v1021_v13 }
 0x16c   : > { %1384 = vmatpush.msra.mxu1 %v1020_v14  ;;  %v4248_v14 = vld [vmem:[%s5505_s6] ss:$0 sm:$0xff] }
 0x1dc   : > { %v1100_v18 = vpop.f32.mrf.mxu1 }
 0x1dd   : > { %v1106_v19 = vsel %vm4768_vm3, %v1100_v18, -1e+20 }
 0x1de   : > { %v1107_v20 = vmul.f32 0.35355338, %v1106_v19 }
 0x1e0   : > { %v1108_v21 = vsel %vm1078_vm1, %v1107_v20, -inf }
 0x1e1   : > { %1109 = vmax.xlane.f32.xlu0 %v1108_v21 }
 0x1e4   : > { %v1237_v27 = vpop.f32.mrf.mxu1 }
 0x1e5   : > { %v1240_v28 = vsel %vm4768_vm3, %v1237_v27, -1e+20  ;;  %v4508_v27 = vmov 32.0  }
 0x1e6   : > { %v1241_v29 = vmul.f32 0.35355338, %v1240_v28 }
 0x1e8   : > { %v1242_v30 = vsel %vm1078_vm1, %v1241_v29, -inf }
 0x254   : > { %v1110_v22 = vpop.xlane.xlu0 %1109 }
 0x255   : > { %v1111_v23 = vsub.f32 %v1107_v20, %v1110_v22  ;;  %v4244_v22 = vld [vmem:[%s5504_s25] ss:$0 sm:$0xff] }
 0x257   : > { %v1112_v24 = vmul.f32 1.442695, %v1111_v23 }
 0x259   : > { %4279 = vpow2.f32 %v1112_v24 }
 0x25f   : > { %v4280_v25 = vpop.eup %4279 }
 0x260   : > { %v1114_v26 = vsel %vm1078_vm1, %v4280_v25, 0.0 }
 0x261   : > { %1115 = vadd.xlane.f32.xlu1 %v1114_v26 }
 0x27a   : > { %1279 = vrot.lane.b32.xlu1 %v4743_v5, %s5429_s5  ;;  %s5433_s5 = smov 24  }
 0x2a4   : > { %1243 = vmax.xlane.f32.xlu1 %v1242_v30 }
 0x2bd   : > { %1320 = vrot.lane.b32.xlu1 %v4743_v5, %s5423_s16  ;;  %s5425_s16 = smov 56  }
 0x2d4   : > { %v1116_v31 = vpop.xlane.xlu1 %1115 }
 0x2d5   : > { %4281 = vrcp.f32 %v1116_v31 }
 0x2db   : > { %v4282_v32 = vpop.eup %4281 }
 0x2dc   : > { %v1118_v33 = vmul.f32 %v4282_v32, %v4280_v25 }
 0x2de   : > { %3964 = vmatmul.msk.f32.vlgmr.msra.gmra.mxu2 %vm1078_vm1, %v1118_v33 }
 0x2e6   : > { %3966 = vmatmul.msk.f32.vlgmr.msrb.gmra.mxu2 %vm1078_vm1, %v1146_v7 }
 0x2ec   : > { %v1280_v34 = vpop.permute.xlu1 %1279 }
 0x2ed   : > { %3972 = vmatmul.msk.f32.vlgmr.msrb.gmra.mxu0 %vm1078_vm1, %v1280_v34 }
 0x317   : > { %v1244_v36 = vpop.xlane.xlu1 %1243 }
 0x318   : > { %v1245_v37 = vsub.f32 %v1241_v29, %v1244_v36 }
 0x31a   : > { %v1246_v38 = vmul.f32 1.442695, %v1245_v37 }
 0x31c   : > { %4283 = vpow2.f32 %v1246_v38  ;;  %v1032_v38 = vld [vmem:[%s5507_s19 + $0x18] sm:$0xff] }
 0x31d   : > { %1445 = vmatpush.msrb.mxu1 %v1032_v38  ;;  %v4249_v38 = vld [vmem:[%s5503_s8] ss:$0 sm:$0xff] }
 0x322   : > { %v4284_v47 = vpop.eup %4283 }
 0x323   : > { %v1248_v48 = vsel %vm1078_vm1, %v4284_v47, 0.0 }
 0x32f   : > { %v1321_v56 = vpop.permute.xlu1 %1320 }
 0x361   : > { %v4786_v35 = vpop.f32.mrf.mxu2 }
 0x369   : > { %v1170_v39 = vpop.f32.mrf.mxu2 }
 0x36a   : > { %v1173_v40 = vsel %vm4768_vm3, %v1170_v39, -1e+20  ;;  %v1304_v41 = vpop.f32.mrf.mxu0  ;;  %v1031_v39 = vld [vmem:[%s5507_s19 + $0x10] sm:$0xff] }
 0x36b   : > { %v1174_v42 = vmul.f32 0.35355338, %v1173_v40  ;;  %v1307_v43 = vsel %vm4768_vm3, %v1304_v41, -1e+20  ;;  %1446 = vmatpush.msrb.mxu1 %v1031_v39  ;;  %v1030_v40 = vld [vmem:[%s5507_s19 + $0x8] sm:$0xff]  ;;  %v1029_v41 = vld [vmem:[%s5507_s19] sm:$0xff] }
 0x36c   : > { %v1308_v44 = vmul.f32 0.35355338, %v1307_v43  ;;  %v1048_v43 = vld [vmem:[%s5500_s30 + $0x70] sm:$0xff] }
 0x36d   : > { %v1175_v45 = vsel %vm1078_vm1, %v1174_v42, -inf  ;;  %1447 = vmatpush.msrb.mxu1 %v1030_v40 }
 0x36e   : > { %1176 = vmax.xlane.f32.xlu2 %v1175_v45  ;;  %v1309_v46 = vsel %vm1078_vm1, %v1308_v44, -inf }
 0x36f   : > { %1310 = vmax.xlane.f32.xlu0 %v1309_v46  ;;  %1448 = vmatpush.msrb.mxu1 %v1029_v41  ;;  %v4250_v41 = vld [vmem:[%s5502_s14] ss:$0 sm:$0xff] }
 0x377   : > { %1249 = vadd.xlane.f32.xlu0 %v1248_v48 }
 0x386   : > { %1186 = vrot.lane.b32.xlu2 %v4743_v5, %s5425_s16  ;;  %s5427_s16 = smov 48  }
 0x3e1   : > { %v1177_v49 = vpop.xlane.xlu2 %1176 }
 0x3e2   : > { %v1311_v50 = vpop.xlane.xlu0 %1310  ;;  %v1178_v52 = vsub.f32 %v1174_v42, %v1177_v49  ;;  %v1049_v42 = vld [vmem:[%s5500_s30 + $0x78] sm:$0xff] }
 0x3e3   : > { %v1312_v51 = vsub.f32 %v1308_v44, %v1311_v50  ;;  %1457 = vmatpush.msra.mxu0 %v1049_v42  ;;  %v1047_v44 = vld [vmem:[%s5500_s30 + $0x68] sm:$0xff]  ;;  %v1045_v49 = vld [vmem:[%s5500_s30 + $0x58] sm:$0xff]  ;;  %v1044_v50 = vld [vmem:[%s5500_s30 + $0x50] sm:$0xff] }
 0x3e4   : > { %v1179_v54 = vmul.f32 1.442695, %v1178_v52  ;;  %v1042_v52 = vld [vmem:[%s5500_s30 + $0x40] sm:$0xff] }
 0x3e5   : > { %v1313_v53 = vmul.f32 1.442695, %v1312_v51  ;;  %1458 = vmatpush.msra.mxu0 %v1048_v43  ;;  %v1043_v51 = vld [vmem:[%s5500_s30 + $0x48] sm:$0xff] }
 0x3e7   : > { %4285 = vpow2.f32 %v1313_v53  ;;  %1459 = vmatpush.msra.mxu0 %v1047_v44 }
 0x3e8   : > { %4287 = vpow2.f32 %v1179_v54  ;;  %v1041_v54 = vld [vmem:[%s5500_s30 + $0x38] sm:$0xff] }
 0x3e9   : > { %v1187_v55 = vpop.permute.xlu2 %1186 }
 0x3ea   : > { %1207 = vmatpush.msra.mxu2 %v1187_v55  ;;  %v1250_v61 = vpop.xlane.xlu0 %1249 }
 0x3ec   : > { %1341 = vmatpush.msrb.mxu2 %v1321_v56  ;;  %v1040_v56 = vld [vmem:[%s5500_s30 + $0x30] sm:$0xff] }
 0x3ed   : > { %v4286_v57 = vpop.eup %4285 }
 0x3ee   : > { %v1315_v58 = vsel %vm1078_vm1, %v4286_v57, 0.0  ;;  %v4288_v59 = vpop.eup %4287 }
 0x3ef   : > { %1316 = vadd.xlane.f32.xlu0 %v1315_v58  ;;  %v1181_v60 = vsel %vm1078_vm1, %v4288_v59, 0.0  ;;  %v1039_v58 = vld [vmem:[%s5500_s30 + $0x28] sm:$0xff] }
 0x3f7   : > { %1182 = vadd.xlane.f32.xlu0 %v1181_v60  ;;  %v1038_v60 = vld [vmem:[%s5500_s30 + $0x20] sm:$0xff] }
 0x40b   : > { %1253 = vrot.lane.b32.xlu0 %v4743_v5, %s5427_s16  ;;  %s5443_s16 = smov 8  }
 0x462   : > { %v1317_v62 = vpop.xlane.xlu0 %1316 }
 0x46a   : > { %v1183_v63 = vpop.xlane.xlu0 %1182 }
 0x46b   : > { %4289 = vrcp.f32 %v1183_v63 }
 0x46c   : > { %4291 = vrcp.f32 %v1317_v62  ;;  %v1037_v62 = vld [vmem:[%s5500_s30 + $0x18] sm:$0xff] }
 0x46d   : > { %4293 = vrcp.f32 %v1250_v61 }
 0x46e   : > { %4295 = vrcp.f32 %v4508_v27  ;;  %v3977_v27 = vld [vmem:[%s5510_s17 + $0x28] sm:$0xff] }
 0x471   : > { %v4290_v0 = vpop.eup %4289 }
 0x472   : > { %v1185_v1 = vmul.f32 %v4290_v0, %v4288_v59  ;;  %v4292_v2 = vpop.eup %4291  ;;  %v4245_v0 = vld [vmem:[%s5501_s29] ss:$0 sm:$0xff] }
 0x473   : > { %v4294_v3 = vpop.eup %4293  ;;  %v1319_v6 = vmul.f32 %v4292_v2, %v4286_v57 }
 0x474   : > { %3967 = vmatmul.msk.f32.vlgmr.msra.gmra.mxu2 %vm1078_vm1, %v1185_v1  ;;  %v1252_v5 = vmul.f32 %v4294_v3, %v4284_v47  ;;  %v4296_v28 = vpop.eup %4295  ;;  %v1046_v47 = vld [vmem:[%s5500_s30 + $0x60] sm:$0xff] }
 0x475   : > { %v1394_v29 = vmul.f32 32.0, %v4296_v28  ;;  %vm1398_vm6 = vweird.f32 %v4296_v28  ;;  %1460 = vmatpush.msra.mxu0 %v1046_v47  ;;  %v4246_v3 = vld [vmem:[%s5508_s3] ss:$0 sm:$0xff] }
 0x477   : > { %v1395_v30 = vsub.f32 1.0, %v1394_v29  ;;  %1461 = vmatpush.msra.mxu0 %v1045_v49 }
 0x479   : > { %v1396_v31 = vmul.f32 %v4296_v28, %v1395_v30  ;;  %1462 = vmatpush.msra.mxu0 %v1044_v50 }
 0x47b   : > { %v1397_v32 = vadd.f32 %v4296_v28, %v1396_v31  ;;  %1463 = vmatpush.msra.mxu0 %v1043_v51 }
 0x47c   : > { %3973 = vmatmul.msk.f32.vlgmr.msrb.gmra.mxu2 %vm1078_vm1, %v1319_v6 }
 0x47d   : > { %v1254_v7 = vpop.permute.xlu0 %1253  ;;  %v4819_v33 = vsel %vm1398_vm6, %v4296_v28, %v1397_v32  ;;  %1464 = vmatpush.msra.mxu0 %v1042_v52  ;;  %v3976_v28 = vld [vmem:[%s5510_s17 + $0x20] sm:$0xff] }
 0x47e   : > { %1274 = vmatpush.msra.mxu3 %v1254_v7 }
 0x47f   : > { %3970 = vmatmul.msk.f32.vlgmr.msra.gmra.mxu3 %vm1078_vm1, %v1252_v5  ;;  %1465 = vmatpush.msra.mxu0 %v1041_v54  ;;  %v1036_v5 = vld [vmem:[%s5500_s30 + $0x10] sm:$0xff] }
 0x481   : > { %1466 = vmatpush.msra.mxu0 %v1040_v56 }
 0x483   : > { %1467 = vmatpush.msra.mxu0 %v1039_v58 }
 0x485   : > { %1468 = vmatpush.msra.mxu0 %v1038_v60 }
 0x487   : > { %1469 = vmatpush.msra.mxu0 %v1037_v62 }
 0x489   : > { %1470 = vmatpush.msra.mxu0 %v1036_v5 }
 0x4f7   : > { %v1209_v8 = vpop.f32.mrf.mxu2 }
 0x4f8   : > { %1347 = vrot.lane.b32.xlu0 %v1209_v8, %s5443_s16  ;;  %v1035_v8 = vld [vmem:[%s5500_s30 + $0x8] sm:$0xff]  ;;  %s5531_s16 = smov 56  }
 0x4f9   : > { %1471 = vmatpush.msra.mxu0 %v1035_v8 }
 0x4ff   : > { %v1343_v9 = vpop.f32.mrf.mxu2 }
 0x500   : > { %1355 = vrot.lane.b32.xlu1 %v1343_v9, %s5433_s5  ;;  %v1034_v9 = vld [vmem:[%s5500_s30] sm:$0xff]  ;;  %s5526_s5 = smov 88  }
 0x501   : > { %1472 = vmatpush.msra.mxu0 %v1034_v9 }
 0x502   : > { %v1276_v10 = vpop.f32.mrf.mxu3 }
 0x503   : > { %1351 = vrot.lane.b32.xlu2 %v1276_v10, %s5439_s18  ;;  %v4247_v10 = vld [vmem:[%s5506_s24] ss:$0 sm:$0xff]  ;;  %s5529_s18 = smov 72  }
 0x55d   : > { %v1352_v18 = vpop.permute.xlu2 %1351 }
 0x56a   : > { %v1348_v15 = vpop.permute.xlu0 %1347 }
 0x56b   : > { %v1358_v16 = vsel %vm1078_vm1, %v4786_v35, %v1348_v15 }
 0x56c   : > { %v1360_v19 = vsel %vm1359_vm4, %v1358_v16, %v1352_v18 }
 0x572   : > { %v1356_v20 = vpop.permute.xlu1 %1355 }
 0x573   : > { %v1362_v21 = vsel %vm1361_vm5, %v1360_v19, %v1356_v20 }
 0x574   : > { %3974 = vmatmul.msk.f32.vlgmr.msra.gmra.mxu1 %vm1051_vm0, %v1362_v21 }
 0x5f1   : > { %v1386_v23 = vpop.f32.mrf.mxu1 }
 0x5f2   : > { %v1387_v24 = vadd.f32 %v4244_v22, %v1386_v23 }
 0x5f4   : > { %v1389_v25 = vadd.f32 %v1387_v24, %v4739_v4 }
 0x5f6   : > { %v1390_v26 = vsel %vm1051_vm0, %v1389_v25, 0.0 }
 0x5f7   : > { %1391 = vadd.xlane.f32.xlu0 %v1390_v26  ;;  %v3978_v26 = vld [vmem:[%s5510_s17 + $0x30] sm:$0xff] }
 0x66a   : > { %v1392_v4 = vpop.xlane.xlu0 %1391 }
 0x66b   : > { %v1400_v34 = vmul.f32 %v4819_v33, %v1392_v4 }
 0x66d   : > { %v1401_v35 = vsub.f32 %v1389_v25, %v1400_v34  ;;  %v3979_v25 = vld [vmem:[%s5510_s17 + $0x38] sm:$0xff]  ;;  %s5533_s17 = sld [smem:[#allocation6_spill]] }
 0x66e   : > { %1569 = vmatpush.msra.mxu2 %v3979_v25 }
 0x66f   : > { %v1402_v36 = vmul.f32 %v1401_v35, %v1401_v35 }
 0x670   : > { %1570 = vmatpush.msra.mxu2 %v3978_v26 }
 0x671   : > { %v1403_v37 = vsel %vm1051_vm0, %v1402_v36, 0.0 }
 0x672   : > { %1404 = vadd.xlane.f32.xlu2 %v1403_v37  ;;  %1571 = vmatpush.msra.mxu2 %v3977_v27 }
 0x673   : > { %s1009_s7 = scalar_lea.vmem %s5533_s17, %s5536_s28  ;;  %s5537_s17 = smov 96  }
 0x674   : > { %1572 = vmatpush.msra.mxu2 %v3976_v28  ;;  %s5538_s28 = smov 16  }
 0x6e5   : > { %v1405_v45 = vpop.xlane.xlu2 %1404 }
 0x6e6   : > { %v1406_v46 = vmul.f32 %v1405_v45, %v4819_v33 }
 0x6e8   : > { %v1407_v48 = vadd.f32 1e-05, %v1406_v46 }
 0x6ea   : > { %4297 = vrsqrt.f32 %v1407_v48  ;;  %vm1414_vm8 = vweird.f32 %v1407_v48 }
 0x6f0   : > { %v4298_v53 = vpop.eup %4297 }
 0x6f1   : > { %v1409_v55 = vmul.f32 %v4298_v53, %v1407_v48  ;;  %vm1415_vm7 = vweird.f32 %v4298_v53 }
 0x6f2   : > { %vm1416_vm9 = vmor %vm1414_vm8, %vm1415_vm7 }
 0x6f3   : > { %v1410_v57 = vmul.f32 %v4298_v53, %v1409_v55 }
 0x6f5   : > { %v1411_v59 = vmul.f32 0.5, %v1410_v57 }
 0x6f7   : > { %v1412_v61 = vsub.f32 1.5, %v1411_v59 }
 0x6f9   : > { %v1413_v63 = vmul.f32 %v4298_v53, %v1412_v61 }
 0x6fb   : > { %v1417_v1 = vsel %vm1416_vm9, %v4298_v53, %v1413_v63 }
 0x6fc   : > { %v1418_v2 = vmul.f32 %v1417_v1, %v1401_v35 }
 0x6fe   : > { %v1422_v6 = vmul.f32 %v4245_v0, %v1418_v2 }
 0x700   : > { %v1426_v7 = vadd.f32 %v4246_v3, %v1422_v6 }
 0x702   : > { %3975 = vmatmul.msk.f32.vlgmr.msrb.gmra.mxu1 %vm1051_vm0, %v1426_v7 }
 0x77f   : > { %v1450_v11 = vpop.f32.mrf.mxu1 }
 0x780   : > { %v1451_v12 = vadd.f32 %v4247_v10, %v1450_v11 }
 0x782   : > { %v1453_v13 = vmax.f32 %v1451_v12, 0.0 }
 0x784   : > { %1473 = vmatmul.f32.vlgmr.msra.gmra.mxu0 %v1453_v13 }
 0x801   : > { %v1474_v15 = vpop.f32.mrf.mxu0 }
 0x802   : > { %v1475_v16 = vadd.f32 %v4248_v14, %v1474_v15 }
 0x804   : > { %v1477_v18 = vadd.f32 %v1475_v16, %v1426_v7 }
 0x806   : > { %v1478_v19 = vsel %vm1051_vm0, %v1477_v18, 0.0 }
 0x807   : > { %1479 = vadd.xlane.f32.xlu1 %v1478_v19 }
 0x87a   : > { %v1480_v20 = vpop.xlane.xlu1 %1479 }
 0x87b   : > { %v1481_v21 = vmul.f32 %v1480_v20, %v4819_v33 }
 0x87d   : > { %v1482_v22 = vsub.f32 %v1477_v18, %v1481_v21 }
 0x87f   : > { %v1483_v23 = vmul.f32 %v1482_v22, %v1482_v22 }
 0x881   : > { %v1484_v24 = vsel %vm1051_vm0, %v1483_v23, 0.0 }
 0x882   : > { %1485 = vadd.xlane.f32.xlu0 %v1484_v24 }
 0x8f5   : > { %v1486_v29 = vpop.xlane.xlu0 %1485 }
 0x8f6   : > { %v1487_v30 = vmul.f32 %v1486_v29, %v4819_v33 }
 0x8f8   : > { %v1488_v31 = vadd.f32 1e-05, %v1487_v30 }
 0x8fa   : > { %4299 = vrsqrt.f32 %v1488_v31  ;;  %vm1495_vm11 = vweird.f32 %v1488_v31 }
 0x900   : > { %v4300_v32 = vpop.eup %4299 }
 0x901   : > { %v1490_v4 = vmul.f32 %v4300_v32, %v1488_v31  ;;  %vm1496_vm10 = vweird.f32 %v4300_v32 }
 0x902   : > { %vm1497_vm12 = vmor %vm1495_vm11, %vm1496_vm10 }
 0x903   : > { %v1491_v34 = vmul.f32 %v4300_v32, %v1490_v4 }
 0x905   : > { %v1492_v35 = vmul.f32 0.5, %v1491_v34 }
 0x907   : > { %v1493_v36 = vsub.f32 1.5, %v1492_v35 }
 0x909   : > { %v1494_v37 = vmul.f32 %v4300_v32, %v1493_v36 }
 0x90b   : > { %v1498_v39 = vsel %vm1497_vm12, %v4300_v32, %v1494_v37  ;;  %v2006_v37 = vld [vmem:[%s4587_s12 + $0x18] sm:$0xff] }
 0x90c   : > { %v1499_v40 = vmul.f32 %v1498_v39, %v1482_v22  ;;  %2027 = vmatpush.msrb.mxu0 %v2006_v37  ;;  %v2004_v39 = vld [vmem:[%s4587_s12 + $0x8] sm:$0xff]  ;;  %v3992_v37 = vld [vmem:[%s5507_s19 + $0x38] sm:$0xff] }
 0x90e   : > { %v1503_v42 = vmul.f32 %v4249_v38, %v1499_v40  ;;  %v2005_v38 = vld [vmem:[%s4587_s12 + $0x10] sm:$0xff]  ;;  %v2003_v40 = vld [vmem:[%s4587_s12] sm:$0xff] }
 0x90f   : > { %2028 = vmatpush.msrb.mxu0 %v2005_v38  ;;  %v3991_v38 = vld [vmem:[%s5507_s19 + $0x30] sm:$0xff] }
 0x910   : > { %v4859_v43 = vadd.f32 %v4250_v41, %v1503_v42  ;;  %v4924_v41 = vld [vmem:[%s1009_s7] sm:$0xff]  ;;  %s5539_s7 = smov 24  }
 0x911   : > { %2029 = vmatpush.msrb.mxu0 %v2004_v39  ;;  %v3990_v39 = vld [vmem:[%s5507_s19 + $0x28] sm:$0xff] }
 0x912   : > { %4011 = vmatmul.msk.f32.vlgmr.msra.gmra.mxu2 %vm1051_vm0, %v4859_v43 }
 0x913   : > { %2030 = vmatpush.msrb.mxu0 %v2003_v40  ;;  %v3989_v40 = vld [vmem:[%s5507_s19 + $0x20] sm:$0xff]  ;;  %s5545_s19 = sld [smem:[#allocation20_spill]] }
 0x914   : > { %4026 = vmatmul.msk.f32.vlgmr.msrb.gmra.mxu0 %vm1051_vm0, %v4924_v41 }
 0x995   : > { %v4863_v44 = vpop.f32.mrf.mxu2 }
 0x996   : > { %1643 = vrot.lane.b32.xlu0 %v4863_v44, %s5437_s15  ;;  %1645 = vrot.lane.b32.xlu1 %v4863_v44, %s5526_s5  ;;  %s5528_s15 = smov 112  }
 0x997   : > { %1578 = vrot.lane.b32.xlu2 %v4863_v44, %s5441_s2  ;;  %s5530_s2 = smov 104  }
 0x99e   : > { %1712 = vrot.lane.b32.xlu1 %v4863_v44, %s5435_s10  ;;  %s5527_s10 = smov 64  }
 0x9f1   : > { %v1579_v45 = vpop.permute.xlu2 %1578 }
 0x9f2   : > { %4012 = vmatpush.xpose.msk.msra.mxu1 %vm1078_vm1, %v1579_v45 }
 0x9f5   : > { %4013 = vmatmul.msk.f32.vlgmr.msra.gmra.mxu1 %vm1078_vm1, %v4863_v44 }
 0xa08   : > { %v1646_v46 = vpop.permute.xlu1 %1645  ;;  %v1644_v47 = vpop.permute.xlu0 %1643 }
 0xa09   : > { %4015 = vmatpush.xpose.msk.msrb.mxu2 %vm1078_vm1, %v1646_v46 }
 0xa0c   : > { %4016 = vmatmul.msk.f32.vlgmr.msrb.gmra.mxu2 %vm1078_vm1, %v1644_v47 }
 0xa10   : > { %v1713_v3 = vpop.permute.xlu1 %1712 }
 0xa72   : > { %v1601_v48 = vpop.f32.mrf.mxu1 }
 0xa73   : > { %v1604_v49 = vsel %vm4768_vm3, %v1601_v48, -1e+20 }
 0xa74   : > { %v1605_v50 = vmul.f32 0.35355338, %v1604_v49 }
 0xa76   : > { %v1606_v51 = vsel %vm1078_vm1, %v1605_v50, -inf }
 0xa77   : > { %1607 = vmax.xlane.f32.xlu2 %v1606_v51 }
 0xa8f   : > { %v1668_v52 = vpop.f32.mrf.mxu2 }
 0xa90   : > { %v1671_v53 = vsel %vm4768_vm3, %v1668_v52, -1e+20  ;;  %v3983_v52 = vld [vmem:[%s5509_s21 + $0x38] sm:$0xff] }
 0xa91   : > { %v1672_v54 = vmul.f32 0.35355338, %v1671_v53  ;;  %v3982_v53 = vld [vmem:[%s5509_s21 + $0x30] sm:$0xff] }
 0xa93   : > { %v1673_v55 = vsel %vm1078_vm1, %v1672_v54, -inf }
 0xa94   : > { %1674 = vmax.xlane.f32.xlu0 %v1673_v55 }
 0xaa8   : > { %1617 = vrot.lane.b32.xlu0 %v4863_v44, %s5527_s10 }
 0xab0   : > { %1710 = vrot.lane.b32.xlu0 %v4863_v44, %s5528_s15 }
 0xab8   : > { %1779 = vrot.lane.b32.xlu0 %v4863_v44, %s5529_s18 }
 0xaea   : > { %v1608_v56 = vpop.xlane.xlu2 %1607 }
 0xaeb   : > { %v1609_v57 = vsub.f32 %v1605_v50, %v1608_v56  ;;  %v4930_v50 = vpop.f32.mrf.mxu0  ;;  %v3980_v56 = vld [vmem:[%s5509_s21 + $0x20] sm:$0xff] }
 0xaed   : > { %v1610_v58 = vmul.f32 1.442695, %v1609_v57 }
 0xaef   : > { %4301 = vpow2.f32 %v1610_v58 }
 0xaf5   : > { %v4302_v59 = vpop.eup %4301 }
 0xaf6   : > { %v1612_v60 = vsel %vm1078_vm1, %v4302_v59, 0.0 }
 0xaf7   : > { %1613 = vadd.xlane.f32.xlu1 %v1612_v60 }
 0xb07   : > { %v1675_v61 = vpop.xlane.xlu0 %1674 }
 0xb08   : > { %v1676_v62 = vsub.f32 %v1672_v54, %v1675_v61  ;;  %v3981_v54 = vld [vmem:[%s5509_s21 + $0x28] sm:$0xff]  ;;  %s5543_s21 = smov 80  }
 0xb0a   : > { %v1677_v63 = vmul.f32 1.442695, %v1676_v62 }
 0xb0c   : > { %4303 = vpow2.f32 %v1677_v63 }
 0xb10   : > { %1777 = vrot.lane.b32.xlu1 %v4863_v44, %s5530_s2 }
 0xb12   : > { %v4304_v0 = vpop.eup %4303 }
 0xb13   : > { %v1679_v1 = vsel %vm1078_vm1, %v4304_v0, 0.0 }
 0xb14   : > { %1680 = vadd.xlane.f32.xlu2 %v1679_v1 }
 0xb1a   : > { %v1618_v2 = vpop.permute.xlu0 %1617 }
 0xb1b   : > { %1638 = vmatpush.msrb.mxu3 %v1618_v2  ;;  %v1997_v2 = vlaneseq }
 0xb1d   : > { %4018 = vmatpush.xpose.msk.msra.mxu3 %vm1078_vm1, %v1713_v3  ;;  %v4251_v3 = vld [vmem:[%s5504_s25 + $0x1] ss:$0 sm:$0xff]  ;;  %s5548_s25 = sld [smem:[#allocation22_spill]] }
 0xb22   : > { %v1711_v8 = vpop.permute.xlu0 %1710 }
 0xb2a   : > { %v1780_v13 = vpop.permute.xlu0 %1779 }
 0xb2c   : > { %1684 = vrot.lane.b32.xlu2 %v4863_v44, %s5531_s16 }
 0xb6a   : > { %v1614_v6 = vpop.xlane.xlu1 %1613 }
 0xb6b   : > { %4305 = vrcp.f32 %v1614_v6  ;;  %v1998_v6 = vshrl.u32 %v1997_v2, 7 }
 0xb71   : > { %v4306_v7 = vpop.eup %4305 }
 0xb72   : > { %v1616_v5 = vmul.f32 %v4306_v7, %v4302_v59  ;;  %v2000_v7 = vand.u32 127, %v1997_v2  ;;  %v4253_v2 = vld [vmem:[%s5508_s3 + $0x1] ss:$0 sm:$0xff]  ;;  %s5544_s3 = sld [smem:[#allocation19_spill]] }
 0xb74   : > { %4014 = vmatmul.msk.f32.vlgmr.msrb.gmra.mxu3 %vm1078_vm1, %v1616_v5  ;;  %vm4955_vm13 = vcmp.le.s32.totalorder %v2000_v7, %v1998_v6  ;;  %v4002_v7 = vld [vmem:[%s5500_s30 + $0xc0] sm:$0xff] }
 0xb7c   : > { %4019 = vmatmul.msk.f32.vlgmr.msra.gmra.mxu3 %vm1078_vm1, %v1711_v8 }
 0xb82   : > { %v1778_v14 = vpop.permute.xlu1 %1777 }
 0xb87   : > { %v1681_v9 = vpop.xlane.xlu2 %1680 }
 0xb88   : > { %4307 = vrcp.f32 %v1681_v9 }
 0xb8e   : > { %v4308_v10 = vpop.eup %4307 }
 0xb8f   : > { %v1683_v11 = vmul.f32 %v4308_v10, %v4304_v0  ;;  %v1685_v12 = vpop.permute.xlu2 %1684 }
 0xb90   : > { %1705 = vmatpush.msrb.mxu1 %v1685_v12 }
 0xb91   : > { %4017 = vmatmul.msk.f32.vlgmr.msrb.gmra.mxu1 %vm1078_vm1, %v1683_v11 }
 0xb92   : > { %4021 = vmatpush.xpose.msk.msra.mxu1 %vm1078_vm1, %v1780_v13 }
 0xb96   : > { %1934 = vmatpush.msrb.mxu1 %v3992_v37 }
 0xb98   : > { %1935 = vmatpush.msrb.mxu1 %v3991_v38 }
 0xb99   : > { %4022 = vmatmul.msk.f32.vlgmr.msra.gmra.mxu1 %vm1078_vm1, %v1778_v14 }
 0xb9a   : > { %1936 = vmatpush.msrb.mxu1 %v3990_v39 }
 0xb9c   : > { %1937 = vmatpush.msrb.mxu1 %v3989_v40 }
 0xbf7   : > { %v4902_v15 = vpop.f32.mrf.mxu3 }
 0xbff   : > { %v1735_v16 = vpop.f32.mrf.mxu3 }
 0xc00   : > { %v1738_v18 = vsel %vm4768_vm3, %v1735_v16, -1e+20 }
 0xc01   : > { %v1739_v19 = vmul.f32 0.35355338, %v1738_v18 }
 0xc03   : > { %v1740_v20 = vsel %vm1078_vm1, %v1739_v19, -inf }
 0xc04   : > { %1741 = vmax.xlane.f32.xlu2 %v1740_v20 }
 0xc0e   : > { %v1707_v21 = vpop.f32.mrf.mxu1 }
 0xc16   : > { %v1802_v22 = vpop.f32.mrf.mxu1 }
 0xc17   : > { %v1805_v23 = vsel %vm4768_vm3, %v1802_v22, -1e+20 }
 0xc18   : > { %v1806_v24 = vmul.f32 0.35355338, %v1805_v23 }
 0xc1a   : > { %v1807_v25 = vsel %vm1078_vm1, %v1806_v24, -inf }
 0xc1b   : > { %1808 = vmax.xlane.f32.xlu0 %v1807_v25 }
 0xc2f   : > { %1751 = vrot.lane.b32.xlu0 %v4863_v44, %s5532_s13 }
 0xc77   : > { %v1742_v26 = vpop.xlane.xlu2 %1741 }
 0xc78   : > { %v1743_v27 = vsub.f32 %v1739_v19, %v1742_v26 }
 0xc7a   : > { %v1744_v28 = vmul.f32 1.442695, %v1743_v27 }
 0xc7c   : > { %4309 = vpow2.f32 %v1744_v28 }
 0xc82   : > { %v4310_v29 = vpop.eup %4309 }
 0xc83   : > { %v1746_v30 = vsel %vm1078_vm1, %v4310_v29, 0.0 }
 0xc84   : > { %1747 = vadd.xlane.f32.xlu1 %v1746_v30 }
 0xc8e   : > { %v1809_v31 = vpop.xlane.xlu0 %1808 }
 0xc8f   : > { %v1810_v32 = vsub.f32 %v1806_v24, %v1809_v31 }
 0xc91   : > { %v1811_v4 = vmul.f32 1.442695, %v1810_v32 }
 0xc93   : > { %4311 = vpow2.f32 %v1811_v4 }
 0xc99   : > { %v4312_v34 = vpop.eup %4311 }
 0xc9a   : > { %v1813_v35 = vsel %vm1078_vm1, %v4312_v34, 0.0 }
 0xc9b   : > { %1814 = vadd.xlane.f32.xlu2 %v1813_v35 }
 0xc9d   : > { %1818 = vrot.lane.b32.xlu1 %v4863_v44, %s5534_s11 }
 0xca1   : > { %v1752_v36 = vpop.permute.xlu0 %1751 }
 0xca2   : > { %1772 = vmatpush.msra.mxu2 %v1752_v36 }
 0xca4   : > { %1877 = vmatpush.msrb.mxu2 %v3983_v52 }
 0xca5   : > { %2036 = vrot.lane.b32.xlu1 %v4930_v50, %s5537_s17 }
 0xca6   : > { %1878 = vmatpush.msrb.mxu2 %v3982_v53 }
 0xca8   : > { %1879 = vmatpush.msrb.mxu2 %v3981_v54 }
 0xcaa   : > { %1880 = vmatpush.msrb.mxu2 %v3980_v56 }
 0xcb3   : > { %1845 = vrot.lane.b32.xlu2 %v1707_v21, %s5535_s23 }
 0xcf7   : > { %v1748_v42 = vpop.xlane.xlu1 %1747 }
 0xcf8   : > { %4313 = vrcp.f32 %v1748_v42 }
 0xcfe   : > { %v4314_v44 = vpop.eup %4313 }
 0xcff   : > { %v1750_v45 = vmul.f32 %v4314_v44, %v4310_v29 }
 0xd01   : > { %4020 = vmatmul.msk.f32.vlgmr.msra.gmra.mxu2 %vm1078_vm1, %v1750_v45 }
 0xd0e   : > { %v1815_v46 = vpop.xlane.xlu2 %1814 }
 0xd0f   : > { %v1819_v47 = vpop.permute.xlu1 %1818  ;;  %4315 = vrcp.f32 %v1815_v46 }
 0xd10   : > { %1839 = vmatpush.msrb.mxu3 %v1819_v47 }
 0xd15   : > { %v4316_v48 = vpop.eup %4315 }
 0xd16   : > { %v1817_v49 = vmul.f32 %v4316_v48, %v4312_v34  ;;  %v1846_v58 = vpop.permute.xlu2 %1845 }
 0xd17   : > { %v2037_v57 = vpop.permute.xlu1 %2036  ;;  %v1856_v60 = vsel %vm1078_vm1, %v4902_v15, %v1846_v58 }
 0xd18   : > { %4023 = vmatmul.msk.f32.vlgmr.msrb.gmra.mxu3 %vm1078_vm1, %v1817_v49  ;;  %4027 = vmatpush.xpose.msk.msra.mxu2 %vm1078_vm1, %v2037_v57  ;;  %v4009_v49 = vld [vmem:[%s5500_s30 + $0xf8] sm:$0xff]  ;;  %v4006_v57 = vld [vmem:[%s5500_s30 + $0xe0] sm:$0xff] }
 0xd19   : > { %1946 = vmatpush.msra.mxu3 %v4009_v49 }
 0xd84   : > { %v1774_v51 = vpop.f32.mrf.mxu2 }
 0xd85   : > { %1849 = vrot.lane.b32.xlu0 %v1774_v51, %s5538_s28  ;;  %v4008_v51 = vld [vmem:[%s5500_s30 + $0xf0] sm:$0xff] }
 0xd86   : > { %1947 = vmatpush.msra.mxu3 %v4008_v51 }
 0xd8d   : > { %2103 = vrot.lane.b32.xlu0 %v4930_v50, %s5526_s5 }
 0xd9b   : > { %v1841_v55 = vpop.f32.mrf.mxu3 }
 0xd9c   : > { %1853 = vrot.lane.b32.xlu2 %v1841_v55, %s5539_s7  ;;  %v4007_v55 = vld [vmem:[%s5500_s30 + $0xe8] sm:$0xff] }
 0xd9d   : > { %1948 = vmatpush.msra.mxu3 %v4007_v55 }
 0xd9f   : > { %1949 = vmatpush.msra.mxu3 %v4006_v57 }
 0xda4   : > { %2101 = vrot.lane.b32.xlu2 %v4930_v50, %s5540_s26 }
 0xdf6   : > { %v1854_v59 = vpop.permute.xlu2 %1853 }
 0xdf7   : > { %v1850_v61 = vpop.permute.xlu0 %1849 }
 0xdf8   : > { %v1857_v62 = vsel %vm1359_vm4, %v1856_v60, %v1850_v61  ;;  %v4252_v61 = vld [vmem:[%s5501_s29 + $0x1] ss:$0 sm:$0xff]  ;;  %s5551_s29 = sld [smem:[#allocation30_spill]] }
 0xdf9   : > { %v1858_v63 = vsel %vm1361_vm5, %v1857_v62, %v1854_v59  ;;  %v4005_v59 = vld [vmem:[%s5500_s30 + $0xd8] sm:$0xff]  ;;  %v4004_v62 = vld [vmem:[%s5500_s30 + $0xd0] sm:$0xff] }
 0xdfa   : > { %4024 = vmatmul.msk.f32.vlgmr.msrb.gmra.mxu2 %vm1051_vm0, %v1858_v63  ;;  %1950 = vmatpush.msra.mxu3 %v4005_v59  ;;  %v2010_v59 = vld [vmem:[%s5544_s3 + $0x18] sm:$0xff] }
 0xdfc   : > { %1951 = vmatpush.msra.mxu3 %v4004_v62  ;;  %v4255_v62 = vld [vmem:[%s5505_s6 + $0x1] ss:$0 sm:$0xff]  ;;  %s5547_s6 = sld [smem:[#allocation21_spill]] }
 0xdfe   : > { %v2102_v1 = vpop.permute.xlu2 %2101 }
 0xdff   : > { %v2104_v0 = vpop.permute.xlu0 %2103 }
 0xe00   : > { %4030 = vmatpush.xpose.msk.msra.mxu0 %vm1078_vm1, %v2104_v0 }
 0xe02   : > { %4028 = vmatmul.msk.f32.vlgmr.msra.gmra.mxu2 %vm1078_vm1, %v4930_v50 }
 0xe03   : > { %4031 = vmatmul.msk.f32.vlgmr.msra.gmra.mxu0 %vm1078_vm1, %v2102_v1 }
 0xe7d   : > { %v1882_v5 = vpop.f32.mrf.mxu2 }
 0xe7e   : > { %v1883_v8 = vadd.f32 %v4251_v3, %v1882_v5  ;;  %v4003_v3 = vld [vmem:[%s5500_s30 + $0xc8] sm:$0xff] }
 0xe7f   : > { %1952 = vmatpush.msra.mxu3 %v4003_v3  ;;  %v2007_v3 = vld [vmem:[%s5544_s3] sm:$0xff] }
 0xe80   : > { %v2126_v10 = vpop.f32.mrf.mxu0  ;;  %v1885_v11 = vadd.f32 %v1883_v8, %v4859_v43 }
 0xe81   : > { %v2129_v12 = vsel %vm4955_vm13, %v2126_v10, -1e+20  ;;  %v4001_v10 = vld [vmem:[%s5500_s30 + $0xb8] sm:$0xff]  ;;  %1953 = vmatpush.msra.mxu3 %v4002_v7 }
 0xe82   : > { %v2130_v13 = vmul.f32 0.35355338, %v2129_v12  ;;  %v1886_v14 = vsel %vm1051_vm0, %v1885_v11, 0.0  ;;  %v4000_v12 = vld [vmem:[%s5500_s30 + $0xb0] sm:$0xff] }
 0xe83   : > { %1887 = vadd.xlane.f32.xlu1 %v1886_v14  ;;  %1954 = vmatpush.msra.mxu3 %v4001_v10 }
 0xe84   : > { %v2131_v15 = vsel %vm1078_vm1, %v2130_v13, -inf }
 0xe85   : > { %v2059_v16 = vpop.f32.mrf.mxu2  ;;  %2132 = vmax.xlane.f32.xlu0 %v2131_v15  ;;  %1955 = vmatpush.msra.mxu3 %v4000_v12 }
 0xe86   : > { %v2062_v18 = vsel %vm4955_vm13, %v2059_v16, -1e+20 }
 0xe87   : > { %v2063_v19 = vmul.f32 0.35355338, %v2062_v18 }
 0xe89   : > { %v2064_v20 = vsel %vm1078_vm1, %v2063_v19, -inf }
 0xe8a   : > { %2065 = vmax.xlane.f32.xlu2 %v2064_v20  ;;  %v3997_v20 = vld [vmem:[%s5500_s30 + $0x98] sm:$0xff] }
 0xe9c   : > { %2142 = vrot.lane.b32.xlu1 %v4930_v50, %s5531_s16 }
 0xea2   : > { %2237 = vrot.lane.b32.xlu2 %v4930_v50, %s5529_s18 }
 0xef6   : > { %v1888_v43 = vpop.xlane.xlu1 %1887 }
 0xef7   : > { %v1889_v21 = vmul.f32 %v1888_v43, %v4819_v33  ;;  %v3996_v43 = vld [vmem:[%s5500_s30 + $0x90] sm:$0xff] }
 0xef8   : > { %v2133_v22 = vpop.xlane.xlu0 %2132 }
 0xef9   : > { %v4972_v23 = vsub.f32 %v1885_v11, %v1889_v21  ;;  %v2134_v24 = vsub.f32 %v2130_v13, %v2133_v22  ;;  %v3999_v13 = vld [vmem:[%s5500_s30 + $0xa8] sm:$0xff]  ;;  %v3994_v22 = vld [vmem:[%s5500_s30 + $0x80] sm:$0xff] }
 0xefa   : > { %1956 = vmatpush.msra.mxu3 %v3999_v13  ;;  %v3995_v21 = vld [vmem:[%s5500_s30 + $0x88] sm:$0xff]  ;;  %v4256_v13 = vld [vmem:[%s5545_s19] ss:$0 sm:$0xff] }
 0xefb   : > { %v2135_v25 = vmul.f32 1.442695, %v2134_v24  ;;  %v1891_v26 = vmul.f32 %v4972_v23, %v4972_v23 }
 0xefd   : > { %4317 = vpow2.f32 %v2135_v25  ;;  %v2066_v27 = vpop.xlane.xlu2 %2065  ;;  %v1892_v28 = vsel %vm1051_vm0, %v1891_v26, 0.0 }
 0xefe   : > { %v2067_v29 = vsub.f32 %v2063_v19, %v2066_v27  ;;  %1893 = vadd.xlane.f32.xlu1 %v1892_v28  ;;  %v3998_v19 = vld [vmem:[%s5500_s30 + $0xa0] sm:$0xff]  ;;  %s5552_s30 = sld [smem:[#allocation32_spill]] }
 0xeff   : > { %1957 = vmatpush.msra.mxu3 %v3998_v19 }
 0xf00   : > { %v2068_v30 = vmul.f32 1.442695, %v2067_v29 }
 0xf01   : > { %1958 = vmatpush.msra.mxu3 %v3997_v20 }
 0xf02   : > { %4319 = vpow2.f32 %v2068_v30 }
 0xf03   : > { %v4318_v31 = vpop.eup %4317  ;;  %1959 = vmatpush.msra.mxu3 %v3996_v43 }
 0xf04   : > { %v2137_v32 = vsel %vm1078_vm1, %v4318_v31, 0.0 }
 0xf05   : > { %2138 = vadd.xlane.f32.xlu0 %v2137_v32  ;;  %v2238_v36 = vpop.permute.xlu2 %2237  ;;  %1960 = vmatpush.msra.mxu3 %v3995_v21 }
 0xf07   : > { %1961 = vmatpush.msra.mxu3 %v3994_v22 }
 0xf08   : > { %v4978_v4 = vpop.eup %4319 }
 0xf09   : > { %v2070_v34 = vsel %vm1078_vm1, %v4978_v4, 0.0 }
 0xf0a   : > { %2071 = vadd.xlane.f32.xlu2 %v2070_v34 }
 0xf0e   : > { %v2143_v35 = vpop.permute.xlu1 %2142 }
 0xf0f   : > { %2163 = vmatpush.msrb.mxu2 %v2143_v35 }
 0xf11   : > { %4036 = vmatpush.xpose.msk.msra.mxu2 %vm1078_vm1, %v2238_v36 }
 0xf17   : > { %2170 = vrot.lane.b32.xlu1 %v4930_v50, %s5543_s21 }
 0xf19   : > { %2075 = vrot.lane.b32.xlu0 %v4930_v50, %s5527_s10 }
 0xf21   : > { %2235 = vrot.lane.b32.xlu0 %v4930_v50, %s5530_s2 }
 0xf22   : > { %2168 = vrot.lane.b32.xlu2 %v4930_v50, %s5528_s15 }
 0xf71   : > { %v1894_v42 = vpop.xlane.xlu1 %1893 }
 0xf72   : > { %v1895_v44 = vmul.f32 %v1894_v42, %v4819_v33 }
 0xf74   : > { %v1896_v45 = vadd.f32 1e-05, %v1895_v44 }
 0xf76   : > { %4321 = vrsqrt.f32 %v1896_v45  ;;  %vm1903_vm15 = vweird.f32 %v1896_v45 }
 0xf78   : > { %v2139_v46 = vpop.xlane.xlu0 %2138 }
 0xf79   : > { %4323 = vrcp.f32 %v2139_v46 }
 0xf7c   : > { %v4322_v47 = vpop.eup %4321 }
 0xf7d   : > { %v1898_v48 = vmul.f32 %v4322_v47, %v1896_v45  ;;  %vm1904_vm14 = vweird.f32 %v4322_v47  ;;  %v2072_v1 = vpop.xlane.xlu2 %2071 }
 0xf7e   : > { %vm1905_vm2 = vmor %vm1903_vm15, %vm1904_vm14  ;;  %4325 = vrcp.f32 %v2072_v1 }
 0xf7f   : > { %v4324_v52 = vpop.eup %4323  ;;  %v1899_v53 = vmul.f32 %v4322_v47, %v1898_v48 }
 0xf80   : > { %v2141_v54 = vmul.f32 %v4324_v52, %v4318_v31 }
 0xf81   : > { %v1900_v56 = vmul.f32 0.5, %v1899_v53 }
 0xf82   : > { %4032 = vmatmul.msk.f32.vlgmr.msrb.gmra.mxu2 %vm1078_vm1, %v2141_v54 }
 0xf83   : > { %v1901_v58 = vsub.f32 1.5, %v1900_v56 }
 0xf84   : > { %v4326_v14 = vpop.eup %4325 }
 0xf85   : > { %v1902_v60 = vmul.f32 %v4322_v47, %v1901_v58  ;;  %v2074_v16 = vmul.f32 %v4326_v14, %v4978_v4  ;;  %v2169_v18 = vpop.permute.xlu2 %2168 }
 0xf87   : > { %v1906_v63 = vsel %vm1905_vm2, %v4322_v47, %v1902_v60  ;;  %v2009_v60 = vld [vmem:[%s5544_s3 + $0x10] sm:$0xff] }
 0xf88   : > { %v1907_v0 = vmul.f32 %v1906_v63, %v4972_v23  ;;  %v4254_v23 = vld [vmem:[%s5506_s24 + $0x1] ss:$0 sm:$0xff]  ;;  %s5546_s24 = sld [smem:[#allocation23_spill]] }
 0xf89   : > { %v2171_v11 = vpop.permute.xlu1 %2170 }
 0xf8a   : > { %v1911_v6 = vmul.f32 %v4252_v61, %v1907_v0  ;;  %v2008_v61 = vld [vmem:[%s5544_s3 + $0x8] sm:$0xff] }
 0xf8b   : > { %v2076_v5 = vpop.permute.xlu0 %2075 }
 0xf8c   : > { %2096 = vmatpush.msra.mxu1 %v2076_v5  ;;  %v5008_v8 = vadd.f32 %v4253_v2, %v1911_v6 }
 0xf8e   : > { %4025 = vmatmul.msk.f32.vlgmr.msrb.gmra.mxu1 %vm1051_vm0, %v5008_v8  ;;  %v2378_v22 = vld [vmem:[%s5546_s24 + $0x10] sm:$0xff] }
 0xf8f   : > { %4033 = vmatpush.xpose.msk.msrb.mxu1 %vm1078_vm1, %v2171_v11 }
 0xf93   : > { %v2236_v15 = vpop.permute.xlu0 %2235 }
 0xf94   : > { %4037 = vmatmul.msk.f32.vlgmr.msra.gmra.mxu2 %vm1078_vm1, %v2236_v15 }
 0xf96   : > { %4029 = vmatmul.msk.f32.vlgmr.msra.gmra.mxu1 %vm1078_vm1, %v2074_v16 }
 0xf9e   : > { %4034 = vmatmul.msk.f32.vlgmr.msrb.gmra.mxu1 %vm1078_vm1, %v2169_v18 }
0x1005   : > { %v2165_v27 = vpop.f32.mrf.mxu2 }
0x100b   : > { %v1939_v24 = vpop.f32.mrf.mxu1 }
0x100c   : > { %v1940_v25 = vadd.f32 %v4254_v23, %v1939_v24  ;;  %v2379_v23 = vld [vmem:[%s5546_s24 + $0x18] sm:$0xff] }
0x100d   : > { %v4224_v24 = vpack.i.bf16 %v2378_v22, %v2379_v23  ;;  %2426 = vmatpush.msrb.mxu2 %v2379_v23 }
0x100e   : > { %v1942_v26 = vmax.f32 %v1940_v25, 0.0  ;;  %v2377_v25 = vld [vmem:[%s5546_s24 + $0x8] sm:$0xff] }
0x100f   : > { %2427 = vmatpush.msrb.mxu2 %v2378_v22 }
0x1010   : > { %1962 = vmatmul.f32.vlgmr.msra.gmra.mxu3 %v1942_v26  ;;  %v2376_v26 = vld [vmem:[%s5546_s24] sm:$0xff] }
0x1011   : > { %2428 = vmatpush.msrb.mxu2 %v2377_v25 }
0x1013   : > { %v2098_v28 = vpop.f32.mrf.mxu1  ;;  %2429 = vmatpush.msrb.mxu2 %v2376_v26 }
0x1017   : > { %v2260_v29 = vpop.f32.mrf.mxu2 }
0x1018   : > { %v2263_v30 = vsel %vm4955_vm13, %v2260_v29, -1e+20 }
0x1019   : > { %v2264_v31 = vmul.f32 0.35355338, %v2263_v30 }
0x101b   : > { %v2193_v32 = vpop.f32.mrf.mxu1  ;;  %v2265_v4 = vsel %vm1078_vm1, %v2264_v31, -inf }
0x101c   : > { %v2196_v34 = vsel %vm4955_vm13, %v2193_v32, -1e+20  ;;  %2266 = vmax.xlane.f32.xlu1 %v2265_v4 }
0x101d   : > { %v2197_v35 = vmul.f32 0.35355338, %v2196_v34 }
0x101f   : > { %v2198_v36 = vsel %vm1078_vm1, %v2197_v35, -inf }
0x1020   : > { %2199 = vmax.xlane.f32.xlu0 %v2198_v36 }
0x1035   : > { %2209 = vrot.lane.b32.xlu1 %v4930_v50, %s5532_s13 }
0x108f   : > { %v2267_v37 = vpop.xlane.xlu1 %2266 }
0x1090   : > { %v2268_v38 = vsub.f32 %v2264_v31, %v2267_v37  ;;  %v4229_v31 = vpack.i.bf16 %v2376_v26, %v2377_v25 }
0x1092   : > { %v2269_v39 = vmul.f32 1.442695, %v2268_v38 }
0x1093   : > { %v2200_v40 = vpop.xlane.xlu0 %2199  ;;  %v1963_v63 = vpop.f32.mrf.mxu3 }
0x1094   : > { %4327 = vpow2.f32 %v2269_v39  ;;  %v2201_v42 = vsub.f32 %v2197_v35, %v2200_v40  ;;  %v1964_v0 = vadd.f32 %v4255_v62, %v1963_v63  ;;  %v4258_v63 = vld [vmem:[%s5547_s6] ss:$0 sm:$0xff] }
0x1096   : > { %v2202_v44 = vmul.f32 1.442695, %v2201_v42  ;;  %v1966_v1 = vadd.f32 %v1964_v0, %v5008_v8 }
0x1098   : > { %4329 = vpow2.f32 %v2202_v44  ;;  %v1967_v2 = vsel %vm1051_vm0, %v1966_v1, 0.0 }
0x109a   : > { %v4328_v45 = vpop.eup %4327 }
0x109b   : > { %v2271_v46 = vsel %vm1078_vm1, %v4328_v45, 0.0 }
0x109c   : > { %2272 = vadd.xlane.f32.xlu0 %v2271_v46 }
0x109e   : > { %v4330_v47 = vpop.eup %4329 }
0x109f   : > { %v2204_v48 = vsel %vm1078_vm1, %v4330_v47, 0.0 }
0x10a0   : > { %2205 = vadd.xlane.f32.xlu2 %v2204_v48 }
0x10a7   : > { %v2210_v49 = vpop.permute.xlu1 %2209 }
0x10a8   : > { %2230 = vmatpush.msrb.mxu0 %v2210_v49 }
0x10aa   : > { %2335 = vmatpush.msra.mxu0 %v2010_v59  ;;  %v4259_v59 = vld [vmem:[%s5502_s14 + $0x1] ss:$0 sm:$0xff]  ;;  %s5550_s14 = sld [smem:[#allocation25_spill]] }
0x10ac   : > { %2336 = vmatpush.msra.mxu0 %v2009_v60 }
0x10ae   : > { %2337 = vmatpush.msra.mxu0 %v2008_v61 }
0x10b0   : > { %2303 = vrot.lane.b32.xlu0 %v2165_v27, %s5535_s23  ;;  %2338 = vmatpush.msra.mxu0 %v2007_v3  ;;  %v4260_v3 = vld [vmem:[%s5548_s25] ss:$0 sm:$0xff] }
0x10b8   : > { %2276 = vrot.lane.b32.xlu2 %v4930_v50, %s5534_s11 }
0x110f   : > { %v2273_v51 = vpop.xlane.xlu0 %2272 }
0x1110   : > { %4331 = vrcp.f32 %v2273_v51 }
0x1113   : > { %v2206_v52 = vpop.xlane.xlu2 %2205 }
0x1114   : > { %4333 = vrcp.f32 %v2206_v52 }
0x1116   : > { %v4332_v53 = vpop.eup %4331 }
0x1117   : > { %v2275_v55 = vmul.f32 %v4332_v53, %v4328_v45 }
0x111a   : > { %v4334_v54 = vpop.eup %4333 }
0x111b   : > { %v2208_v56 = vmul.f32 %v4334_v54, %v4330_v47  ;;  %v2277_v57 = vpop.permute.xlu2 %2276  ;;  %v4257_v54 = vld [vmem:[%s5503_s8 + $0x1] ss:$0 sm:$0xff]  ;;  %s5549_s8 = sld [smem:[#allocation24_spill]] }
0x111c   : > { %2297 = vmatpush.msra.mxu1 %v2277_v57 }
0x111d   : > { %4035 = vmatmul.msk.f32.vlgmr.msrb.gmra.mxu0 %vm1078_vm1, %v2208_v56  ;;  %4038 = vmatmul.msk.f32.vlgmr.msra.gmra.mxu1 %vm1078_vm1, %v2275_v55 }
0x1122   : > { %v2304_v6 = vpop.permute.xlu0 %2303 }
0x1123   : > { %v2314_v7 = vsel %vm1078_vm1, %v2098_v28, %v2304_v6 }
0x119a   : > { %v2232_v58 = vpop.f32.mrf.mxu0  ;;  %v2299_v50 = vpop.f32.mrf.mxu1 }
0x119b   : > { %2307 = vrot.lane.b32.xlu1 %v2232_v58, %s5538_s28  ;;  %2311 = vrot.lane.b32.xlu0 %v2299_v50, %s5539_s7 }
0x11c5   : > { %1968 = vadd.xlane.f32.xlu1 %v1967_v2 }
0x11de   : > { %4225 = vrot.lane.b32.xlu1 %v4224_v24, %s5537_s17 }
0x120d   : > { %v2308_v5 = vpop.permute.xlu1 %2307  ;;  %v2312_v10 = vpop.permute.xlu0 %2311 }
0x120e   : > { %v2315_v11 = vsel %vm1359_vm4, %v2314_v7, %v2308_v5 }
0x120f   : > { %v2316_v12 = vsel %vm1361_vm5, %v2315_v11, %v2312_v10 }
0x1210   : > { %4039 = vmatmul.msk.f32.vlgmr.msra.gmra.mxu0 %vm1051_vm0, %v2316_v12 }
0x1238   : > { %v1969_v8 = vpop.xlane.xlu1 %1968 }
0x1239   : > { %v1970_v15 = vmul.f32 %v1969_v8, %v4819_v33 }
0x123b   : > { %v1971_v19 = vsub.f32 %v1966_v1, %v1970_v15 }
0x123d   : > { %v1972_v43 = vmul.f32 %v1971_v19, %v1971_v19 }
0x123f   : > { %v1973_v21 = vsel %vm1051_vm0, %v1972_v43, 0.0 }
0x1250   : > { %v4226_v35 = vpop.permute.xlu1 %4225 }
0x1251   : > { %v4227_v36 = vunpack.i.l.bf16 %v4226_v35  ;;  %v4228_v37 = vunpack.i.h.bf16 %v4226_v35 }
0x1253   : > { %2465 = vmatpush.msrb.mxu1 %v4227_v36 }
0x1255   : > { %2466 = vmatpush.msrb.mxu1 %v4228_v37 }
0x128d   : > { %v2340_v14 = vpop.f32.mrf.mxu0 }
0x128e   : > { %v2341_v16 = vadd.f32 %v4256_v13, %v2340_v14 }
0x1290   : > { %v2343_v18 = vadd.f32 %v2341_v16, %v4924_v41 }
0x1292   : > { %v2346_v20 = vsel %vm1051_vm0, %v2343_v18, 0.0 }
0x1293   : > { %2347 = vadd.xlane.f32.xlu2 %v2346_v20 }
0x129b   : > { %1974 = vadd.xlane.f32.xlu2 %v1973_v21 }
0x1306   : > { %v2348_v41 = vpop.xlane.xlu2 %2347 }
0x1307   : > { %v2349_v27 = vmul.f32 %v2348_v41, %v4819_v33 }
0x1309   : > { %v2350_v28 = vsub.f32 %v2343_v18, %v2349_v27 }
0x130b   : > { %v2351_v29 = vmul.f32 %v2350_v28, %v2350_v28 }
0x130d   : > { %v2352_v30 = vsel %vm1051_vm0, %v2351_v29, 0.0 }
0x130e   : > { %2353 = vadd.xlane.f32.xlu0 %v2352_v30  ;;  %v1975_v32 = vpop.xlane.xlu2 %1974 }
0x130f   : > { %v1976_v4 = vmul.f32 %v1975_v32, %v4819_v33 }
0x1311   : > { %v1977_v34 = vadd.f32 1e-05, %v1976_v4 }
0x1313   : > { %4335 = vrsqrt.f32 %v1977_v34  ;;  %vm1984_vm7 = vweird.f32 %v1977_v34 }
0x1319   : > { %v4336_v38 = vpop.eup %4335 }
0x131a   : > { %v1979_v39 = vmul.f32 %v4336_v38, %v1977_v34  ;;  %vm1985_vm6 = vweird.f32 %v4336_v38 }
0x131b   : > { %vm1986_vm8 = vmor %vm1984_vm7, %vm1985_vm6 }
0x131c   : > { %v1980_v40 = vmul.f32 %v4336_v38, %v1979_v39 }
0x131e   : > { %v1981_v42 = vmul.f32 0.5, %v1980_v40 }
0x1320   : > { %v1982_v47 = vsub.f32 1.5, %v1981_v42 }
0x1322   : > { %4230 = vrot.lane.b32.xlu0 %v4229_v31, %s5537_s17  ;;  %v1983_v48 = vmul.f32 %v4336_v38, %v1982_v47 }
0x1324   : > { %v1987_v51 = vsel %vm1986_vm8, %v4336_v38, %v1983_v48 }
0x1325   : > { %v1988_v55 = vmul.f32 %v1987_v51, %v1971_v19 }
0x1327   : > { %v1992_v58 = vmul.f32 %v4257_v54, %v1988_v55 }
0x1329   : > { %v5072_v2 = vadd.f32 %v4259_v59, %v1992_v58 }
0x1381   : > { %v2354_v44 = vpop.xlane.xlu0 %2353 }
0x1382   : > { %v2355_v45 = vmul.f32 %v2354_v44, %v4819_v33 }
0x1384   : > { %v2356_v46 = vadd.f32 1e-05, %v2355_v45 }
0x1386   : > { %4337 = vrsqrt.f32 %v2356_v46  ;;  %vm2363_vm10 = vweird.f32 %v2356_v46 }
0x138c   : > { %v4338_v49 = vpop.eup %4337 }
0x138d   : > { %v2358_v52 = vmul.f32 %v4338_v49, %v2356_v46  ;;  %vm2364_vm9 = vweird.f32 %v4338_v49 }
0x138e   : > { %vm2365_vm11 = vmor %vm2363_vm10, %vm2364_vm9 }
0x138f   : > { %v2359_v53 = vmul.f32 %v4338_v49, %v2358_v52 }
0x1391   : > { %v2360_v56 = vmul.f32 0.5, %v2359_v53 }
0x1393   : > { %v2361_v57 = vsub.f32 1.5, %v2360_v56 }
0x1394   : > { %v4231_v50 = vpop.permute.xlu0 %4230 }
0x1395   : > { %v2362_v60 = vmul.f32 %v4338_v49, %v2361_v57  ;;  %v4233_v61 = vunpack.i.h.bf16 %v4231_v50  ;;  %v4232_v62 = vunpack.i.l.bf16 %v4231_v50 }
0x1397   : > { %v2366_v0 = vsel %vm2365_vm11, %v4338_v49, %v2362_v60  ;;  %2467 = vmatpush.msrb.mxu1 %v4232_v62 }
0x1398   : > { %v2367_v1 = vmul.f32 %v2366_v0, %v2350_v28 }
0x1399   : > { %2468 = vmatpush.msrb.mxu1 %v4233_v61 }
0x139a   : > { %v2371_v6 = vmul.f32 %v4258_v63, %v2367_v1  ;;  %4041 = vmatmul.msk.f32.vlgmr.msrb.gmra.mxu1 %vm1051_vm0, %v5072_v2 }
0x139c   : > { %v5077_v7 = vadd.f32 %v4260_v3, %v2371_v6 }
0x139e   : > { %4040 = vmatmul.msk.f32.vlgmr.msrb.gmra.mxu2 %vm1051_vm0, %v5077_v7 }
0x1417   : > { %v5081_v5 = vpop.f32.mrf.mxu1 }
0x1418   : > { %2607 = vrot.lane.b32.xlu1 %v5081_v5, %s5528_s15  ;;  %2540 = vrot.lane.b32.xlu2 %v5081_v5, %s5540_s26 }
0x1419   : > { %4042 = vmatpush.xpose.msk.msrb.mxu3 %vm1078_vm1, %v5081_v5 }
0x1420   : > { %2674 = vrot.lane.b32.xlu2 %v5081_v5, %s5530_s2 }
0x1421   : > { %v2431_v10 = vpop.f32.mrf.mxu2 }
0x1422   : > { %2538 = vrot.lane.b32.xlu0 %v2431_v10, %s5540_s26  ;;  %2672 = vrot.lane.b32.xlu1 %v2431_v10, %s5530_s2 }
0x1423   : > { %4043 = vmatmul.msk.f32.vlgmr.msrb.gmra.mxu3 %vm1078_vm1, %v2431_v10 }
0x142a   : > { %2605 = vrot.lane.b32.xlu0 %v2431_v10, %s5528_s15 }
0x1472   : > { %v2541_v11 = vpop.permute.xlu2 %2540 }
0x1473   : > { %4045 = vmatpush.xpose.msk.msra.mxu2 %vm1078_vm1, %v2541_v11 }
0x147a   : > { %v2675_v12 = vpop.permute.xlu2 %2674 }
0x147b   : > { %4051 = vmatpush.xpose.msk.msrb.mxu2 %vm1078_vm1, %v2675_v12 }
0x148a   : > { %v2608_v13 = vpop.permute.xlu1 %2607 }
0x148b   : > { %4048 = vmatpush.xpose.msk.msra.mxu3 %vm1078_vm1, %v2608_v13 }
0x1494   : > { %v2539_v8 = vpop.permute.xlu0 %2538  ;;  %v2673_v14 = vpop.permute.xlu1 %2672 }
0x1495   : > { %4046 = vmatmul.msk.f32.vlgmr.msra.gmra.mxu2 %vm1078_vm1, %v2539_v8  ;;  %v2383_v8 = vld [vmem:[%s5549_s8 + $0x18] sm:$0xff] }
0x1496   : > { %2772 = vmatpush.msrb.mxu3 %v2383_v8 }
0x149c   : > { %v2606_v15 = vpop.permute.xlu0 %2605 }
0x149d   : > { %4049 = vmatmul.msk.f32.vlgmr.msra.gmra.mxu3 %vm1078_vm1, %v2606_v15  ;;  %4052 = vmatmul.msk.f32.vlgmr.msrb.gmra.mxu2 %vm1078_vm1, %v2673_v14  ;;  %v2382_v14 = vld [vmem:[%s5549_s8 + $0x10] sm:$0xff]  ;;  %v2381_v15 = vld [vmem:[%s5549_s8 + $0x8] sm:$0xff] }
0x149e   : > { %2773 = vmatpush.msrb.mxu3 %v2382_v14 }
0x14a0   : > { %2774 = vmatpush.msrb.mxu3 %v2381_v15 }
0x14a6   : > { %v2496_v16 = vpop.f32.mrf.mxu3 }
0x14a7   : > { %v2499_v18 = vsel %vm4768_vm3, %v2496_v16, -1e+20  ;;  %v2380_v16 = vld [vmem:[%s5549_s8] sm:$0xff] }
0x14a8   : > { %v2500_v19 = vmul.f32 0.35355338, %v2499_v18  ;;  %2775 = vmatpush.msrb.mxu3 %v2380_v16 }
0x14aa   : > { %v2501_v20 = vsel %vm1078_vm1, %v2500_v19, -inf }
0x14ab   : > { %2502 = vmax.xlane.f32.xlu2 %v2501_v20 }
0x1518   : > { %v2563_v43 = vpop.f32.mrf.mxu2 }
0x1519   : > { %v2566_v21 = vsel %vm4768_vm3, %v2563_v43, -1e+20 }
0x151a   : > { %v2567_v22 = vmul.f32 0.35355338, %v2566_v21 }
0x151c   : > { %v2568_v23 = vsel %vm1078_vm1, %v2567_v22, -inf }
0x151d   : > { %2569 = vmax.xlane.f32.xlu0 %v2568_v23  ;;  %v4261_v23 = vld [vmem:[%s5550_s14] ss:$0 sm:$0xff] }
0x151e   : > { %v2503_v31 = vpop.xlane.xlu2 %2502 }
0x151f   : > { %v2504_v32 = vsub.f32 %v2500_v19, %v2503_v31 }
0x1520   : > { %v2630_v24 = vpop.f32.mrf.mxu3  ;;  %v2697_v25 = vpop.f32.mrf.mxu2 }
0x1521   : > { %v2633_v26 = vsel %vm4768_vm3, %v2630_v24, -1e+20  ;;  %v2700_v41 = vsel %vm4768_vm3, %v2697_v25, -1e+20  ;;  %v2505_v4 = vmul.f32 1.442695, %v2504_v32 }
0x1522   : > { %v2634_v27 = vmul.f32 0.35355338, %v2633_v26  ;;  %v2701_v28 = vmul.f32 0.35355338, %v2700_v41  ;;  %v2392_v32 = vld [vmem:[%s5551_s29 + $0x18] sm:$0xff] }
0x1523   : > { %4339 = vpow2.f32 %v2505_v4  ;;  %v2391_v4 = vld [vmem:[%s5551_s29 + $0x10] sm:$0xff] }
0x1524   : > { %v2635_v29 = vsel %vm1078_vm1, %v2634_v27, -inf  ;;  %v2702_v30 = vsel %vm1078_vm1, %v2701_v28, -inf }
0x1525   : > { %2636 = vmax.xlane.f32.xlu1 %v2635_v29  ;;  %2703 = vmax.xlane.f32.xlu2 %v2702_v30 }
0x1529   : > { %v4340_v34 = vpop.eup %4339 }
0x152a   : > { %v2507_v35 = vsel %vm1078_vm1, %v4340_v34, 0.0 }
0x1531   : > { %2512 = vrot.lane.b32.xlu0 %v5081_v5, %s5537_s17 }
0x155b   : > { %2508 = vadd.xlane.f32.xlu0 %v2507_v35  ;;  %v2409_v35 = vld [vmem:[%s5552_s30 + $0x78] sm:$0xff] }
0x155c   : > { %2841 = vmatpush.msra.mxu2 %v2409_v35 }
0x156f   : > { %2713 = vrot.lane.b32.xlu0 %v5081_v5, %s5529_s18 }
0x1590   : > { %v2570_v36 = vpop.xlane.xlu0 %2569 }
0x1591   : > { %v2571_v37 = vsub.f32 %v2567_v22, %v2570_v36  ;;  %v2408_v36 = vld [vmem:[%s5552_s30 + $0x70] sm:$0xff] }
0x1592   : > { %2842 = vmatpush.msra.mxu2 %v2408_v36  ;;  %v4267_v36 = vld [vmem:[%s5557_s1] ss:$0 sm:$0xff]  ;;  %s5561_s1 = sld [smem:[#allocation40_spill]] }
0x1593   : > { %v2572_v38 = vmul.f32 1.442695, %v2571_v37  ;;  %v2407_v37 = vld [vmem:[%s5552_s30 + $0x68] sm:$0xff] }
0x1594   : > { %2843 = vmatpush.msra.mxu2 %v2407_v37 }
0x1595   : > { %4341 = vpow2.f32 %v2572_v38 }
0x1598   : > { %v2637_v39 = vpop.xlane.xlu1 %2636  ;;  %v2704_v40 = vpop.xlane.xlu2 %2703 }
0x1599   : > { %v2638_v42 = vsub.f32 %v2634_v27, %v2637_v39  ;;  %v2705_v44 = vsub.f32 %v2701_v28, %v2704_v40  ;;  %v2406_v40 = vld [vmem:[%s5552_s30 + $0x60] sm:$0xff] }
0x159a   : > { %2844 = vmatpush.msra.mxu2 %v2406_v40 }
0x159b   : > { %v4342_v45 = vpop.eup %4341  ;;  %v2639_v46 = vmul.f32 1.442695, %v2638_v42  ;;  %v2706_v47 = vmul.f32 1.442695, %v2705_v44  ;;  %v2405_v44 = vld [vmem:[%s5552_s30 + $0x58] sm:$0xff] }
0x159c   : > { %v2574_v48 = vsel %vm1078_vm1, %v4342_v45, 0.0  ;;  %2845 = vmatpush.msra.mxu2 %v2405_v44 }
0x159d   : > { %4343 = vpow2.f32 %v2639_v46  ;;  %2575 = vadd.xlane.f32.xlu1 %v2574_v48  ;;  %v2403_v46 = vld [vmem:[%s5552_s30 + $0x48] sm:$0xff] }
0x159e   : > { %4345 = vpow2.f32 %v2706_v47  ;;  %v2402_v47 = vld [vmem:[%s5552_s30 + $0x40] sm:$0xff] }
0x15a3   : > { %v4344_v49 = vpop.eup %4343  ;;  %v2513_v51 = vpop.permute.xlu0 %2512 }
0x15a4   : > { %v4346_v52 = vpop.eup %4345  ;;  %2533 = vmatpush.msrb.mxu0 %v2513_v51  ;;  %v2641_v53 = vsel %vm1078_vm1, %v4344_v49, 0.0 }
0x15a5   : > { %2642 = vadd.xlane.f32.xlu2 %v2641_v53  ;;  %v2708_v54 = vsel %vm1078_vm1, %v4346_v52, 0.0 }
0x15a6   : > { %2709 = vadd.xlane.f32.xlu1 %v2708_v54  ;;  %v2399_v54 = vld [vmem:[%s5552_s30 + $0x28] sm:$0xff] }
0x15bd   : > { %2579 = vrot.lane.b32.xlu2 %v5081_v5, %s5526_s5 }
0x15bf   : > { %2646 = vrot.lane.b32.xlu1 %v5081_v5, %s5543_s21 }
0x15ce   : > { %v2509_v55 = vpop.xlane.xlu0 %2508 }
0x15cf   : > { %4347 = vrcp.f32 %v2509_v55 }
0x15d5   : > { %v4348_v56 = vpop.eup %4347 }
0x15d6   : > { %v2511_v57 = vmul.f32 %v4348_v56, %v4340_v34  ;;  %v2389_v34 = vld [vmem:[%s5551_s29] sm:$0xff] }
0x15d7   : > { %v2398_v56 = vld [vmem:[%s5552_s30 + $0x20] sm:$0xff] }
0x15d8   : > { %4044 = vmatmul.msk.f32.vlgmr.msrb.gmra.mxu0 %vm1078_vm1, %v2511_v57 }
0x15e1   : > { %v2714_v63 = vpop.permute.xlu0 %2713 }
0x1610   : > { %v2576_v58 = vpop.xlane.xlu1 %2575 }
0x1611   : > { %4349 = vrcp.f32 %v2576_v58  ;;  %v2397_v58 = vld [vmem:[%s5552_s30 + $0x18] sm:$0xff] }
0x1617   : > { %v4350_v60 = vpop.eup %4349 }
0x1618   : > { %v2643_v50 = vpop.xlane.xlu2 %2642  ;;  %v2578_v61 = vmul.f32 %v4350_v60, %v4342_v45  ;;  %v2404_v45 = vld [vmem:[%s5552_s30 + $0x50] sm:$0xff] }
0x1619   : > { %v2710_v59 = vpop.xlane.xlu1 %2709  ;;  %2846 = vmatpush.msra.mxu2 %v2404_v45 }
0x161a   : > { %4351 = vrcp.f32 %v2710_v59  ;;  %v4262_v59 = vld [vmem:[%s5553_s22] ss:$0 sm:$0xff] }
0x161b   : > { %4353 = vrcp.f32 %v2643_v50  ;;  %2847 = vmatpush.msra.mxu2 %v2403_v46 }
0x161d   : > { %2848 = vmatpush.msra.mxu2 %v2402_v47 }
0x1620   : > { %v2580_v62 = vpop.permute.xlu2 %2579  ;;  %v4352_v0 = vpop.eup %4351 }
0x1621   : > { %2600 = vmatpush.msra.mxu1 %v2580_v62  ;;  %v2712_v1 = vmul.f32 %v4352_v0, %v4346_v52  ;;  %v4354_v3 = vpop.eup %4353  ;;  %v2400_v52 = vld [vmem:[%s5552_s30 + $0x30] sm:$0xff]  ;;  %v4263_v62 = vld [vmem:[%s5554_s20] ss:$0 sm:$0xff] }
0x1622   : > { %4047 = vmatmul.msk.f32.vlgmr.msra.gmra.mxu1 %vm1078_vm1, %v2578_v61  ;;  %v2645_v6 = vmul.f32 %v4354_v3, %v4344_v49  ;;  %v2401_v49 = vld [vmem:[%s5552_s30 + $0x38] sm:$0xff]  ;;  %v2395_v3 = vld [vmem:[%s5552_s30 + $0x8] sm:$0xff] }
0x1623   : > { %2734 = vmatpush.msrb.mxu1 %v2714_v63  ;;  %2849 = vmatpush.msra.mxu2 %v2401_v49 }
0x1625   : > { %2850 = vmatpush.msra.mxu2 %v2400_v52 }
0x1627   : > { %2851 = vmatpush.msra.mxu2 %v2399_v54 }
0x1629   : > { %2852 = vmatpush.msra.mxu2 %v2398_v56 }
0x162a   : > { %4053 = vmatmul.msk.f32.vlgmr.msrb.gmra.mxu1 %vm1078_vm1, %v2712_v1  ;;  %v2396_v1 = vld [vmem:[%s5552_s30 + $0x10] sm:$0xff] }
0x162b   : > { %2853 = vmatpush.msra.mxu2 %v2397_v58 }
0x162d   : > { %2854 = vmatpush.msra.mxu2 %v2396_v1 }
0x162f   : > { %2855 = vmatpush.msra.mxu2 %v2395_v3 }
0x1631   : > { %v2647_v5 = vpop.permute.xlu1 %2646 }
0x1632   : > { %2667 = vmatpush.msra.mxu0 %v2647_v5  ;;  %v4264_v5 = vld [vmem:[%s5555_s27] ss:$0 sm:$0xff] }
0x1633   : > { %4050 = vmatmul.msk.f32.vlgmr.msra.gmra.mxu0 %vm1078_vm1, %v2645_v6  ;;  %v2394_v6 = vld [vmem:[%s5552_s30] sm:$0xff] }
0x1634   : > { %2829 = vmatpush.msrb.mxu0 %v2392_v32  ;;  %2856 = vmatpush.msra.mxu2 %v2394_v6 }
0x1636   : > { %2830 = vmatpush.msrb.mxu0 %v2391_v4 }
0x1655   : > { %v2535_v12 = vpop.f32.mrf.mxu0 }
0x169f   : > { %v2602_v10 = vpop.f32.mrf.mxu1 }
0x16a0   : > { %2740 = vrot.lane.b32.xlu0 %v2602_v10, %s5535_s23 }
0x16a7   : > { %v2736_v11 = vpop.f32.mrf.mxu1 }
0x16a8   : > { %2748 = vrot.lane.b32.xlu0 %v2736_v11, %s5539_s7 }
0x16b0   : > { %v2669_v13 = vpop.f32.mrf.mxu0 }
0x16b1   : > { %2744 = vrot.lane.b32.xlu2 %v2669_v13, %s5538_s28  ;;  %v4265_v13 = vld [vmem:[%s4662_s4] ss:$0 sm:$0xff] }
0x170b   : > { %v2745_v20 = vpop.permute.xlu2 %2744 }
0x1712   : > { %v2741_v18 = vpop.permute.xlu0 %2740 }
0x1713   : > { %v2751_v19 = vsel %vm1078_vm1, %v2535_v12, %v2741_v18 }
0x1714   : > { %v2752_v21 = vsel %vm1359_vm4, %v2751_v19, %v2745_v20 }
0x171a   : > { %v2749_v43 = vpop.permute.xlu0 %2748 }
0x171b   : > { %v2753_v22 = vsel %vm1361_vm5, %v2752_v21, %v2749_v43 }
0x171c   : > { %4054 = vmatmul.msk.f32.vlgmr.msrb.gmra.mxu3 %vm1051_vm0, %v2753_v22  ;;  %v4059_v22 = vld [vmem:[%s4587_s12 + $0x38] sm:$0xff] }
0x171d   : > { %2919 = vmatpush.msra.mxu1 %v4059_v22 }
0x179f   : > { %v2777_v24 = vpop.f32.mrf.mxu3 }
0x17a0   : > { %v2778_v25 = vadd.f32 %v4261_v23, %v2777_v24  ;;  %v4058_v23 = vld [vmem:[%s4587_s12 + $0x30] sm:$0xff]  ;;  %v4057_v24 = vld [vmem:[%s4587_s12 + $0x28] sm:$0xff] }
0x17a1   : > { %2920 = vmatpush.msra.mxu1 %v4058_v23 }
0x17a2   : > { %v2780_v26 = vadd.f32 %v2778_v25, %v5077_v7  ;;  %v2390_v7 = vld [vmem:[%s5551_s29 + $0x8] sm:$0xff]  ;;  %v4056_v25 = vld [vmem:[%s4587_s12 + $0x20] sm:$0xff] }
0x17a3   : > { %2831 = vmatpush.msrb.mxu0 %v2390_v7  ;;  %2921 = vmatpush.msra.mxu1 %v4057_v24  ;;  %v4266_v7 = vld [vmem:[%s5556_s0] ss:$0 sm:$0xff] }
0x17a4   : > { %v2781_v41 = vsel %vm1051_vm0, %v2780_v26, 0.0 }
0x17a5   : > { %2782 = vadd.xlane.f32.xlu2 %v2781_v41  ;;  %2832 = vmatpush.msrb.mxu0 %v2389_v34 }
0x17a6   : > { %2922 = vmatpush.msra.mxu1 %v4056_v25 }
0x1818   : > { %v2783_v27 = vpop.xlane.xlu2 %2782 }
0x1819   : > { %v2784_v28 = vmul.f32 %v2783_v27, %v4819_v33 }
0x181b   : > { %v2785_v29 = vsub.f32 %v2780_v26, %v2784_v28 }
0x181d   : > { %v2786_v30 = vmul.f32 %v2785_v29, %v2785_v29 }
0x181f   : > { %v2787_v31 = vsel %vm1051_vm0, %v2786_v30, 0.0 }
0x1820   : > { %2788 = vadd.xlane.f32.xlu1 %v2787_v31 }
0x1893   : > { %v2789_v38 = vpop.xlane.xlu1 %2788 }
0x1894   : > { %v2790_v39 = vmul.f32 %v2789_v38, %v4819_v33 }
0x1896   : > { %v2791_v42 = vadd.f32 1e-05, %v2790_v39 }
0x1898   : > { %4355 = vrsqrt.f32 %v2791_v42  ;;  %vm2798_vm14 = vweird.f32 %v2791_v42 }
0x189e   : > { %v4356_v48 = vpop.eup %4355 }
0x189f   : > { %v2793_v51 = vmul.f32 %v4356_v48, %v2791_v42  ;;  %vm2799_vm12 = vweird.f32 %v4356_v48 }
0x18a0   : > { %vm2800_vm15 = vmor %vm2798_vm14, %vm2799_vm12 }
0x18a1   : > { %v2794_v53 = vmul.f32 %v4356_v48, %v2793_v51 }
0x18a3   : > { %v2795_v55 = vmul.f32 0.5, %v2794_v53 }
0x18a5   : > { %v2796_v57 = vsub.f32 1.5, %v2795_v55 }
0x18a7   : > { %v2797_v50 = vmul.f32 %v4356_v48, %v2796_v57 }
0x18a9   : > { %v2801_v60 = vsel %vm2800_vm15, %v4356_v48, %v2797_v50 }
0x18aa   : > { %v2802_v61 = vmul.f32 %v2801_v60, %v2785_v29 }
0x18ac   : > { %v2806_v63 = vmul.f32 %v4262_v59, %v2802_v61 }
0x18ae   : > { %v2810_v0 = vadd.f32 %v4263_v62, %v2806_v63 }
0x18b0   : > { %4055 = vmatmul.msk.f32.vlgmr.msrb.gmra.mxu0 %vm1051_vm0, %v2810_v0 }
0x192d   : > { %v2834_v10 = vpop.f32.mrf.mxu0 }
0x192e   : > { %v2835_v11 = vadd.f32 %v4264_v5, %v2834_v10 }
0x1930   : > { %v2837_v12 = vmax.f32 %v2835_v11, 0.0 }
0x1932   : > { %2857 = vmatmul.f32.vlgmr.msra.gmra.mxu2 %v2837_v12 }
0x19b5   : > { %v2858_v8 = vpop.f32.mrf.mxu2 }
0x19b6   : > { %v2859_v14 = vadd.f32 %v4265_v13, %v2858_v8 }
0x19b8   : > { %v2861_v15 = vadd.f32 %v2859_v14, %v2810_v0 }
0x19ba   : > { %v2862_v16 = vsel %vm1051_vm0, %v2861_v15, 0.0 }
0x19bb   : > { %2863 = vadd.xlane.f32.xlu0 %v2862_v16 }
0x1a2e   : > { %v2864_v18 = vpop.xlane.xlu0 %2863 }
0x1a2f   : > { %v2865_v19 = vmul.f32 %v2864_v18, %v4819_v33 }
0x1a31   : > { %v2866_v20 = vsub.f32 %v2861_v15, %v2865_v19 }
0x1a33   : > { %v2867_v43 = vmul.f32 %v2866_v20, %v2866_v20 }
0x1a35   : > { %v2868_v21 = vsel %vm1051_vm0, %v2867_v43, 0.0 }
0x1a36   : > { %2869 = vadd.xlane.f32.xlu2 %v2868_v21 }
0x1aa9   : > { %v2870_v26 = vpop.xlane.xlu2 %2869 }
0x1aaa   : > { %v2871_v41 = vmul.f32 %v2870_v26, %v4819_v33 }
0x1aac   : > { %v2872_v27 = vadd.f32 1e-05, %v2871_v41 }
0x1aae   : > { %4357 = vrsqrt.f32 %v2872_v27  ;;  %vm2879_vm6 = vweird.f32 %v2872_v27 }
0x1ab4   : > { %v4358_v28 = vpop.eup %4357 }
0x1ab5   : > { %v2874_v29 = vmul.f32 %v4358_v28, %v2872_v27  ;;  %vm2880_vm2 = vweird.f32 %v4358_v28 }
0x1ab6   : > { %vm2881_vm7 = vmor %vm2879_vm6, %vm2880_vm2 }
0x1ab7   : > { %v2875_v30 = vmul.f32 %v4358_v28, %v2874_v29 }
0x1ab9   : > { %v2876_v31 = vmul.f32 0.5, %v2875_v30 }
0x1abb   : > { %v2877_v32 = vsub.f32 1.5, %v2876_v31 }
0x1abd   : > { %v2878_v4 = vmul.f32 %v4358_v28, %v2877_v32 }
0x1abf   : > { %v2882_v34 = vsel %vm2881_vm7, %v4358_v28, %v2878_v4 }
0x1ac0   : > { %v2883_v35 = vmul.f32 %v2882_v34, %v2866_v20 }
0x1ac2   : > { %v2887_v37 = vmul.f32 %v4266_v7, %v2883_v35 }
0x1ac4   : > { %v5181_v38 = vadd.f32 %v4267_v36, %v2887_v37 }
0x1ac6   : > { %4065 = vmatmul.msk.f32.vlgmr.msra.gmra.mxu1 %vm1051_vm0, %v5181_v38 }
0x1b43   : > { %v5185_v39 = vpop.f32.mrf.mxu1 }
0x1b44   : > { %2993 = vrot.lane.b32.xlu0 %v5185_v39, %s5540_s26  ;;  %2995 = vrot.lane.b32.xlu2 %v5185_v39, %s5526_s5 }
0x1b45   : > { %2928 = vrot.lane.b32.xlu1 %v5185_v39, %s5537_s17 }
0x1b4c   : > { %2967 = vrot.lane.b32.xlu2 %v5185_v39, %s5527_s10 }
0x1b9e   : > { %v2996_v40 = vpop.permute.xlu2 %2995 }
0x1b9f   : > { %4069 = vmatpush.xpose.msk.msrb.mxu1 %vm1078_vm1, %v2996_v40 }
0x1ba6   : > { %v2968_v42 = vpop.permute.xlu2 %2967 }
0x1ba7   : > { %2988 = vmatpush.msra.mxu0 %v2968_v42 }
0x1bb6   : > { %v2994_v44 = vpop.permute.xlu0 %2993 }
0x1bb7   : > { %v2929_v45 = vpop.permute.xlu1 %2928  ;;  %4070 = vmatmul.msk.f32.vlgmr.msrb.gmra.mxu1 %vm1078_vm1, %v2994_v44  ;;  %v4083_v44 = vld [vmem:[%s5546_s24 + $0x30] sm:$0xff] }
0x1bb8   : > { %4066 = vmatpush.xpose.msk.msra.mxu3 %vm1078_vm1, %v2929_v45  ;;  %v4082_v45 = vld [vmem:[%s5546_s24 + $0x28] sm:$0xff] }
0x1bbb   : > { %4067 = vmatmul.msk.f32.vlgmr.msra.gmra.mxu3 %vm1078_vm1, %v5185_v39 }
0x1c34   : > { %v3018_v46 = vpop.f32.mrf.mxu1 }
0x1c35   : > { %v3021_v47 = vsel %vm4955_vm13, %v3018_v46, -1e+20  ;;  %v4081_v46 = vld [vmem:[%s5546_s24 + $0x20] sm:$0xff] }
0x1c36   : > { %v3022_v48 = vmul.f32 0.35355338, %v3021_v47 }
0x1c38   : > { %v3023_v49 = vsel %vm1078_vm1, %v3022_v48, -inf }
0x1c39   : > { %3024 = vmax.xlane.f32.xlu1 %v3023_v49 }
0x1c3e   : > { %v2951_v51 = vpop.f32.mrf.mxu3 }
0x1c3f   : > { %v2954_v52 = vsel %vm4955_vm13, %v2951_v51, -1e+20  ;;  %v4239_v51 = vpack.i.bf16 %v4081_v46, %v4082_v45 }
0x1c40   : > { %v2955_v53 = vmul.f32 0.35355338, %v2954_v52  ;;  %v4063_v52 = vld [vmem:[%s5544_s3 + $0x38] sm:$0xff] }
0x1c42   : > { %v2956_v54 = vsel %vm1078_vm1, %v2955_v53, -inf }
0x1c43   : > { %2957 = vmax.xlane.f32.xlu0 %v2956_v54  ;;  %v4061_v54 = vld [vmem:[%s5544_s3 + $0x28] sm:$0xff] }
0x1c57   : > { %3034 = vrot.lane.b32.xlu0 %v5185_v39, %s5531_s16  ;;  %s4134_s16 = sshll.u32 %s5561_s1, 3 }
0x1c5f   : > { %3127 = vrot.lane.b32.xlu0 %v5185_v39, %s5530_s2 }
0x1c67   : > { %3060 = vrot.lane.b32.xlu0 %v5185_v39, %s5528_s15 }
0x1cac   : > { %v3025_v55 = vpop.xlane.xlu1 %3024 }
0x1cad   : > { %v3026_v56 = vsub.f32 %v3022_v48, %v3025_v55  ;;  %v4060_v55 = vld [vmem:[%s5544_s3 + $0x20] sm:$0xff] }
0x1caf   : > { %v3027_v57 = vmul.f32 1.442695, %v3026_v56 }
0x1cb1   : > { %4359 = vpow2.f32 %v3027_v57 }
0x1cb6   : > { %v2958_v58 = vpop.xlane.xlu0 %2957 }
0x1cb7   : > { %v4360_v50 = vpop.eup %4359  ;;  %v2959_v59 = vsub.f32 %v2955_v53, %v2958_v58  ;;  %v4062_v53 = vld [vmem:[%s5544_s3 + $0x30] sm:$0xff] }
0x1cb8   : > { %v3029_v60 = vsel %vm1078_vm1, %v4360_v50, 0.0 }
0x1cb9   : > { %v2960_v61 = vmul.f32 1.442695, %v2959_v59  ;;  %3030 = vadd.xlane.f32.xlu2 %v3029_v60 }
0x1cbb   : > { %4361 = vpow2.f32 %v2960_v61 }
0x1cc1   : > { %v4362_v62 = vpop.eup %4361 }
0x1cc2   : > { %v2962_v63 = vsel %vm1078_vm1, %v4362_v62, 0.0 }
0x1cc3   : > { %2963 = vadd.xlane.f32.xlu1 %v2962_v63 }
0x1cc9   : > { %v3035_v0 = vpop.permute.xlu0 %3034 }
0x1cca   : > { %3055 = vmatpush.msrb.mxu3 %v3035_v0 }
0x1cd1   : > { %3062 = vrot.lane.b32.xlu2 %v5185_v39, %s5543_s21  ;;  %v3128_v12 = vpop.permute.xlu0 %3127 }
0x1cd9   : > { %v3061_v8 = vpop.permute.xlu0 %3060 }
0x1cdc   : > { %3129 = vrot.lane.b32.xlu1 %v5185_v39, %s5529_s18 }
0x1d2c   : > { %v3031_v1 = vpop.xlane.xlu2 %3030 }
0x1d2d   : > { %4363 = vrcp.f32 %v3031_v1 }
0x1d33   : > { %v4364_v3 = vpop.eup %4363 }
0x1d34   : > { %v3033_v6 = vmul.f32 %v4364_v3, %v4360_v50  ;;  %v3063_v5 = vpop.permute.xlu2 %3062 }
0x1d35   : > { %4072 = vmatpush.xpose.msk.msrb.mxu0 %vm1078_vm1, %v3063_v5 }
0x1d36   : > { %v2964_v10 = vpop.xlane.xlu1 %2963  ;;  %4071 = vmatmul.msk.f32.vlgmr.msrb.gmra.mxu3 %vm1078_vm1, %v3033_v6  ;;  %v4268_v6 = vld [vmem:[%s5545_s19 + $0x1] ss:$0 sm:$0xff] }
0x1d37   : > { %4365 = vrcp.f32 %v2964_v10 }
0x1d3d   : > { %v4366_v11 = vpop.eup %4365 }
0x1d3e   : > { %v2966_v13 = vmul.f32 %v4366_v11, %v4362_v62 }
0x1d40   : > { %4068 = vmatmul.msk.f32.vlgmr.msra.gmra.mxu0 %vm1078_vm1, %v2966_v13 }
0x1d48   : > { %4073 = vmatmul.msk.f32.vlgmr.msrb.gmra.mxu0 %vm1078_vm1, %v3061_v8 }
0x1d4e   : > { %v3130_v14 = vpop.permute.xlu1 %3129 }
0x1d4f   : > { %4075 = vmatpush.xpose.msk.msra.mxu3 %vm1078_vm1, %v3130_v14 }
0x1d52   : > { %4076 = vmatmul.msk.f32.vlgmr.msra.gmra.mxu3 %vm1078_vm1, %v3128_v12 }
0x1db9   : > { %v3057_v43 = vpop.f32.mrf.mxu3 }
0x1dbd   : > { %v5224_v15 = vpop.f32.mrf.mxu0 }
0x1dc5   : > { %v3085_v16 = vpop.f32.mrf.mxu0 }
0x1dc6   : > { %v3088_v18 = vsel %vm4955_vm13, %v3085_v16, -1e+20 }
0x1dc7   : > { %v3089_v19 = vmul.f32 0.35355338, %v3088_v18 }
0x1dc9   : > { %v3090_v20 = vsel %vm1078_vm1, %v3089_v19, -inf }
0x1dca   : > { %3091 = vmax.xlane.f32.xlu1 %v3090_v20 }
0x1dd5   : > { %v3152_v21 = vpop.f32.mrf.mxu3 }
0x1dd6   : > { %v3155_v22 = vsel %vm4955_vm13, %v3152_v21, -1e+20 }
0x1dd7   : > { %v3156_v23 = vmul.f32 0.35355338, %v3155_v22 }
0x1dd9   : > { %v3157_v24 = vsel %vm1078_vm1, %v3156_v23, -inf }
0x1dda   : > { %3158 = vmax.xlane.f32.xlu2 %v3157_v24 }
0x1df2   : > { %3101 = vrot.lane.b32.xlu2 %v5185_v39, %s5532_s13  ;;  %s5559_s13 = sld [smem:[#allocation33_spill]] }
0x1e3d   : > { %v3092_v25 = vpop.xlane.xlu1 %3091 }
0x1e3e   : > { %v3093_v26 = vsub.f32 %v3089_v19, %v3092_v25 }
0x1e40   : > { %v3094_v41 = vmul.f32 1.442695, %v3093_v26 }
0x1e42   : > { %4367 = vpow2.f32 %v3094_v41  ;;  %v4269_v41 = vld [vmem:[%s5547_s6 + $0x1] ss:$0 sm:$0xff] }
0x1e48   : > { %v4368_v27 = vpop.eup %4367 }
0x1e49   : > { %v3096_v28 = vsel %vm1078_vm1, %v4368_v27, 0.0 }
0x1e4a   : > { %3097 = vadd.xlane.f32.xlu0 %v3096_v28 }
0x1e4d   : > { %v3159_v29 = vpop.xlane.xlu2 %3158 }
0x1e4e   : > { %v3160_v30 = vsub.f32 %v3156_v23, %v3159_v29  ;;  %v4270_v29 = vld [vmem:[%s5548_s25 + $0x1] ss:$0 sm:$0xff] }
0x1e50   : > { %v3161_v31 = vmul.f32 1.442695, %v3160_v30 }
0x1e52   : > { %4369 = vpow2.f32 %v3161_v31 }
0x1e55   : > { %v3102_v9 = vpop.permute.xlu2 %3101 }
0x1e56   : > { %3122 = vmatpush.msra.mxu1 %v3102_v9 }
0x1e58   : > { %v4370_v32 = vpop.eup %4369  ;;  %3227 = vmatpush.msrb.mxu1 %v4063_v52 }
0x1e59   : > { %v3163_v4 = vsel %vm1078_vm1, %v4370_v32, 0.0 }
0x1e5a   : > { %3164 = vadd.xlane.f32.xlu1 %v3163_v4  ;;  %3228 = vmatpush.msrb.mxu1 %v4062_v53 }
0x1e5c   : > { %3229 = vmatpush.msrb.mxu1 %v4061_v54 }
0x1e5e   : > { %3168 = vrot.lane.b32.xlu0 %v5185_v39, %s5534_s11  ;;  %v4084_v39 = vld [vmem:[%s5546_s24 + $0x38] sm:$0xff]  ;;  %3230 = vmatpush.msrb.mxu1 %v4060_v55 }
0x1e5f   : > { %3331 = vmatpush.msrb.mxu3 %v4084_v39  ;;  %v4234_v49 = vpack.i.bf16 %v4083_v44, %v4084_v39 }
0x1e61   : > { %3332 = vmatpush.msrb.mxu3 %v4083_v44 }
0x1e63   : > { %3333 = vmatpush.msrb.mxu3 %v4082_v45 }
0x1e65   : > { %3334 = vmatpush.msrb.mxu3 %v4081_v46 }
0x1e73   : > { %3195 = vrot.lane.b32.xlu1 %v3057_v43, %s5535_s23 }
0x1ebd   : > { %v3098_v7 = vpop.xlane.xlu0 %3097 }
0x1ebe   : > { %4371 = vrcp.f32 %v3098_v7 }
0x1ec4   : > { %v4372_v34 = vpop.eup %4371 }
0x1ec5   : > { %v3100_v35 = vmul.f32 %v4372_v34, %v4368_v27 }
0x1ec7   : > { %4074 = vmatmul.msk.f32.vlgmr.msra.gmra.mxu1 %vm1078_vm1, %v3100_v35 }
0x1ecd   : > { %v3165_v36 = vpop.xlane.xlu1 %3164 }
0x1ece   : > { %4373 = vrcp.f32 %v3165_v36 }
0x1ed0   : > { %v3169_v37 = vpop.permute.xlu0 %3168 }
0x1ed1   : > { %3189 = vmatpush.msra.mxu0 %v3169_v37 }
0x1ed4   : > { %v4374_v40 = vpop.eup %4373 }
0x1ed5   : > { %v3167_v42 = vmul.f32 %v4374_v40, %v4370_v32 }
0x1ed7   : > { %4077 = vmatmul.msk.f32.vlgmr.msra.gmra.mxu0 %vm1078_vm1, %v3167_v42 }
0x1ee5   : > { %v3196_v57 = vpop.permute.xlu1 %3195 }
0x1ee6   : > { %v3206_v58 = vsel %vm1078_vm1, %v5224_v15, %v3196_v57 }
0x1f44   : > { %v3124_v47 = vpop.f32.mrf.mxu1 }
0x1f45   : > { %3199 = vrot.lane.b32.xlu0 %v3124_v47, %s5538_s28 }
0x1f54   : > { %v3191_v48 = vpop.f32.mrf.mxu0 }
0x1f55   : > { %3203 = vrot.lane.b32.xlu2 %v3191_v48, %s5539_s7 }
0x1f5d   : > { %4235 = vrot.lane.b32.xlu2 %v4234_v49, %s5537_s17 }
0x1f65   : > { %4240 = vrot.lane.b32.xlu2 %v4239_v51, %s5537_s17 }
0x1faf   : > { %v3204_v56 = vpop.permute.xlu2 %3203 }
0x1fb7   : > { %v3200_v50 = vpop.permute.xlu0 %3199  ;;  %v4236_v59 = vpop.permute.xlu2 %4235 }
0x1fb8   : > { %v3207_v60 = vsel %vm1359_vm4, %v3206_v58, %v3200_v50  ;;  %v4238_v61 = vunpack.i.h.bf16 %v4236_v59  ;;  %v4237_v62 = vunpack.i.l.bf16 %v4236_v59 }
0x1fb9   : > { %v3208_v63 = vsel %vm1361_vm5, %v3207_v60, %v3204_v56 }
0x1fba   : > { %4078 = vmatmul.msk.f32.vlgmr.msrb.gmra.mxu1 %vm1051_vm0, %v3208_v63  ;;  %3367 = vmatpush.msrb.mxu0 %v4237_v62 }
0x1fbc   : > { %3368 = vmatpush.msrb.mxu0 %v4238_v61 }
0x1fbf   : > { %v4241_v0 = vpop.permute.xlu2 %4240 }
0x1fc0   : > { %v4243_v1 = vunpack.i.h.bf16 %v4241_v0  ;;  %v4242_v3 = vunpack.i.l.bf16 %v4241_v0 }
0x1fc2   : > { %3369 = vmatpush.msrb.mxu0 %v4242_v3 }
0x1fc4   : > { %3370 = vmatpush.msrb.mxu0 %v4243_v1 }
0x1fc5   : > { %4117 = vmatmul.msk.f32.vlgmr.msrb.gmra.mxu0 %vm1051_vm0, %v5072_v2 }
0x2037   : > { %v3232_v5 = vpop.f32.mrf.mxu1 }
0x2038   : > { %v3233_v10 = vadd.f32 %v4268_v6, %v3232_v5 }
0x203a   : > { %v3235_v11 = vadd.f32 %v3233_v10, %v5181_v38 }
0x203c   : > { %v3240_v12 = vsel %vm1051_vm0, %v3235_v11, 0.0 }
0x203d   : > { %3241 = vadd.xlane.f32.xlu0 %v3240_v12 }
0x2042   : > { %v5263_v13 = vpop.f32.mrf.mxu0 }
0x2043   : > { %3442 = vrot.lane.b32.xlu2 %v5263_v13, %s5540_s26  ;;  %4118 = vmatpush.xpose.msk.msrb.mxu2 %vm1078_vm1, %v5263_v13 }
0x204b   : > { %3509 = vrot.lane.b32.xlu2 %v5263_v13, %s5528_s15 }
0x209d   : > { %v3443_v2 = vpop.permute.xlu2 %3442 }
0x209e   : > { %4121 = vmatpush.xpose.msk.msra.mxu3 %vm1078_vm1, %v3443_v2 }
0x20a5   : > { %v3510_v8 = vpop.permute.xlu2 %3509 }
0x20a6   : > { %4124 = vmatpush.xpose.msk.msra.mxu2 %vm1078_vm1, %v3510_v8 }
0x20b0   : > { %v3242_v38 = vpop.xlane.xlu0 %3241 }
0x20b1   : > { %v3243_v14 = vmul.f32 %v3242_v38, %v4819_v33 }
0x20b3   : > { %v3244_v15 = vsub.f32 %v3235_v11, %v3243_v14 }
0x20b5   : > { %v3245_v16 = vmul.f32 %v3244_v15, %v3244_v15 }
0x20b7   : > { %v3246_v18 = vsel %vm1051_vm0, %v3245_v16, 0.0 }
0x20b8   : > { %3247 = vadd.xlane.f32.xlu1 %v3246_v18 }
0x212b   : > { %v3248_v19 = vpop.xlane.xlu1 %3247 }
0x212c   : > { %v3249_v20 = vmul.f32 %v3248_v19, %v4819_v33 }
0x212e   : > { %v3250_v43 = vadd.f32 1e-05, %v3249_v20 }
0x2130   : > { %4375 = vrsqrt.f32 %v3250_v43  ;;  %vm3257_vm8 = vweird.f32 %v3250_v43 }
0x2136   : > { %v4376_v21 = vpop.eup %4375 }
0x2137   : > { %v3252_v22 = vmul.f32 %v4376_v21, %v3250_v43  ;;  %vm3258_vm13 = vweird.f32 %v4376_v21 }
0x2138   : > { %vm3259_vm9 = vmor %vm3257_vm8, %vm3258_vm13 }
0x2139   : > { %v3253_v23 = vmul.f32 %v4376_v21, %v3252_v22 }
0x213b   : > { %v3254_v24 = vmul.f32 0.5, %v3253_v23 }
0x213d   : > { %v3255_v25 = vsub.f32 1.5, %v3254_v24 }
0x213f   : > { %v3256_v26 = vmul.f32 %v4376_v21, %v3255_v25 }
0x2141   : > { %v3260_v27 = vsel %vm3259_vm9, %v4376_v21, %v3256_v26 }
0x2142   : > { %v3261_v28 = vmul.f32 %v3260_v27, %v3244_v15 }
0x2144   : > { %v3265_v30 = vmul.f32 %v4269_v41, %v3261_v28 }
0x2146   : > { %v5278_v31 = vadd.f32 %v4270_v29, %v3265_v30  ;;  %v4088_v30 = vld [vmem:[%s5549_s8 + $0x38] sm:$0xff] }
0x2148   : > { %4116 = vmatmul.msk.f32.vlgmr.msrb.gmra.mxu3 %vm1051_vm0, %v5278_v31 }
0x21cb   : > { %v3336_v9 = vpop.f32.mrf.mxu3 }
0x21cc   : > { %3574 = vrot.lane.b32.xlu1 %v3336_v9, %s5530_s2  ;;  %3507 = vrot.lane.b32.xlu0 %v3336_v9, %s5528_s15 }
0x21cd   : > { %3440 = vrot.lane.b32.xlu2 %v3336_v9, %s5540_s26  ;;  %4119 = vmatmul.msk.f32.vlgmr.msrb.gmra.mxu2 %vm1078_vm1, %v3336_v9  ;;  %v4087_v9 = vld [vmem:[%s5549_s8 + $0x30] sm:$0xff] }
0x21ce   : > { %3674 = vmatpush.msrb.mxu2 %v4088_v30 }
0x21d0   : > { %3675 = vmatpush.msrb.mxu2 %v4087_v9 }
0x21d5   : > { %3576 = vrot.lane.b32.xlu2 %v5263_v13, %s5530_s2  ;;  %s5562_s2 = sld [smem:[#allocation35_spill]] }
0x21db   : > { %s5563_s11 = smov %s5562_s2 }
0x2227   : > { %v3441_v32 = vpop.permute.xlu2 %3440 }
0x2228   : > { %4122 = vmatmul.msk.f32.vlgmr.msra.gmra.mxu3 %vm1078_vm1, %v3441_v32  ;;  %v4086_v32 = vld [vmem:[%s5549_s8 + $0x28] sm:$0xff] }
0x2229   : > { %3676 = vmatpush.msrb.mxu2 %v4086_v32 }
0x222f   : > { %v3577_v4 = vpop.permute.xlu2 %3576 }
0x2230   : > { %4127 = vmatpush.xpose.msk.msrb.mxu3 %vm1078_vm1, %v3577_v4  ;;  %v4085_v4 = vld [vmem:[%s5549_s8 + $0x20] sm:$0xff] }
0x2231   : > { %3677 = vmatpush.msrb.mxu2 %v4085_v4 }
0x223e   : > { %v3575_v7 = vpop.permute.xlu1 %3574  ;;  %v3508_v34 = vpop.permute.xlu0 %3507 }
0x223f   : > { %4125 = vmatmul.msk.f32.vlgmr.msra.gmra.mxu2 %vm1078_vm1, %v3508_v34  ;;  %4128 = vmatmul.msk.f32.vlgmr.msrb.gmra.mxu3 %vm1078_vm1, %v3575_v7 }
0x2250   : > { %v3398_v35 = vpop.f32.mrf.mxu2 }
0x2251   : > { %v3401_v36 = vsel %vm4768_vm3, %v3398_v35, -1e+20 }
0x2252   : > { %v3402_v37 = vmul.f32 0.35355338, %v3401_v36 }
0x2254   : > { %v3403_v40 = vsel %vm1078_vm1, %v3402_v37, -inf }
0x2255   : > { %3404 = vmax.xlane.f32.xlu2 %v3403_v40 }
0x22ab   : > { %v3465_v42 = vpop.f32.mrf.mxu3 }
0x22ac   : > { %v3468_v39 = vsel %vm4768_vm3, %v3465_v42, -1e+20  ;;  %v4271_v42 = vld [vmem:[%s5550_s14 + $0x1] ss:$0 sm:$0xff] }
0x22ad   : > { %v3469_v44 = vmul.f32 0.35355338, %v3468_v39 }
0x22af   : > { %v3470_v45 = vsel %vm1078_vm1, %v3469_v44, -inf }
0x22b0   : > { %3471 = vmax.xlane.f32.xlu0 %v3470_v45 }
0x22c2   : > { %v3532_v46 = vpop.f32.mrf.mxu2  ;;  %v3599_v47 = vpop.f32.mrf.mxu3 }
0x22c3   : > { %v3535_v48 = vsel %vm4768_vm3, %v3532_v46, -1e+20  ;;  %v3602_v49 = vsel %vm4768_vm3, %v3599_v47, -1e+20 }
0x22c4   : > { %v3536_v51 = vmul.f32 0.35355338, %v3535_v48  ;;  %v3603_v52 = vmul.f32 0.35355338, %v3602_v49 }
0x22c6   : > { %v3537_v53 = vsel %vm1078_vm1, %v3536_v51, -inf  ;;  %v3604_v54 = vsel %vm1078_vm1, %v3603_v52, -inf }
0x22c7   : > { %3538 = vmax.xlane.f32.xlu1 %v3537_v53  ;;  %3605 = vmax.xlane.f32.xlu2 %v3604_v54  ;;  %v4097_v53 = vld [vmem:[%s5551_s29 + $0x38] sm:$0xff]  ;;  %v4096_v54 = vld [vmem:[%s5551_s29 + $0x30] sm:$0xff] }
0x22c8   : > { %v3405_v55 = vpop.xlane.xlu2 %3404 }
0x22c9   : > { %v3406_v56 = vsub.f32 %v3402_v37, %v3405_v55  ;;  %v4094_v55 = vld [vmem:[%s5551_s29 + $0x20] sm:$0xff] }
0x22cb   : > { %v3407_v57 = vmul.f32 1.442695, %v3406_v56  ;;  %v4114_v56 = vld [vmem:[%s5552_s30 + $0xf8] sm:$0xff] }
0x22cc   : > { %3743 = vmatpush.msra.mxu3 %v4114_v56 }
0x22cd   : > { %4377 = vpow2.f32 %v3407_v57  ;;  %v4113_v57 = vld [vmem:[%s5552_s30 + $0xf0] sm:$0xff] }
0x22ce   : > { %3744 = vmatpush.msra.mxu3 %v4113_v57 }
0x22d3   : > { %v4378_v58 = vpop.eup %4377 }
0x22d4   : > { %v3409_v50 = vsel %vm1078_vm1, %v4378_v58, 0.0 }
0x22d5   : > { %3410 = vadd.xlane.f32.xlu2 %v3409_v50 }
0x22e0   : > { %3414 = vrot.lane.b32.xlu1 %v5263_v13, %s5537_s17 }
0x22e8   : > { %3615 = vrot.lane.b32.xlu1 %v5263_v13, %s5529_s18  ;;  %s5564_s18 = sld [smem:[#allocation34_spill]] }
0x22ee   : > { %v4278_v56 = vld [vmem:[%s5564_s18] ss:$0 sm:$0xff] }
0x2323   : > { %v3472_v17 = vpop.xlane.xlu0 %3471 }
0x2324   : > { %v3473_v59 = vsub.f32 %v3469_v44, %v3472_v17 }
0x2326   : > { %v3474_v60 = vmul.f32 1.442695, %v3473_v59  ;;  %v4111_v59 = vld [vmem:[%s5552_s30 + $0xe0] sm:$0xff] }
0x2328   : > { %4379 = vpow2.f32 %v3474_v60 }
0x232e   : > { %v4380_v61 = vpop.eup %4379 }
0x232f   : > { %v3476_v62 = vsel %vm1078_vm1, %v4380_v61, 0.0 }
0x2330   : > { %3477 = vadd.xlane.f32.xlu0 %v3476_v62  ;;  %v4109_v62 = vld [vmem:[%s5552_s30 + $0xd0] sm:$0xff] }
0x233a   : > { %v3539_v63 = vpop.xlane.xlu1 %3538  ;;  %v3606_v0 = vpop.xlane.xlu2 %3605 }
0x233b   : > { %v3540_v1 = vsub.f32 %v3536_v51, %v3539_v63  ;;  %v3607_v3 = vsub.f32 %v3603_v52, %v3606_v0  ;;  %v4108_v63 = vld [vmem:[%s5552_s30 + $0xc8] sm:$0xff]  ;;  %v4107_v0 = vld [vmem:[%s5552_s30 + $0xc0] sm:$0xff] }
0x233d   : > { %v3541_v6 = vmul.f32 1.442695, %v3540_v1  ;;  %v3608_v5 = vmul.f32 1.442695, %v3607_v3  ;;  %v4106_v3 = vld [vmem:[%s5552_s30 + $0xb8] sm:$0xff] }
0x233f   : > { %4381 = vpow2.f32 %v3541_v6 }
0x2340   : > { %4383 = vpow2.f32 %v3608_v5  ;;  %v4105_v5 = vld [vmem:[%s5552_s30 + $0xb0] sm:$0xff] }
0x2345   : > { %v4382_v10 = vpop.eup %4381 }
0x2346   : > { %v4384_v11 = vpop.eup %4383  ;;  %v3543_v12 = vsel %vm1078_vm1, %v4382_v10, 0.0 }
0x2347   : > { %3544 = vadd.xlane.f32.xlu2 %v3543_v12  ;;  %v3610_v2 = vsel %vm1078_vm1, %v4384_v11, 0.0 }
0x2348   : > { %3611 = vadd.xlane.f32.xlu0 %v3610_v2  ;;  %v3411_v8 = vpop.xlane.xlu2 %3410  ;;  %v4103_v2 = vld [vmem:[%s5552_s30 + $0xa0] sm:$0xff] }
0x2349   : > { %4385 = vrcp.f32 %v3411_v8 }
0x234f   : > { %v4386_v38 = vpop.eup %4385 }
0x2350   : > { %v3413_v14 = vmul.f32 %v4386_v38, %v4378_v58  ;;  %v4112_v58 = vld [vmem:[%s5552_s30 + $0xe8] sm:$0xff]  ;;  %v4102_v38 = vld [vmem:[%s5552_s30 + $0x98] sm:$0xff] }
0x2351   : > { %3745 = vmatpush.msra.mxu3 %v4112_v58 }
0x2352   : > { %v3415_v15 = vpop.permute.xlu1 %3414 }
0x2353   : > { %3435 = vmatpush.msra.mxu1 %v3415_v15  ;;  %3746 = vmatpush.msra.mxu3 %v4111_v59  ;;  %v4272_v15 = vld [vmem:[%s5553_s22 + $0x1] ss:$0 sm:$0xff] }
0x2354   : > { %4120 = vmatmul.msk.f32.vlgmr.msra.gmra.mxu1 %vm1078_vm1, %v3413_v14 }
0x235a   : > { %v3616_v22 = vpop.permute.xlu1 %3615 }
0x235c   : > { %3548 = vrot.lane.b32.xlu0 %v5263_v13, %s5543_s21  ;;  %s5560_s21 = sld [smem:[#allocation37_spill]] }
0x235f   : > { %3481 = vrot.lane.b32.xlu2 %v5263_v13, %s5526_s5  ;;  %s3837_s5 = scalar_lea.hbm %s5562_s2, %s4134_s16 }
0x23a3   : > { %v3478_v16 = vpop.xlane.xlu0 %3477 }
0x23a4   : > { %4387 = vrcp.f32 %v3478_v16 }
0x23aa   : > { %v4388_v20 = vpop.eup %4387 }
0x23ab   : > { %v3480_v43 = vmul.f32 %v4388_v20, %v4380_v61  ;;  %v4110_v61 = vld [vmem:[%s5552_s30 + $0xd8] sm:$0xff] }
0x23ac   : > { %3747 = vmatpush.msra.mxu3 %v4110_v61 }
0x23ae   : > { %3748 = vmatpush.msra.mxu3 %v4109_v62 }
0x23b0   : > { %3749 = vmatpush.msra.mxu3 %v4108_v63 }
0x23b2   : > { %3750 = vmatpush.msra.mxu3 %v4107_v0 }
0x23b4   : > { %3751 = vmatpush.msra.mxu3 %v4106_v3 }
0x23b6   : > { %3752 = vmatpush.msra.mxu3 %v4105_v5 }
0x23ba   : > { %v3545_v18 = vpop.xlane.xlu2 %3544 }
0x23bb   : > { %v3612_v19 = vpop.xlane.xlu0 %3611 }
0x23bc   : > { %4389 = vrcp.f32 %v3612_v19  ;;  %v4273_v19 = vld [vmem:[%s5554_s20 + $0x1] ss:$0 sm:$0xff] }
0x23bd   : > { %4391 = vrcp.f32 %v3545_v18 }
0x23c2   : > { %v3482_v21 = vpop.permute.xlu2 %3481  ;;  %v4390_v23 = vpop.eup %4389 }
0x23c3   : > { %3502 = vmatpush.msra.mxu0 %v3482_v21  ;;  %v3614_v24 = vmul.f32 %v4390_v23, %v4384_v11  ;;  %v4392_v25 = vpop.eup %4391  ;;  %v4104_v11 = vld [vmem:[%s5552_s30 + $0xa8] sm:$0xff]  ;;  %v4101_v21 = vld [vmem:[%s5552_s30 + $0x90] sm:$0xff]  ;;  %v4099_v23 = vld [vmem:[%s5552_s30 + $0x80] sm:$0xff] }
0x23c4   : > { %4123 = vmatmul.msk.f32.vlgmr.msra.gmra.mxu0 %vm1078_vm1, %v3480_v43  ;;  %v3547_v13 = vmul.f32 %v4392_v25, %v4382_v10  ;;  %3753 = vmatpush.msra.mxu3 %v4104_v11 }
0x23c5   : > { %3636 = vmatpush.msrb.mxu0 %v3616_v22  ;;  %v4100_v22 = vld [vmem:[%s5552_s30 + $0x88] sm:$0xff] }
0x23c6   : > { %3754 = vmatpush.msra.mxu3 %v4103_v2 }
0x23c8   : > { %3755 = vmatpush.msra.mxu3 %v4102_v38 }
0x23ca   : > { %3756 = vmatpush.msra.mxu3 %v4101_v21 }
0x23cc   : > { %4129 = vmatmul.msk.f32.vlgmr.msrb.gmra.mxu0 %vm1078_vm1, %v3614_v24  ;;  %3757 = vmatpush.msra.mxu3 %v4100_v22  ;;  %v4274_v24 = vld [vmem:[%s5555_s27 + $0x1] ss:$0 sm:$0xff] }
0x23ce   : > { %v3549_v26 = vpop.permute.xlu0 %3548  ;;  %3758 = vmatpush.msra.mxu3 %v4099_v23 }
0x23cf   : > { %3569 = vmatpush.msrb.mxu1 %v3549_v26 }
0x23d0   : > { %4126 = vmatmul.msk.f32.vlgmr.msrb.gmra.mxu1 %vm1078_vm1, %v3547_v13 }
0x23d1   : > { %v3437_v27 = vpop.f32.mrf.mxu1  ;;  %3731 = vmatpush.msra.mxu1 %v4097_v53 }
0x23d3   : > { %3732 = vmatpush.msra.mxu1 %v4096_v54 }
0x2441   : > { %v3504_v41 = vpop.f32.mrf.mxu0 }
0x2442   : > { %3642 = vrot.lane.b32.xlu2 %v3504_v41, %s5535_s23  ;;  %v4275_v41 = vld [vmem:[%s4662_s4 + $0x1] ss:$0 sm:$0xff]  ;;  %s999_s23 = sand.u32 1, %s5560_s21   ;;  %s4417_s21 = scalar_lea.hbm %s5563_s11, 16 }
0x2443   : > { %s3958_s10 = sshll.u32 %s999_s23, 3  ;;  %s3827_s26 = scalar_lea.sflag [#allocation3], %s999_s23 }
0x2444   : > { %s1001_s17 = scalar_lea.vmem [#allocation2], %s3958_s10 }
0x2449   : > { %v3638_v28 = vpop.f32.mrf.mxu0 }
0x244a   : > { %3650 = vrot.lane.b32.xlu1 %v3638_v28, %s5539_s7  ;;  %s3841_s7 = sshll.u32 %s3837_s5, 4  ;;  %s3842_s7 = int_to_ptr.hbm [resolvable:$true] %s3841_s7 }
0x244d   : > { %v3571_v29 = vpop.f32.mrf.mxu1 }
0x244e   : > { %3646 = vrot.lane.b32.xlu0 %v3571_v29, %s5538_s28  ;;  %s3839_s28 = sshll.u32 %s1001_s17, 4  ;;  %s3840_s28 = int_to_ptr.vmem [resolvable:$true] %s3839_s28 }
0x249c   : > { %v3643_v7 = vpop.permute.xlu2 %3642 }
0x249d   : > { %v3653_v34 = vsel %vm1078_vm1, %v3437_v27, %v3643_v7 }
0x24bc   : > { %v3651_v36 = vpop.permute.xlu1 %3650 }
0x24c0   : > { %v3647_v35 = vpop.permute.xlu0 %3646 }
0x24c1   : > { %v3654_v37 = vsel %vm1359_vm4, %v3653_v34, %v3647_v35  ;;  %v3797_v35 = vld [vmem:[%s5559_s13 + $0x18] sm:$0xff] }
0x24c2   : > { %v3655_v40 = vsel %vm1361_vm5, %v3654_v37, %v3651_v36  ;;  %3817 = vmatpush.msra.mxu0 %v3797_v35  ;;  %v3796_v36 = vld [vmem:[%s5559_s13 + $0x10] sm:$0xff]  ;;  %v3795_v37 = vld [vmem:[%s5559_s13 + $0x8] sm:$0xff] }
0x24c3   : > { %4130 = vmatmul.msk.f32.vlgmr.msrb.gmra.mxu2 %vm1051_vm0, %v3655_v40  ;;  %v3794_v40 = vld [vmem:[%s5559_s13] sm:$0xff] }
0x24c4   : > { %3818 = vmatpush.msra.mxu0 %v3796_v36 }
0x24c6   : > { %3819 = vmatpush.msra.mxu0 %v3795_v37 }
0x24c8   : > { %3820 = vmatpush.msra.mxu0 %v3794_v40 }
0x2546   : > { %v3679_v39 = vpop.f32.mrf.mxu2 }
0x2547   : > { %v3680_v44 = vadd.f32 %v4271_v42, %v3679_v39 }
0x2549   : > { %v3682_v45 = vadd.f32 %v3680_v44, %v5278_v31  ;;  %v4095_v31 = vld [vmem:[%s5551_s29 + $0x28] sm:$0xff] }
0x254a   : > { %3733 = vmatpush.msra.mxu1 %v4095_v31  ;;  %v4277_v31 = vld [vmem:[%s5558_s9 + $0x1] ss:$0 sm:$0xff] }
0x254b   : > { %v3683_v46 = vsel %vm1051_vm0, %v3682_v45, 0.0 }
0x254c   : > { %3684 = vadd.xlane.f32.xlu2 %v3683_v46  ;;  %3734 = vmatpush.msra.mxu1 %v4094_v55 }
0x25bf   : > { %v3685_v47 = vpop.xlane.xlu2 %3684 }
0x25c0   : > { %v3686_v48 = vmul.f32 %v3685_v47, %v4819_v33 }
0x25c2   : > { %v3687_v49 = vsub.f32 %v3682_v45, %v3686_v48 }
0x25c4   : > { %v3688_v51 = vmul.f32 %v3687_v49, %v3687_v49 }
0x25c6   : > { %v3689_v52 = vsel %vm1051_vm0, %v3688_v51, 0.0 }
0x25c7   : > { %3690 = vadd.xlane.f32.xlu0 %v3689_v52  ;;  %v4276_v52 = vld [vmem:[%s5556_s0 + $0x1] ss:$0 sm:$0xff]  ;;  %s4411_s0 = sshra.s32 %s3842_s7, 4  ;;  %s4412_s0 = int_to_ptr.hbm [resolvable:$true] %s4411_s0 }
0x25c8   : > { %s4413_s3 = scalar_lea.hbm %s4412_s0, 8  ;;  %p4418_p0 = scmp.lt.s32.totalorder %s4412_s0, %s5563_s11 }
0x25c9   : > { %p4414_p11 = scmp.ne.s32.totalorder %s4412_s0, %s4413_s3  ;;  %p4419_p1 = scmp.lt.s32.totalorder %s4417_s21, %s4413_s3 }
0x25cb   : > { %p4415_p12 = pnand %p4414_p11, %p4717_p5  ;;  %p4420_p2 = por %p4419_p1, %p4418_p0 }
0x25cd   : > { %p4416_p13 = pneg %p4415_p12 }
0x25cf   : > { %p4421_p3 = pnand %p4420_p2, %p4416_p13 }
0x263a   : > { %v3691_v50 = vpop.xlane.xlu0 %3690 }
0x263b   : > { %v3692_v17 = vmul.f32 %v3691_v50, %v4819_v33 }
0x263d   : > { %v3693_v60 = vadd.f32 1e-05, %v3692_v17 }
0x263f   : > { %4393 = vrsqrt.f32 %v3693_v60  ;;  %vm3700_vm3 = vweird.f32 %v3693_v60 }
0x2645   : > { %v4394_v1 = vpop.eup %4393 }
0x2646   : > { %v3695_v6 = vmul.f32 %v4394_v1, %v3693_v60  ;;  %vm3701_vm1 = vweird.f32 %v4394_v1 }
0x2647   : > { %vm3702_vm4 = vmor %vm3700_vm3, %vm3701_vm1 }
0x2648   : > { %v3696_v10 = vmul.f32 %v4394_v1, %v3695_v6 }
0x264a   : > { %v3697_v12 = vmul.f32 0.5, %v3696_v10 }
0x264c   : > { %v3698_v8 = vsub.f32 1.5, %v3697_v12 }
0x264e   : > { %v3699_v14 = vmul.f32 %v4394_v1, %v3698_v8 }
0x2650   : > { %v3703_v16 = vsel %vm3702_vm4, %v4394_v1, %v3699_v14 }
0x2651   : > { %v3704_v18 = vmul.f32 %v3703_v16, %v3687_v49 }
0x2653   : > { %v3708_v20 = vmul.f32 %v4272_v15, %v3704_v18 }
0x2655   : > { %v3712_v43 = vadd.f32 %v4273_v19, %v3708_v20 }
0x2657   : > { %4131 = vmatmul.msk.f32.vlgmr.msra.gmra.mxu1 %vm1051_vm0, %v3712_v43 }
0x26d4   : > { %v3736_v25 = vpop.f32.mrf.mxu1 }
0x26d5   : > { %v3737_v13 = vadd.f32 %v4274_v24, %v3736_v25 }
0x26d7   : > { %v3739_v26 = vmax.f32 %v3737_v13, 0.0 }
0x26d9   : > { %3759 = vmatmul.f32.vlgmr.msra.gmra.mxu3 %v3739_v26 }
0x275c   : > { %v3760_v27 = vpop.f32.mrf.mxu3 }
0x275d   : > { %v3761_v28 = vadd.f32 %v4275_v41, %v3760_v27 }
0x275f   : > { %v3763_v29 = vadd.f32 %v3761_v28, %v3712_v43 }
0x2761   : > { %v3764_v30 = vsel %vm1051_vm0, %v3763_v29, 0.0 }
0x2762   : > { %3765 = vadd.xlane.f32.xlu1 %v3764_v30 }
0x27d5   : > { %v3766_v9 = vpop.xlane.xlu1 %3765 }
0x27d6   : > { %v3767_v32 = vmul.f32 %v3766_v9, %v4819_v33 }
0x27d8   : > { %v3768_v4 = vsub.f32 %v3763_v29, %v3767_v32 }
0x27da   : > { %v3769_v7 = vmul.f32 %v3768_v4, %v3768_v4 }
0x27dc   : > { %v3770_v34 = vsel %vm1051_vm0, %v3769_v7, 0.0 }
0x27dd   : > { %3771 = vadd.xlane.f32.xlu2 %v3770_v34 }
0x2850   : > { %v3772_v42 = vpop.xlane.xlu2 %3771 }
0x2851   : > { %v3773_v39 = vmul.f32 %v3772_v42, %v4819_v33 }
0x2853   : > { %v3774_v44 = vadd.f32 1e-05, %v3773_v39 }
0x2855   : > { %4395 = vrsqrt.f32 %v3774_v44  ;;  %vm3781_vm10 = vweird.f32 %v3774_v44 }
0x285b   : > { %v4396_v45 = vpop.eup %4395 }
0x285c   : > { %v3776_v46 = vmul.f32 %v4396_v45, %v3774_v44  ;;  %vm3782_vm5 = vweird.f32 %v4396_v45 }
0x285d   : > { %vm3783_vm11 = vmor %vm3781_vm10, %vm3782_vm5 }
0x285e   : > { %v3777_v47 = vmul.f32 %v4396_v45, %v3776_v46 }
0x2860   : > { %v3778_v48 = vmul.f32 0.5, %v3777_v47 }
0x2862   : > { %v3779_v49 = vsub.f32 1.5, %v3778_v48 }
0x2864   : > { %v3780_v51 = vmul.f32 %v4396_v45, %v3779_v49 }
0x2866   : > { %v3784_v53 = vsel %vm3783_vm11, %v4396_v45, %v3780_v51 }
0x2867   : > { %v3785_v54 = vmul.f32 %v3784_v53, %v3768_v4 }
0x2869   : > { %v3789_v33 = vmul.f32 %v4276_v52, %v3785_v54 }
0x286b   : > { %v3793_v55 = vadd.f32 %v4277_v31, %v3789_v33 }
0x286d   : > { %4132 = vmatmul.msk.f32.vlgmr.msra.gmra.mxu0 %vm1051_vm0, %v3793_v55 }
0x28ea   : > { %v3822_v57 = vpop.f32.mrf.mxu0 }
0x28eb   : > { %v3823_v58 = vadd.f32 %v4278_v56, %v3822_v57 }
0x28ed   : > { %3825 = vst [vmem:[%s1001_s17] sm:$0xff] %v3823_v58 }
0x28ee   : > { %4424 = shalt.err (!%p4421_p3)
}
0x28ef   : > { %4137 = dma.vmem_to_hbm [thread:$0]  (%p4717_p5), %s3840_s28, 128, %s3842_s7, %s3827_s26  }
0x28f0 PF: > { %s5566_s1 = sld [smem:[#allocation39_spill]] }
0x28f1   : > { %s5567_s2 = sld [smem:[#allocation36_spill]] }
0x28f6   : > { %p4143_p4 = scmp.ge.s32.totalorder %s5566_s1, 2 }
0x28f7   : > { %s3853_s23 = sand.u32 1, %s5567_s2  }
0x28f8   : > { %p4140_p7 = pnand %p4143_p4, %p4721_p6  ;;  %s3854_s10 = scalar_lea.sflag [#allocation3], %s3853_s23 }
0x28fa   : > { %p4141_p8 = pneg %p4140_p7 }
0x28fc   : > { %4442 = dma.done.wait (%p4141_p8), %s3854_s10, 128  }
0x28fd   : > { %4444 = vsyncadd (%p4141_p8), %s3854_s10, 4294967168  ;;  %s5569_s7 = sld [smem:[#allocation41_spill]] }
0x28fe   : > { %s5570_s28 = sld [smem:[#allocation37_spill]] }
0x28ff   : > { %s5571_s1 = sld [smem:[#allocation38_spill]] }
0x2900   : > { %s5572_s2 = sld [smem:[#allocation42_spill]] }
0x2903   : > { %p75_p9 = scmp.ge.s32.totalorder %s5569_s7, 4  }
0x2905   :  { %77 = sbr.rel (!%p75_p9) target bundleno = 74 (0x4a), region = 248 }
0x290a   :  { %3860 = vsyncpa [#allocation3], 1 }
0x290b   :  { %3862 = vsyncpa [#allocation3 + $0x1], 1 }

</bundles_post_ra>
